<compile_context>
chip_gen: v6e
topology: v6e:2x2x1
jax: 0.10.0
libtpu: 0.0.40
codegen_flags: <defaults>
</compile_context>

<pallas_src>
import functools

import jax
import jax.numpy as jnp
from jax.experimental import pallas as pl
from jax.experimental.pallas import tpu as pltpu


def _sigmoid(x):
    # Written explicitly (exp + div) to keep lowering trivial; exp goes to the EUP.
    return 1.0 / (1.0 + jnp.exp(-x))


def _cbam_kernel(x_ref, w1t_ref, w2_ref, wrow_ref, o_ref, pad_ref, *, H, W, left):
    HW = H * W

    x = x_ref[0]                                          # (C, HW) f32, lane-dense

    # ---------------- channel attention ----------------
    s_avg = jnp.mean(x, axis=1, keepdims=True)            # (C, 1)  AdaptiveAvgPool2d(1)
    s_max = jnp.max(x, axis=1, keepdims=True)             # (C, 1)  AdaptiveMaxPool2d(1)

    w1t = w1t_ref[...]                                    # (C, Cr)  conv1 weight, transposed
    w2 = w2_ref[...]                                      # (C, Cr)  conv2 weight

    def shared_mlp(v):                                    # v: (C, 1) -> (C, 1)
        hidden = jnp.sum(w1t * v, axis=0, keepdims=True)  # (1, Cr)  = W1 @ v
        hidden = jnp.maximum(hidden, 0.0)                 # ReLU
        return jnp.sum(w2 * hidden, axis=1, keepdims=True)  # (C, 1) = W2 @ hidden

    ca = _sigmoid(shared_mlp(s_avg) + shared_mlp(s_max))  # (C, 1)
    out_ca = x * ca                                       # (C, HW)  channel-attended

    # ---------------- spatial attention ----------------
    m_avg = jnp.mean(out_ca, axis=0, keepdims=True)       # (1, HW)  mean over channels
    m_max = jnp.max(out_ca, axis=0, keepdims=True)        # (1, HW)  max  over channels

    # Zero-padded flat rows in VMEM scratch: [0, left) zeros, data, 3W+3 trailing zeros.
    # Data store offset `left` is a multiple of 128 -> lane-aligned stores.
    pad_ref[...] = jnp.zeros(pad_ref.shape, pad_ref.dtype)
    pad_ref[0:1, pl.ds(left, HW)] = m_avg
    pad_ref[1:2, pl.ds(left, HW)] = m_max

    # 7x7 conv (stride 1, pad 3) as 49 shifted taps on the flat rows.
    # wrow_ref rows 0..48  : weights for the mean map (row-wrap mask baked in)
    # wrow_ref rows 49..97 : weights for the max map
    # wrow_ref row  98     : broadcast bias
    base = left - 3 * W - 3
    acc = wrow_ref[98:99, :]                              # (1, HW) bias init
    for dy in range(7):
        for dx in range(7):
            start = base + dy * W + dx
            i = dy * 7 + dx
            acc = acc + pad_ref[0:1, pl.ds(start, HW)] * wrow_ref[i:i + 1, :] \
                      + pad_ref[1:2, pl.ds(start, HW)] * wrow_ref[49 + i:50 + i, :]
    sa = _sigmoid(acc)                                    # (1, HW)

    o_ref[0] = out_ca * sa                                # (C, HW) lane-dense store


def cbam_forward(x_nchw, w1_oihw, w2_oihw, w_sp_oihw, b_sp):
    """CBAM forward.

    x_nchw:    (N, C, H, W)      input (PyTorch NCHW layout, f32)
    w1_oihw:   (C//r, C, 1, 1)   channel-MLP conv1 weight (bias=False)
    w2_oihw:   (C, C//r, 1, 1)   channel-MLP conv2 weight (bias=False)
    w_sp_oihw: (1, 2, 7, 7)      spatial 7x7 conv weight
    b_sp:      (1,)              spatial 7x7 conv bias
    """
    N, C, H, W = x_nchw.shape
    HW = H * W
    Cr = w1_oihw.shape[0]

    # NCHW stays NCHW: only a contiguous (free) reshape to a lane-dense slab.
    x = x_nchw.reshape(N, C, HW).astype(jnp.float32)

    w1t = jnp.transpose(w1_oihw.reshape(Cr, C)).astype(jnp.float32)      # (C, Cr)
    w2 = w2_oihw.reshape(C, Cr).astype(jnp.float32)                      # (C, Cr)

    # Pre-bake (host/XLA side): per-tap 7x7 weight rows with the horizontal
    # row-wrap mask folded in, plus a bias row.  valid[dx, p] = 1 iff the column
    # of flat position p shifted by (dx-3) stays inside [0, W).
    col = jnp.tile(jnp.arange(W, dtype=jnp.int32), H)                    # (HW,)
    dxs = jnp.arange(7, dtype=jnp.int32)
    valid = ((col[None, :] + dxs[:, None] >= 3)
             & (col[None, :] + dxs[:, None] < W + 3)).astype(jnp.float32)  # (7, HW)
    wsp = w_sp_oihw.reshape(2, 7, 7).astype(jnp.float32)
    wrows = (wsp[:, :, :, None] * valid[None, None, :, :]).reshape(98, HW)
    bias_row = jnp.broadcast_to(b_sp.astype(jnp.float32).reshape(1, 1), (1, HW))
    wrows = jnp.concatenate([wrows, bias_row], axis=0)                   # (99, HW)

    # Padded-row geometry: data starts at a 128-aligned lane offset so the two
    # in-kernel data stores are aligned; taps read at arbitrary (static) offsets.
    left = ((3 * W + 3 + 127) // 128) * 128
    pad_len = left + HW + 3 * W + 3

    kernel = functools.partial(_cbam_kernel, H=H, W=W, left=left)

    out = pl.pallas_call(
        kernel,
        out_shape=jax.ShapeDtypeStruct((N, C, HW), jnp.float32),
        grid_spec=pltpu.PrefetchScalarGridSpec(
            num_scalar_prefetch=0,
            grid=(N,),
            in_specs=[
                pl.BlockSpec((1, C, HW), lambda n: (n, 0, 0)),      # x, one sample / step
                pl.BlockSpec((C, Cr), lambda n: (0, 0)),            # MLP W1^T (resident)
                pl.BlockSpec((C, Cr), lambda n: (0, 0)),            # MLP W2   (resident)
                pl.BlockSpec((wrows.shape[0], HW), lambda n: (0, 0)),  # masked 7x7 weights + bias
            ],
            out_specs=pl.BlockSpec((1, C, HW), lambda n: (n, 0, 0)),
            scratch_shapes=[pltpu.VMEM((2, pad_len), jnp.float32)],
        ),
        compiler_params=pltpu.CompilerParams(
            dimension_semantics=("parallel",),       # batch across cores (v7x megacore)
            vmem_limit_bytes=32 * 1024 * 1024,       # explicit headroom, safe on v5e-v7x
        ),
    )(x, w1t, w2, wrows)

    return out.reshape(N, C, H, W)


def _reference_forward(x, w1, w2, w_sp, b_sp):
    """Plain-JAX reference (matches the PyTorch CBAM semantics)."""
    N, C, H, W = x.shape
    Cr = w1.shape[0]
    w1m = w1.reshape(Cr, C)
    w2m = w2.reshape(C, Cr)

    avg = jnp.mean(x, axis=(2, 3))                  # (N, C)
    mx = jnp.max(x, axis=(2, 3))                    # (N, C)

    def mlp(v):
        h = jnp.maximum(v @ w1m.T, 0.0)             # (N, Cr)
        return h @ w2m.T                            # (N, C)

    ca = jax.nn.sigmoid(mlp(avg) + mlp(mx))         # (N, C)
    out = x * ca[:, :, None, None]

    am = jnp.mean(out, axis=1, keepdims=True)       # (N, 1, H, W)
    amx = jnp.max(out, axis=1, keepdims=True)       # (N, 1, H, W)
    cat = jnp.concatenate([am, amx], axis=1)        # (N, 2, H, W)
    conv = jax.lax.conv_general_dilated(
        cat, w_sp, window_strides=(1, 1), padding=((3, 3), (3, 3)),
        dimension_numbers=("NCHW", "OIHW", "NCHW"))
    sa = jax.nn.sigmoid(conv + b_sp[None, :, None, None])
    return out * sa


if __name__ == "__main__":
    key = jax.random.PRNGKey(0)
    # CBAM default ratio=16 requires channel >= 16; use C=32 so the MLP hidden dim is 2.
    N, C, H, W = 2, 32, 16, 16
    ratio = 16
    Cr = C // ratio

    kx, k1, k2, k3, k4 = jax.random.split(key, 5)
    x = jax.random.normal(kx, (N, C, H, W), dtype=jnp.float32)
    w1 = 0.2 * jax.random.normal(k1, (Cr, C, 1, 1), dtype=jnp.float32)   # Conv2d(C, C//r, 1, bias=False)
    w2 = 0.2 * jax.random.normal(k2, (C, Cr, 1, 1), dtype=jnp.float32)   # Conv2d(C//r, C, 1, bias=False)
    w_sp = 0.2 * jax.random.normal(k3, (1, 2, 7, 7), dtype=jnp.float32)  # Conv2d(2, 1, 7, padding=3)
    b_sp = 0.2 * jax.random.normal(k4, (1,), dtype=jnp.float32)

    out = cbam_forward(x, w1, w2, w_sp, b_sp)
    out = jax.block_until_ready(out)

    ref = _reference_forward(x, w1, w2, w_sp, b_sp)
    assert out.shape == x.shape
    assert jnp.allclose(out, ref, atol=1e-4, rtol=1e-4), "mismatch vs reference"

    print("KERNEL_OK")
</pallas_src>

<mosaic_0001>
module attributes {stable_mosaic.version = 11 : i64} {
  func.func @_cbam_kernel(%arg0: i32, %arg1: memref<1x32x256xf32, #tpu.memory_space<vmem>>, %arg2: memref<32x2xf32, #tpu.memory_space<vmem>>, %arg3: memref<32x2xf32, #tpu.memory_space<vmem>>, %arg4: memref<99x256xf32, #tpu.memory_space<vmem>>, %arg5: memref<1x32x256xf32, #tpu.memory_space<vmem>>, %arg6: memref<2x435xf32, #tpu.memory_space<vmem>>) attributes {dimension_semantics = [#tpu.dimension_semantics<parallel>], iteration_bounds = array<i64: 2>, scalar_prefetch = 0 : i64, scratch_operands = 1 : i64, tpu.core_type = #tpu.core_type<tc>, window_params = [{transform_indices = @transform_0, window_bounds = array<i64: 1, 32, 256>}, {pipeline_mode = #tpu.pipeline_mode<synchronous>, transform_indices = @transform_1, window_bounds = array<i64: 32, 2>}, {pipeline_mode = #tpu.pipeline_mode<synchronous>, transform_indices = @transform_2, window_bounds = array<i64: 32, 2>}, {pipeline_mode = #tpu.pipeline_mode<synchronous>, transform_indices = @transform_3, window_bounds = array<i64: 99, 256>}, {transform_indices = @transform_4, window_bounds = array<i64: 1, 32, 256>}]} {
    %c0 = arith.constant 0 : index
    %c0_0 = arith.constant 0 : index
    %c0_1 = arith.constant 0 : index
    %0 = vector.load %arg1[%c0, %c0_0, %c0_1] : memref<1x32x256xf32, #tpu.memory_space<vmem>>, vector<1x32x256xf32>
    %1 = vector.shape_cast %0 : vector<1x32x256xf32> to vector<32x256xf32>
    %cst = arith.constant dense<0.000000e+00> : vector<32xf32>
    %2 = vector.multi_reduction <add>, %1, %cst [1] : vector<32x256xf32> to vector<32xf32>
    %3 = vector.shape_cast %2 : vector<32xf32> to vector<32x1xf32>
    %cst_2 = arith.constant 2.560000e+02 : f32
    %4 = vector.broadcast %cst_2 : f32 to vector<32x1xf32>
    %5 = arith.divf %3, %4 : vector<32x1xf32>
    %cst_3 = arith.constant dense<0xFF800000> : vector<32xf32>
    %6 = vector.multi_reduction <maximumf>, %1, %cst_3 [1] : vector<32x256xf32> to vector<32xf32>
    %7 = vector.shape_cast %6 : vector<32xf32> to vector<32x1xf32>
    %c0_4 = arith.constant 0 : index
    %c0_5 = arith.constant 0 : index
    %8 = vector.load %arg2[%c0_4, %c0_5] : memref<32x2xf32, #tpu.memory_space<vmem>>, vector<32x2xf32>
    %c0_6 = arith.constant 0 : index
    %c0_7 = arith.constant 0 : index
    %9 = vector.load %arg3[%c0_6, %c0_7] : memref<32x2xf32, #tpu.memory_space<vmem>>, vector<32x2xf32>
    %10 = vector.broadcast %5 : vector<32x1xf32> to vector<32x2xf32>
    %11 = arith.mulf %8, %10 : vector<32x2xf32>
    %cst_8 = arith.constant dense<0.000000e+00> : vector<2xf32>
    %12 = vector.multi_reduction <add>, %11, %cst_8 [0] : vector<32x2xf32> to vector<2xf32>
    %13 = vector.shape_cast %12 : vector<2xf32> to vector<1x2xf32>
    %cst_9 = arith.constant 0.000000e+00 : f32
    %14 = vector.broadcast %cst_9 : f32 to vector<1x2xf32>
    %15 = arith.maximumf %13, %14 : vector<1x2xf32>
    %16 = vector.broadcast %15 : vector<1x2xf32> to vector<32x2xf32>
    %17 = arith.mulf %9, %16 : vector<32x2xf32>
    %cst_10 = arith.constant dense<0.000000e+00> : vector<32xf32>
    %18 = vector.multi_reduction <add>, %17, %cst_10 [1] : vector<32x2xf32> to vector<32xf32>
    %19 = vector.shape_cast %18 : vector<32xf32> to vector<32x1xf32>
    %20 = vector.broadcast %7 : vector<32x1xf32> to vector<32x2xf32>
    %21 = arith.mulf %8, %20 : vector<32x2xf32>
    %cst_11 = arith.constant dense<0.000000e+00> : vector<2xf32>
    %22 = vector.multi_reduction <add>, %21, %cst_11 [0] : vector<32x2xf32> to vector<2xf32>
    %23 = vector.shape_cast %22 : vector<2xf32> to vector<1x2xf32>
    %cst_12 = arith.constant 0.000000e+00 : f32
    %24 = vector.broadcast %cst_12 : f32 to vector<1x2xf32>
    %25 = arith.maximumf %23, %24 : vector<1x2xf32>
    %26 = vector.broadcast %25 : vector<1x2xf32> to vector<32x2xf32>
    %27 = arith.mulf %9, %26 : vector<32x2xf32>
    %cst_13 = arith.constant dense<0.000000e+00> : vector<32xf32>
    %28 = vector.multi_reduction <add>, %27, %cst_13 [1] : vector<32x2xf32> to vector<32xf32>
    %29 = vector.shape_cast %28 : vector<32xf32> to vector<32x1xf32>
    %30 = arith.addf %19, %29 : vector<32x1xf32>
    %cst_14 = arith.constant 0.000000e+00 : f32
    %31 = vector.broadcast %cst_14 : f32 to vector<32x1xf32>
    %32 = arith.subf %31, %30 : vector<32x1xf32>
    %33 = math.exp %32 : vector<32x1xf32>
    %cst_15 = arith.constant 1.000000e+00 : f32
    %34 = vector.broadcast %cst_15 : f32 to vector<32x1xf32>
    %35 = arith.addf %34, %33 : vector<32x1xf32>
    %cst_16 = arith.constant 1.000000e+00 : f32
    %36 = vector.broadcast %cst_16 : f32 to vector<32x1xf32>
    %37 = arith.divf %36, %35 : vector<32x1xf32>
    %38 = vector.broadcast %37 : vector<32x1xf32> to vector<32x256xf32>
    %39 = arith.mulf %1, %38 : vector<32x256xf32>
    %cst_17 = arith.constant dense<0.000000e+00> : vector<256xf32>
    %40 = vector.multi_reduction <add>, %39, %cst_17 [0] : vector<32x256xf32> to vector<256xf32>
    %41 = vector.shape_cast %40 : vector<256xf32> to vector<1x256xf32>
    %cst_18 = arith.constant 3.200000e+01 : f32
    %42 = vector.broadcast %cst_18 : f32 to vector<1x256xf32>
    %43 = arith.divf %41, %42 : vector<1x256xf32>
    %cst_19 = arith.constant dense<0xFF800000> : vector<256xf32>
    %44 = vector.multi_reduction <maximumf>, %39, %cst_19 [0] : vector<32x256xf32> to vector<256xf32>
    %45 = vector.shape_cast %44 : vector<256xf32> to vector<1x256xf32>
    %cst_20 = arith.constant 0.000000e+00 : f32
    %46 = vector.broadcast %cst_20 : f32 to vector<2x435xf32>
    %c0_21 = arith.constant 0 : index
    %c0_22 = arith.constant 0 : index
    %47 = vector.load %arg6[%c0_21, %c0_22] : memref<2x435xf32, #tpu.memory_space<vmem>>, vector<2x435xf32>
    tpu.vector_store %arg6[%c0_21, %c0_22], %46 {strides = array<i32>} : memref<2x435xf32, #tpu.memory_space<vmem>>, vector<2x435xf32>,
    %c0_23 = arith.constant 0 : index
    %c128 = arith.constant 128 : index
    %48 = vector.load %arg6[%c0_23, %c128] : memref<2x435xf32, #tpu.memory_space<vmem>>, vector<1x256xf32>
    tpu.vector_store %arg6[%c0_23, %c128], %43 {strides = array<i32>} : memref<2x435xf32, #tpu.memory_space<vmem>>, vector<1x256xf32>,
    %c1 = arith.constant 1 : index
    %c128_24 = arith.constant 128 : index
    %49 = vector.load %arg6[%c1, %c128_24] : memref<2x435xf32, #tpu.memory_space<vmem>>, vector<1x256xf32>
    tpu.vector_store %arg6[%c1, %c128_24], %45 {strides = array<i32>} : memref<2x435xf32, #tpu.memory_space<vmem>>, vector<1x256xf32>,
    %c98 = arith.constant 98 : index
    %c0_25 = arith.constant 0 : index
    %50 = vector.load %arg4[%c98, %c0_25] : memref<99x256xf32, #tpu.memory_space<vmem>>, vector<1x256xf32>
    %c0_26 = arith.constant 0 : index
    %c77 = arith.constant 77 : index
    %51 = vector.load %arg6[%c0_26, %c77] : memref<2x435xf32, #tpu.memory_space<vmem>>, vector<1x256xf32>
    %c0_27 = arith.constant 0 : index
    %c0_28 = arith.constant 0 : index
    %52 = vector.load %arg4[%c0_27, %c0_28] : memref<99x256xf32, #tpu.memory_space<vmem>>, vector<1x256xf32>
    %53 = arith.mulf %51, %52 : vector<1x256xf32>
    %54 = arith.addf %50, %53 : vector<1x256xf32>
    %c1_29 = arith.constant 1 : index
    %c77_30 = arith.constant 77 : index
    %55 = vector.load %arg6[%c1_29, %c77_30] : memref<2x435xf32, #tpu.memory_space<vmem>>, vector<1x256xf32>
    %c49 = arith.constant 49 : index
    %c0_31 = arith.constant 0 : index
    %56 = vector.load %arg4[%c49, %c0_31] : memref<99x256xf32, #tpu.memory_space<vmem>>, vector<1x256xf32>
    %57 = arith.mulf %55, %56 : vector<1x256xf32>
    %58 = arith.addf %54, %57 : vector<1x256xf32>
    %c0_32 = arith.constant 0 : index
    %c78 = arith.constant 78 : index
    %59 = vector.load %arg6[%c0_32, %c78] : memref<2x435xf32, #tpu.memory_space<vmem>>, vector<1x256xf32>
    %c1_33 = arith.constant 1 : index
    %c0_34 = arith.constant 0 : index
    %60 = vector.load %arg4[%c1_33, %c0_34] : memref<99x256xf32, #tpu.memory_space<vmem>>, vector<1x256xf32>
    %61 = arith.mulf %59, %60 : vector<1x256xf32>
    %62 = arith.addf %58, %61 : vector<1x256xf32>
    %c1_35 = arith.constant 1 : index
    %c78_36 = arith.constant 78 : index
    %63 = vector.load %arg6[%c1_35, %c78_36] : memref<2x435xf32, #tpu.memory_space<vmem>>, vector<1x256xf32>
    %c50 = arith.constant 50 : index
    %c0_37 = arith.constant 0 : index
    %64 = vector.load %arg4[%c50, %c0_37] : memref<99x256xf32, #tpu.memory_space<vmem>>, vector<1x256xf32>
    %65 = arith.mulf %63, %64 : vector<1x256xf32>
    %66 = arith.addf %62, %65 : vector<1x256xf32>
    %c0_38 = arith.constant 0 : index
    %c79 = arith.constant 79 : index
    %67 = vector.load %arg6[%c0_38, %c79] : memref<2x435xf32, #tpu.memory_space<vmem>>, vector<1x256xf32>
    %c2 = arith.constant 2 : index
    %c0_39 = arith.constant 0 : index
    %68 = vector.load %arg4[%c2, %c0_39] : memref<99x256xf32, #tpu.memory_space<vmem>>, vector<1x256xf32>
    %69 = arith.mulf %67, %68 : vector<1x256xf32>
    %70 = arith.addf %66, %69 : vector<1x256xf32>
    %c1_40 = arith.constant 1 : index
    %c79_41 = arith.constant 79 : index
    %71 = vector.load %arg6[%c1_40, %c79_41] : memref<2x435xf32, #tpu.memory_space<vmem>>, vector<1x256xf32>
    %c51 = arith.constant 51 : index
    %c0_42 = arith.constant 0 : index
    %72 = vector.load %arg4[%c51, %c0_42] : memref<99x256xf32, #tpu.memory_space<vmem>>, vector<1x256xf32>
    %73 = arith.mulf %71, %72 : vector<1x256xf32>
    %74 = arith.addf %70, %73 : vector<1x256xf32>
    %c0_43 = arith.constant 0 : index
    %c80 = arith.constant 80 : index
    %75 = vector.load %arg6[%c0_43, %c80] : memref<2x435xf32, #tpu.memory_space<vmem>>, vector<1x256xf32>
    %c3 = arith.constant 3 : index
    %c0_44 = arith.constant 0 : index
    %76 = vector.load %arg4[%c3, %c0_44] : memref<99x256xf32, #tpu.memory_space<vmem>>, vector<1x256xf32>
    %77 = arith.mulf %75, %76 : vector<1x256xf32>
    %78 = arith.addf %74, %77 : vector<1x256xf32>
    %c1_45 = arith.constant 1 : index
    %c80_46 = arith.constant 80 : index
    %79 = vector.load %arg6[%c1_45, %c80_46] : memref<2x435xf32, #tpu.memory_space<vmem>>, vector<1x256xf32>
    %c52 = arith.constant 52 : index
    %c0_47 = arith.constant 0 : index
    %80 = vector.load %arg4[%c52, %c0_47] : memref<99x256xf32, #tpu.memory_space<vmem>>, vector<1x256xf32>
    %81 = arith.mulf %79, %80 : vector<1x256xf32>
    %82 = arith.addf %78, %81 : vector<1x256xf32>
    %c0_48 = arith.constant 0 : index
    %c81 = arith.constant 81 : index
    %83 = vector.load %arg6[%c0_48, %c81] : memref<2x435xf32, #tpu.memory_space<vmem>>, vector<1x256xf32>
    %c4 = arith.constant 4 : index
    %c0_49 = arith.constant 0 : index
    %84 = vector.load %arg4[%c4, %c0_49] : memref<99x256xf32, #tpu.memory_space<vmem>>, vector<1x256xf32>
    %85 = arith.mulf %83, %84 : vector<1x256xf32>
    %86 = arith.addf %82, %85 : vector<1x256xf32>
    %c1_50 = arith.constant 1 : index
    %c81_51 = arith.constant 81 : index
    %87 = vector.load %arg6[%c1_50, %c81_51] : memref<2x435xf32, #tpu.memory_space<vmem>>, vector<1x256xf32>
    %c53 = arith.constant 53 : index
    %c0_52 = arith.constant 0 : index
    %88 = vector.load %arg4[%c53, %c0_52] : memref<99x256xf32, #tpu.memory_space<vmem>>, vector<1x256xf32>
    %89 = arith.mulf %87, %88 : vector<1x256xf32>
    %90 = arith.addf %86, %89 : vector<1x256xf32>
    %c0_53 = arith.constant 0 : index
    %c82 = arith.constant 82 : index
    %91 = vector.load %arg6[%c0_53, %c82] : memref<2x435xf32, #tpu.memory_space<vmem>>, vector<1x256xf32>
    %c5 = arith.constant 5 : index
    %c0_54 = arith.constant 0 : index
    %92 = vector.load %arg4[%c5, %c0_54] : memref<99x256xf32, #tpu.memory_space<vmem>>, vector<1x256xf32>
    %93 = arith.mulf %91, %92 : vector<1x256xf32>
    %94 = arith.addf %90, %93 : vector<1x256xf32>
    %c1_55 = arith.constant 1 : index
    %c82_56 = arith.constant 82 : index
    %95 = vector.load %arg6[%c1_55, %c82_56] : memref<2x435xf32, #tpu.memory_space<vmem>>, vector<1x256xf32>
    %c54 = arith.constant 54 : index
    %c0_57 = arith.constant 0 : index
    %96 = vector.load %arg4[%c54, %c0_57] : memref<99x256xf32, #tpu.memory_space<vmem>>, vector<1x256xf32>
    %97 = arith.mulf %95, %96 : vector<1x256xf32>
    %98 = arith.addf %94, %97 : vector<1x256xf32>
    %c0_58 = arith.constant 0 : index
    %c83 = arith.constant 83 : index
    %99 = vector.load %arg6[%c0_58, %c83] : memref<2x435xf32, #tpu.memory_space<vmem>>, vector<1x256xf32>
    %c6 = arith.constant 6 : index
    %c0_59 = arith.constant 0 : index
    %100 = vector.load %arg4[%c6, %c0_59] : memref<99x256xf32, #tpu.memory_space<vmem>>, vector<1x256xf32>
    %101 = arith.mulf %99, %100 : vector<1x256xf32>
    %102 = arith.addf %98, %101 : vector<1x256xf32>
    %c1_60 = arith.constant 1 : index
    %c83_61 = arith.constant 83 : index
    %103 = vector.load %arg6[%c1_60, %c83_61] : memref<2x435xf32, #tpu.memory_space<vmem>>, vector<1x256xf32>
    %c55 = arith.constant 55 : index
    %c0_62 = arith.constant 0 : index
    %104 = vector.load %arg4[%c55, %c0_62] : memref<99x256xf32, #tpu.memory_space<vmem>>, vector<1x256xf32>
    %105 = arith.mulf %103, %104 : vector<1x256xf32>
    %106 = arith.addf %102, %105 : vector<1x256xf32>
    %c0_63 = arith.constant 0 : index
    %c93 = arith.constant 93 : index
    %107 = vector.load %arg6[%c0_63, %c93] : memref<2x435xf32, #tpu.memory_space<vmem>>, vector<1x256xf32>
    %c7 = arith.constant 7 : index
    %c0_64 = arith.constant 0 : index
    %108 = vector.load %arg4[%c7, %c0_64] : memref<99x256xf32, #tpu.memory_space<vmem>>, vector<1x256xf32>
    %109 = arith.mulf %107, %108 : vector<1x256xf32>
    %110 = arith.addf %106, %109 : vector<1x256xf32>
    %c1_65 = arith.constant 1 : index
    %c93_66 = arith.constant 93 : index
    %111 = vector.load %arg6[%c1_65, %c93_66] : memref<2x435xf32, #tpu.memory_space<vmem>>, vector<1x256xf32>
    %c56 = arith.constant 56 : index
    %c0_67 = arith.constant 0 : index
    %112 = vector.load %arg4[%c56, %c0_67] : memref<99x256xf32, #tpu.memory_space<vmem>>, vector<1x256xf32>
    %113 = arith.mulf %111, %112 : vector<1x256xf32>
    %114 = arith.addf %110, %113 : vector<1x256xf32>
    %c0_68 = arith.constant 0 : index
    %c94 = arith.constant 94 : index
    %115 = vector.load %arg6[%c0_68, %c94] : memref<2x435xf32, #tpu.memory_space<vmem>>, vector<1x256xf32>
    %c8 = arith.constant 8 : index
    %c0_69 = arith.constant 0 : index
    %116 = vector.load %arg4[%c8, %c0_69] : memref<99x256xf32, #tpu.memory_space<vmem>>, vector<1x256xf32>
    %117 = arith.mulf %115, %116 : vector<1x256xf32>
    %118 = arith.addf %114, %117 : vector<1x256xf32>
    %c1_70 = arith.constant 1 : index
    %c94_71 = arith.constant 94 : index
    %119 = vector.load %arg6[%c1_70, %c94_71] : memref<2x435xf32, #tpu.memory_space<vmem>>, vector<1x256xf32>
    %c57 = arith.constant 57 : index
    %c0_72 = arith.constant 0 : index
    %120 = vector.load %arg4[%c57, %c0_72] : memref<99x256xf32, #tpu.memory_space<vmem>>, vector<1x256xf32>
    %121 = arith.mulf %119, %120 : vector<1x256xf32>
    %122 = arith.addf %118, %121 : vector<1x256xf32>
    %c0_73 = arith.constant 0 : index
    %c95 = arith.constant 95 : index
    %123 = vector.load %arg6[%c0_73, %c95] : memref<2x435xf32, #tpu.memory_space<vmem>>, vector<1x256xf32>
    %c9 = arith.constant 9 : index
    %c0_74 = arith.constant 0 : index
    %124 = vector.load %arg4[%c9, %c0_74] : memref<99x256xf32, #tpu.memory_space<vmem>>, vector<1x256xf32>
    %125 = arith.mulf %123, %124 : vector<1x256xf32>
    %126 = arith.addf %122, %125 : vector<1x256xf32>
    %c1_75 = arith.constant 1 : index
    %c95_76 = arith.constant 95 : index
    %127 = vector.load %arg6[%c1_75, %c95_76] : memref<2x435xf32, #tpu.memory_space<vmem>>, vector<1x256xf32>
    %c58 = arith.constant 58 : index
    %c0_77 = arith.constant 0 : index
    %128 = vector.load %arg4[%c58, %c0_77] : memref<99x256xf32, #tpu.memory_space<vmem>>, vector<1x256xf32>
    %129 = arith.mulf %127, %128 : vector<1x256xf32>
    %130 = arith.addf %126, %129 : vector<1x256xf32>
    %c0_78 = arith.constant 0 : index
    %c96 = arith.constant 96 : index
    %131 = vector.load %arg6[%c0_78, %c96] : memref<2x435xf32, #tpu.memory_space<vmem>>, vector<1x256xf32>
    %c10 = arith.constant 10 : index
    %c0_79 = arith.constant 0 : index
    %132 = vector.load %arg4[%c10, %c0_79] : memref<99x256xf32, #tpu.memory_space<vmem>>, vector<1x256xf32>
    %133 = arith.mulf %131, %132 : vector<1x256xf32>
    %134 = arith.addf %130, %133 : vector<1x256xf32>
    %c1_80 = arith.constant 1 : index
    %c96_81 = arith.constant 96 : index
    %135 = vector.load %arg6[%c1_80, %c96_81] : memref<2x435xf32, #tpu.memory_space<vmem>>, vector<1x256xf32>
    %c59 = arith.constant 59 : index
    %c0_82 = arith.constant 0 : index
    %136 = vector.load %arg4[%c59, %c0_82] : memref<99x256xf32, #tpu.memory_space<vmem>>, vector<1x256xf32>
    %137 = arith.mulf %135, %136 : vector<1x256xf32>
    %138 = arith.addf %134, %137 : vector<1x256xf32>
    %c0_83 = arith.constant 0 : index
    %c97 = arith.constant 97 : index
    %139 = vector.load %arg6[%c0_83, %c97] : memref<2x435xf32, #tpu.memory_space<vmem>>, vector<1x256xf32>
    %c11 = arith.constant 11 : index
    %c0_84 = arith.constant 0 : index
    %140 = vector.load %arg4[%c11, %c0_84] : memref<99x256xf32, #tpu.memory_space<vmem>>, vector<1x256xf32>
    %141 = arith.mulf %139, %140 : vector<1x256xf32>
    %142 = arith.addf %138, %141 : vector<1x256xf32>
    %c1_85 = arith.constant 1 : index
    %c97_86 = arith.constant 97 : index
    %143 = vector.load %arg6[%c1_85, %c97_86] : memref<2x435xf32, #tpu.memory_space<vmem>>, vector<1x256xf32>
    %c60 = arith.constant 60 : index
    %c0_87 = arith.constant 0 : index
    %144 = vector.load %arg4[%c60, %c0_87] : memref<99x256xf32, #tpu.memory_space<vmem>>, vector<1x256xf32>
    %145 = arith.mulf %143, %144 : vector<1x256xf32>
    %146 = arith.addf %142, %145 : vector<1x256xf32>
    %c0_88 = arith.constant 0 : index
    %c98_89 = arith.constant 98 : index
    %147 = vector.load %arg6[%c0_88, %c98_89] : memref<2x435xf32, #tpu.memory_space<vmem>>, vector<1x256xf32>
    %c12 = arith.constant 12 : index
    %c0_90 = arith.constant 0 : index
    %148 = vector.load %arg4[%c12, %c0_90] : memref<99x256xf32, #tpu.memory_space<vmem>>, vector<1x256xf32>
    %149 = arith.mulf %147, %148 : vector<1x256xf32>
    %150 = arith.addf %146, %149 : vector<1x256xf32>
    %c1_91 = arith.constant 1 : index
    %c98_92 = arith.constant 98 : index
    %151 = vector.load %arg6[%c1_91, %c98_92] : memref<2x435xf32, #tpu.memory_space<vmem>>, vector<1x256xf32>
    %c61 = arith.constant 61 : index
    %c0_93 = arith.constant 0 : index
    %152 = vector.load %arg4[%c61, %c0_93] : memref<99x256xf32, #tpu.memory_space<vmem>>, vector<1x256xf32>
    %153 = arith.mulf %151, %152 : vector<1x256xf32>
    %154 = arith.addf %150, %153 : vector<1x256xf32>
    %c0_94 = arith.constant 0 : index
    %c99 = arith.constant 99 : index
    %155 = vector.load %arg6[%c0_94, %c99] : memref<2x435xf32, #tpu.memory_space<vmem>>, vector<1x256xf32>
    %c13 = arith.constant 13 : index
    %c0_95 = arith.constant 0 : index
    %156 = vector.load %arg4[%c13, %c0_95] : memref<99x256xf32, #tpu.memory_space<vmem>>, vector<1x256xf32>
    %157 = arith.mulf %155, %156 : vector<1x256xf32>
    %158 = arith.addf %154, %157 : vector<1x256xf32>
    %c1_96 = arith.constant 1 : index
    %c99_97 = arith.constant 99 : index
    %159 = vector.load %arg6[%c1_96, %c99_97] : memref<2x435xf32, #tpu.memory_space<vmem>>, vector<1x256xf32>
    %c62 = arith.constant 62 : index
    %c0_98 = arith.constant 0 : index
    %160 = vector.load %arg4[%c62, %c0_98] : memref<99x256xf32, #tpu.memory_space<vmem>>, vector<1x256xf32>
    %161 = arith.mulf %159, %160 : vector<1x256xf32>
    %162 = arith.addf %158, %161 : vector<1x256xf32>
    %c0_99 = arith.constant 0 : index
    %c109 = arith.constant 109 : index
    %163 = vector.load %arg6[%c0_99, %c109] : memref<2x435xf32, #tpu.memory_space<vmem>>, vector<1x256xf32>
    %c14 = arith.constant 14 : index
    %c0_100 = arith.constant 0 : index
    %164 = vector.load %arg4[%c14, %c0_100] : memref<99x256xf32, #tpu.memory_space<vmem>>, vector<1x256xf32>
    %165 = arith.mulf %163, %164 : vector<1x256xf32>
    %166 = arith.addf %162, %165 : vector<1x256xf32>
    %c1_101 = arith.constant 1 : index
    %c109_102 = arith.constant 109 : index
    %167 = vector.load %arg6[%c1_101, %c109_102] : memref<2x435xf32, #tpu.memory_space<vmem>>, vector<1x256xf32>
    %c63 = arith.constant 63 : index
    %c0_103 = arith.constant 0 : index
    %168 = vector.load %arg4[%c63, %c0_103] : memref<99x256xf32, #tpu.memory_space<vmem>>, vector<1x256xf32>
    %169 = arith.mulf %167, %168 : vector<1x256xf32>
    %170 = arith.addf %166, %169 : vector<1x256xf32>
    %c0_104 = arith.constant 0 : index
    %c110 = arith.constant 110 : index
    %171 = vector.load %arg6[%c0_104, %c110] : memref<2x435xf32, #tpu.memory_space<vmem>>, vector<1x256xf32>
    %c15 = arith.constant 15 : index
    %c0_105 = arith.constant 0 : index
    %172 = vector.load %arg4[%c15, %c0_105] : memref<99x256xf32, #tpu.memory_space<vmem>>, vector<1x256xf32>
    %173 = arith.mulf %171, %172 : vector<1x256xf32>
    %174 = arith.addf %170, %173 : vector<1x256xf32>
    %c1_106 = arith.constant 1 : index
    %c110_107 = arith.constant 110 : index
    %175 = vector.load %arg6[%c1_106, %c110_107] : memref<2x435xf32, #tpu.memory_space<vmem>>, vector<1x256xf32>
    %c64 = arith.constant 64 : index
    %c0_108 = arith.constant 0 : index
    %176 = vector.load %arg4[%c64, %c0_108] : memref<99x256xf32, #tpu.memory_space<vmem>>, vector<1x256xf32>
    %177 = arith.mulf %175, %176 : vector<1x256xf32>
    %178 = arith.addf %174, %177 : vector<1x256xf32>
    %c0_109 = arith.constant 0 : index
    %c111 = arith.constant 111 : index
    %179 = vector.load %arg6[%c0_109, %c111] : memref<2x435xf32, #tpu.memory_space<vmem>>, vector<1x256xf32>
    %c16 = arith.constant 16 : index
    %c0_110 = arith.constant 0 : index
    %180 = vector.load %arg4[%c16, %c0_110] : memref<99x256xf32, #tpu.memory_space<vmem>>, vector<1x256xf32>
    %181 = arith.mulf %179, %180 : vector<1x256xf32>
    %182 = arith.addf %178, %181 : vector<1x256xf32>
    %c1_111 = arith.constant 1 : index
    %c111_112 = arith.constant 111 : index
    %183 = vector.load %arg6[%c1_111, %c111_112] : memref<2x435xf32, #tpu.memory_space<vmem>>, vector<1x256xf32>
    %c65 = arith.constant 65 : index
    %c0_113 = arith.constant 0 : index
    %184 = vector.load %arg4[%c65, %c0_113] : memref<99x256xf32, #tpu.memory_space<vmem>>, vector<1x256xf32>
    %185 = arith.mulf %183, %184 : vector<1x256xf32>
    %186 = arith.addf %182, %185 : vector<1x256xf32>
    %c0_114 = arith.constant 0 : index
    %c112 = arith.constant 112 : index
    %187 = vector.load %arg6[%c0_114, %c112] : memref<2x435xf32, #tpu.memory_space<vmem>>, vector<1x256xf32>
    %c17 = arith.constant 17 : index
    %c0_115 = arith.constant 0 : index
    %188 = vector.load %arg4[%c17, %c0_115] : memref<99x256xf32, #tpu.memory_space<vmem>>, vector<1x256xf32>
    %189 = arith.mulf %187, %188 : vector<1x256xf32>
    %190 = arith.addf %186, %189 : vector<1x256xf32>
    %c1_116 = arith.constant 1 : index
    %c112_117 = arith.constant 112 : index
    %191 = vector.load %arg6[%c1_116, %c112_117] : memref<2x435xf32, #tpu.memory_space<vmem>>, vector<1x256xf32>
    %c66 = arith.constant 66 : index
    %c0_118 = arith.constant 0 : index
    %192 = vector.load %arg4[%c66, %c0_118] : memref<99x256xf32, #tpu.memory_space<vmem>>, vector<1x256xf32>
    %193 = arith.mulf %191, %192 : vector<1x256xf32>
    %194 = arith.addf %190, %193 : vector<1x256xf32>
    %c0_119 = arith.constant 0 : index
    %c113 = arith.constant 113 : index
    %195 = vector.load %arg6[%c0_119, %c113] : memref<2x435xf32, #tpu.memory_space<vmem>>, vector<1x256xf32>
    %c18 = arith.constant 18 : index
    %c0_120 = arith.constant 0 : index
    %196 = vector.load %arg4[%c18, %c0_120] : memref<99x256xf32, #tpu.memory_space<vmem>>, vector<1x256xf32>
    %197 = arith.mulf %195, %196 : vector<1x256xf32>
    %198 = arith.addf %194, %197 : vector<1x256xf32>
    %c1_121 = arith.constant 1 : index
    %c113_122 = arith.constant 113 : index
    %199 = vector.load %arg6[%c1_121, %c113_122] : memref<2x435xf32, #tpu.memory_space<vmem>>, vector<1x256xf32>
    %c67 = arith.constant 67 : index
    %c0_123 = arith.constant 0 : index
    %200 = vector.load %arg4[%c67, %c0_123] : memref<99x256xf32, #tpu.memory_space<vmem>>, vector<1x256xf32>
    %201 = arith.mulf %199, %200 : vector<1x256xf32>
    %202 = arith.addf %198, %201 : vector<1x256xf32>
    %c0_124 = arith.constant 0 : index
    %c114 = arith.constant 114 : index
    %203 = vector.load %arg6[%c0_124, %c114] : memref<2x435xf32, #tpu.memory_space<vmem>>, vector<1x256xf32>
    %c19 = arith.constant 19 : index
    %c0_125 = arith.constant 0 : index
    %204 = vector.load %arg4[%c19, %c0_125] : memref<99x256xf32, #tpu.memory_space<vmem>>, vector<1x256xf32>
    %205 = arith.mulf %203, %204 : vector<1x256xf32>
    %206 = arith.addf %202, %205 : vector<1x256xf32>
    %c1_126 = arith.constant 1 : index
    %c114_127 = arith.constant 114 : index
    %207 = vector.load %arg6[%c1_126, %c114_127] : memref<2x435xf32, #tpu.memory_space<vmem>>, vector<1x256xf32>
    %c68 = arith.constant 68 : index
    %c0_128 = arith.constant 0 : index
    %208 = vector.load %arg4[%c68, %c0_128] : memref<99x256xf32, #tpu.memory_space<vmem>>, vector<1x256xf32>
    %209 = arith.mulf %207, %208 : vector<1x256xf32>
    %210 = arith.addf %206, %209 : vector<1x256xf32>
    %c0_129 = arith.constant 0 : index
    %c115 = arith.constant 115 : index
    %211 = vector.load %arg6[%c0_129, %c115] : memref<2x435xf32, #tpu.memory_space<vmem>>, vector<1x256xf32>
    %c20 = arith.constant 20 : index
    %c0_130 = arith.constant 0 : index
    %212 = vector.load %arg4[%c20, %c0_130] : memref<99x256xf32, #tpu.memory_space<vmem>>, vector<1x256xf32>
    %213 = arith.mulf %211, %212 : vector<1x256xf32>
    %214 = arith.addf %210, %213 : vector<1x256xf32>
    %c1_131 = arith.constant 1 : index
    %c115_132 = arith.constant 115 : index
    %215 = vector.load %arg6[%c1_131, %c115_132] : memref<2x435xf32, #tpu.memory_space<vmem>>, vector<1x256xf32>
    %c69 = arith.constant 69 : index
    %c0_133 = arith.constant 0 : index
    %216 = vector.load %arg4[%c69, %c0_133] : memref<99x256xf32, #tpu.memory_space<vmem>>, vector<1x256xf32>
    %217 = arith.mulf %215, %216 : vector<1x256xf32>
    %218 = arith.addf %214, %217 : vector<1x256xf32>
    %c0_134 = arith.constant 0 : index
    %c125 = arith.constant 125 : index
    %219 = vector.load %arg6[%c0_134, %c125] : memref<2x435xf32, #tpu.memory_space<vmem>>, vector<1x256xf32>
    %c21 = arith.constant 21 : index
    %c0_135 = arith.constant 0 : index
    %220 = vector.load %arg4[%c21, %c0_135] : memref<99x256xf32, #tpu.memory_space<vmem>>, vector<1x256xf32>
    %221 = arith.mulf %219, %220 : vector<1x256xf32>
    %222 = arith.addf %218, %221 : vector<1x256xf32>
    %c1_136 = arith.constant 1 : index
    %c125_137 = arith.constant 125 : index
    %223 = vector.load %arg6[%c1_136, %c125_137] : memref<2x435xf32, #tpu.memory_space<vmem>>, vector<1x256xf32>
    %c70 = arith.constant 70 : index
    %c0_138 = arith.constant 0 : index
    %224 = vector.load %arg4[%c70, %c0_138] : memref<99x256xf32, #tpu.memory_space<vmem>>, vector<1x256xf32>
    %225 = arith.mulf %223, %224 : vector<1x256xf32>
    %226 = arith.addf %222, %225 : vector<1x256xf32>
    %c0_139 = arith.constant 0 : index
    %c126 = arith.constant 126 : index
    %227 = vector.load %arg6[%c0_139, %c126] : memref<2x435xf32, #tpu.memory_space<vmem>>, vector<1x256xf32>
    %c22 = arith.constant 22 : index
    %c0_140 = arith.constant 0 : index
    %228 = vector.load %arg4[%c22, %c0_140] : memref<99x256xf32, #tpu.memory_space<vmem>>, vector<1x256xf32>
    %229 = arith.mulf %227, %228 : vector<1x256xf32>
    %230 = arith.addf %226, %229 : vector<1x256xf32>
    %c1_141 = arith.constant 1 : index
    %c126_142 = arith.constant 126 : index
    %231 = vector.load %arg6[%c1_141, %c126_142] : memref<2x435xf32, #tpu.memory_space<vmem>>, vector<1x256xf32>
    %c71 = arith.constant 71 : index
    %c0_143 = arith.constant 0 : index
    %232 = vector.load %arg4[%c71, %c0_143] : memref<99x256xf32, #tpu.memory_space<vmem>>, vector<1x256xf32>
    %233 = arith.mulf %231, %232 : vector<1x256xf32>
    %234 = arith.addf %230, %233 : vector<1x256xf32>
    %c0_144 = arith.constant 0 : index
    %c127 = arith.constant 127 : index
    %235 = vector.load %arg6[%c0_144, %c127] : memref<2x435xf32, #tpu.memory_space<vmem>>, vector<1x256xf32>
    %c23 = arith.constant 23 : index
    %c0_145 = arith.constant 0 : index
    %236 = vector.load %arg4[%c23, %c0_145] : memref<99x256xf32, #tpu.memory_space<vmem>>, vector<1x256xf32>
    %237 = arith.mulf %235, %236 : vector<1x256xf32>
    %238 = arith.addf %234, %237 : vector<1x256xf32>
    %c1_146 = arith.constant 1 : index
    %c127_147 = arith.constant 127 : index
    %239 = vector.load %arg6[%c1_146, %c127_147] : memref<2x435xf32, #tpu.memory_space<vmem>>, vector<1x256xf32>
    %c72 = arith.constant 72 : index
    %c0_148 = arith.constant 0 : index
    %240 = vector.load %arg4[%c72, %c0_148] : memref<99x256xf32, #tpu.memory_space<vmem>>, vector<1x256xf32>
    %241 = arith.mulf %239, %240 : vector<1x256xf32>
    %242 = arith.addf %238, %241 : vector<1x256xf32>
    %c0_149 = arith.constant 0 : index
    %c128_150 = arith.constant 128 : index
    %243 = vector.load %arg6[%c0_149, %c128_150] : memref<2x435xf32, #tpu.memory_space<vmem>>, vector<1x256xf32>
    %c24 = arith.constant 24 : index
    %c0_151 = arith.constant 0 : index
    %244 = vector.load %arg4[%c24, %c0_151] : memref<99x256xf32, #tpu.memory_space<vmem>>, vector<1x256xf32>
    %245 = arith.mulf %243, %244 : vector<1x256xf32>
    %246 = arith.addf %242, %245 : vector<1x256xf32>
    %c1_152 = arith.constant 1 : index
    %c128_153 = arith.constant 128 : index
    %247 = vector.load %arg6[%c1_152, %c128_153] : memref<2x435xf32, #tpu.memory_space<vmem>>, vector<1x256xf32>
    %c73 = arith.constant 73 : index
    %c0_154 = arith.constant 0 : index
    %248 = vector.load %arg4[%c73, %c0_154] : memref<99x256xf32, #tpu.memory_space<vmem>>, vector<1x256xf32>
    %249 = arith.mulf %247, %248 : vector<1x256xf32>
    %250 = arith.addf %246, %249 : vector<1x256xf32>
    %c0_155 = arith.constant 0 : index
    %c129 = arith.constant 129 : index
    %251 = vector.load %arg6[%c0_155, %c129] : memref<2x435xf32, #tpu.memory_space<vmem>>, vector<1x256xf32>
    %c25 = arith.constant 25 : index
    %c0_156 = arith.constant 0 : index
    %252 = vector.load %arg4[%c25, %c0_156] : memref<99x256xf32, #tpu.memory_space<vmem>>, vector<1x256xf32>
    %253 = arith.mulf %251, %252 : vector<1x256xf32>
    %254 = arith.addf %250, %253 : vector<1x256xf32>
    %c1_157 = arith.constant 1 : index
    %c129_158 = arith.constant 129 : index
    %255 = vector.load %arg6[%c1_157, %c129_158] : memref<2x435xf32, #tpu.memory_space<vmem>>, vector<1x256xf32>
    %c74 = arith.constant 74 : index
    %c0_159 = arith.constant 0 : index
    %256 = vector.load %arg4[%c74, %c0_159] : memref<99x256xf32, #tpu.memory_space<vmem>>, vector<1x256xf32>
    %257 = arith.mulf %255, %256 : vector<1x256xf32>
    %258 = arith.addf %254, %257 : vector<1x256xf32>
    %c0_160 = arith.constant 0 : index
    %c130 = arith.constant 130 : index
    %259 = vector.load %arg6[%c0_160, %c130] : memref<2x435xf32, #tpu.memory_space<vmem>>, vector<1x256xf32>
    %c26 = arith.constant 26 : index
    %c0_161 = arith.constant 0 : index
    %260 = vector.load %arg4[%c26, %c0_161] : memref<99x256xf32, #tpu.memory_space<vmem>>, vector<1x256xf32>
    %261 = arith.mulf %259, %260 : vector<1x256xf32>
    %262 = arith.addf %258, %261 : vector<1x256xf32>
    %c1_162 = arith.constant 1 : index
    %c130_163 = arith.constant 130 : index
    %263 = vector.load %arg6[%c1_162, %c130_163] : memref<2x435xf32, #tpu.memory_space<vmem>>, vector<1x256xf32>
    %c75 = arith.constant 75 : index
    %c0_164 = arith.constant 0 : index
    %264 = vector.load %arg4[%c75, %c0_164] : memref<99x256xf32, #tpu.memory_space<vmem>>, vector<1x256xf32>
    %265 = arith.mulf %263, %264 : vector<1x256xf32>
    %266 = arith.addf %262, %265 : vector<1x256xf32>
    %c0_165 = arith.constant 0 : index
    %c131 = arith.constant 131 : index
    %267 = vector.load %arg6[%c0_165, %c131] : memref<2x435xf32, #tpu.memory_space<vmem>>, vector<1x256xf32>
    %c27 = arith.constant 27 : index
    %c0_166 = arith.constant 0 : index
    %268 = vector.load %arg4[%c27, %c0_166] : memref<99x256xf32, #tpu.memory_space<vmem>>, vector<1x256xf32>
    %269 = arith.mulf %267, %268 : vector<1x256xf32>
    %270 = arith.addf %266, %269 : vector<1x256xf32>
    %c1_167 = arith.constant 1 : index
    %c131_168 = arith.constant 131 : index
    %271 = vector.load %arg6[%c1_167, %c131_168] : memref<2x435xf32, #tpu.memory_space<vmem>>, vector<1x256xf32>
    %c76 = arith.constant 76 : index
    %c0_169 = arith.constant 0 : index
    %272 = vector.load %arg4[%c76, %c0_169] : memref<99x256xf32, #tpu.memory_space<vmem>>, vector<1x256xf32>
    %273 = arith.mulf %271, %272 : vector<1x256xf32>
    %274 = arith.addf %270, %273 : vector<1x256xf32>
    %c0_170 = arith.constant 0 : index
    %c141 = arith.constant 141 : index
    %275 = vector.load %arg6[%c0_170, %c141] : memref<2x435xf32, #tpu.memory_space<vmem>>, vector<1x256xf32>
    %c28 = arith.constant 28 : index
    %c0_171 = arith.constant 0 : index
    %276 = vector.load %arg4[%c28, %c0_171] : memref<99x256xf32, #tpu.memory_space<vmem>>, vector<1x256xf32>
    %277 = arith.mulf %275, %276 : vector<1x256xf32>
    %278 = arith.addf %274, %277 : vector<1x256xf32>
    %c1_172 = arith.constant 1 : index
    %c141_173 = arith.constant 141 : index
    %279 = vector.load %arg6[%c1_172, %c141_173] : memref<2x435xf32, #tpu.memory_space<vmem>>, vector<1x256xf32>
    %c77_174 = arith.constant 77 : index
    %c0_175 = arith.constant 0 : index
    %280 = vector.load %arg4[%c77_174, %c0_175] : memref<99x256xf32, #tpu.memory_space<vmem>>, vector<1x256xf32>
    %281 = arith.mulf %279, %280 : vector<1x256xf32>
    %282 = arith.addf %278, %281 : vector<1x256xf32>
    %c0_176 = arith.constant 0 : index
    %c142 = arith.constant 142 : index
    %283 = vector.load %arg6[%c0_176, %c142] : memref<2x435xf32, #tpu.memory_space<vmem>>, vector<1x256xf32>
    %c29 = arith.constant 29 : index
    %c0_177 = arith.constant 0 : index
    %284 = vector.load %arg4[%c29, %c0_177] : memref<99x256xf32, #tpu.memory_space<vmem>>, vector<1x256xf32>
    %285 = arith.mulf %283, %284 : vector<1x256xf32>
    %286 = arith.addf %282, %285 : vector<1x256xf32>
    %c1_178 = arith.constant 1 : index
    %c142_179 = arith.constant 142 : index
    %287 = vector.load %arg6[%c1_178, %c142_179] : memref<2x435xf32, #tpu.memory_space<vmem>>, vector<1x256xf32>
    %c78_180 = arith.constant 78 : index
    %c0_181 = arith.constant 0 : index
    %288 = vector.load %arg4[%c78_180, %c0_181] : memref<99x256xf32, #tpu.memory_space<vmem>>, vector<1x256xf32>
    %289 = arith.mulf %287, %288 : vector<1x256xf32>
    %290 = arith.addf %286, %289 : vector<1x256xf32>
    %c0_182 = arith.constant 0 : index
    %c143 = arith.constant 143 : index
    %291 = vector.load %arg6[%c0_182, %c143] : memref<2x435xf32, #tpu.memory_space<vmem>>, vector<1x256xf32>
    %c30 = arith.constant 30 : index
    %c0_183 = arith.constant 0 : index
    %292 = vector.load %arg4[%c30, %c0_183] : memref<99x256xf32, #tpu.memory_space<vmem>>, vector<1x256xf32>
    %293 = arith.mulf %291, %292 : vector<1x256xf32>
    %294 = arith.addf %290, %293 : vector<1x256xf32>
    %c1_184 = arith.constant 1 : index
    %c143_185 = arith.constant 143 : index
    %295 = vector.load %arg6[%c1_184, %c143_185] : memref<2x435xf32, #tpu.memory_space<vmem>>, vector<1x256xf32>
    %c79_186 = arith.constant 79 : index
    %c0_187 = arith.constant 0 : index
    %296 = vector.load %arg4[%c79_186, %c0_187] : memref<99x256xf32, #tpu.memory_space<vmem>>, vector<1x256xf32>
    %297 = arith.mulf %295, %296 : vector<1x256xf32>
    %298 = arith.addf %294, %297 : vector<1x256xf32>
    %c0_188 = arith.constant 0 : index
    %c144 = arith.constant 144 : index
    %299 = vector.load %arg6[%c0_188, %c144] : memref<2x435xf32, #tpu.memory_space<vmem>>, vector<1x256xf32>
    %c31 = arith.constant 31 : index
    %c0_189 = arith.constant 0 : index
    %300 = vector.load %arg4[%c31, %c0_189] : memref<99x256xf32, #tpu.memory_space<vmem>>, vector<1x256xf32>
    %301 = arith.mulf %299, %300 : vector<1x256xf32>
    %302 = arith.addf %298, %301 : vector<1x256xf32>
    %c1_190 = arith.constant 1 : index
    %c144_191 = arith.constant 144 : index
    %303 = vector.load %arg6[%c1_190, %c144_191] : memref<2x435xf32, #tpu.memory_space<vmem>>, vector<1x256xf32>
    %c80_192 = arith.constant 80 : index
    %c0_193 = arith.constant 0 : index
    %304 = vector.load %arg4[%c80_192, %c0_193] : memref<99x256xf32, #tpu.memory_space<vmem>>, vector<1x256xf32>
    %305 = arith.mulf %303, %304 : vector<1x256xf32>
    %306 = arith.addf %302, %305 : vector<1x256xf32>
    %c0_194 = arith.constant 0 : index
    %c145 = arith.constant 145 : index
    %307 = vector.load %arg6[%c0_194, %c145] : memref<2x435xf32, #tpu.memory_space<vmem>>, vector<1x256xf32>
    %c32 = arith.constant 32 : index
    %c0_195 = arith.constant 0 : index
    %308 = vector.load %arg4[%c32, %c0_195] : memref<99x256xf32, #tpu.memory_space<vmem>>, vector<1x256xf32>
    %309 = arith.mulf %307, %308 : vector<1x256xf32>
    %310 = arith.addf %306, %309 : vector<1x256xf32>
    %c1_196 = arith.constant 1 : index
    %c145_197 = arith.constant 145 : index
    %311 = vector.load %arg6[%c1_196, %c145_197] : memref<2x435xf32, #tpu.memory_space<vmem>>, vector<1x256xf32>
    %c81_198 = arith.constant 81 : index
    %c0_199 = arith.constant 0 : index
    %312 = vector.load %arg4[%c81_198, %c0_199] : memref<99x256xf32, #tpu.memory_space<vmem>>, vector<1x256xf32>
    %313 = arith.mulf %311, %312 : vector<1x256xf32>
    %314 = arith.addf %310, %313 : vector<1x256xf32>
    %c0_200 = arith.constant 0 : index
    %c146 = arith.constant 146 : index
    %315 = vector.load %arg6[%c0_200, %c146] : memref<2x435xf32, #tpu.memory_space<vmem>>, vector<1x256xf32>
    %c33 = arith.constant 33 : index
    %c0_201 = arith.constant 0 : index
    %316 = vector.load %arg4[%c33, %c0_201] : memref<99x256xf32, #tpu.memory_space<vmem>>, vector<1x256xf32>
    %317 = arith.mulf %315, %316 : vector<1x256xf32>
    %318 = arith.addf %314, %317 : vector<1x256xf32>
    %c1_202 = arith.constant 1 : index
    %c146_203 = arith.constant 146 : index
    %319 = vector.load %arg6[%c1_202, %c146_203] : memref<2x435xf32, #tpu.memory_space<vmem>>, vector<1x256xf32>
    %c82_204 = arith.constant 82 : index
    %c0_205 = arith.constant 0 : index
    %320 = vector.load %arg4[%c82_204, %c0_205] : memref<99x256xf32, #tpu.memory_space<vmem>>, vector<1x256xf32>
    %321 = arith.mulf %319, %320 : vector<1x256xf32>
    %322 = arith.addf %318, %321 : vector<1x256xf32>
    %c0_206 = arith.constant 0 : index
    %c147 = arith.constant 147 : index
    %323 = vector.load %arg6[%c0_206, %c147] : memref<2x435xf32, #tpu.memory_space<vmem>>, vector<1x256xf32>
    %c34 = arith.constant 34 : index
    %c0_207 = arith.constant 0 : index
    %324 = vector.load %arg4[%c34, %c0_207] : memref<99x256xf32, #tpu.memory_space<vmem>>, vector<1x256xf32>
    %325 = arith.mulf %323, %324 : vector<1x256xf32>
    %326 = arith.addf %322, %325 : vector<1x256xf32>
    %c1_208 = arith.constant 1 : index
    %c147_209 = arith.constant 147 : index
    %327 = vector.load %arg6[%c1_208, %c147_209] : memref<2x435xf32, #tpu.memory_space<vmem>>, vector<1x256xf32>
    %c83_210 = arith.constant 83 : index
    %c0_211 = arith.constant 0 : index
    %328 = vector.load %arg4[%c83_210, %c0_211] : memref<99x256xf32, #tpu.memory_space<vmem>>, vector<1x256xf32>
    %329 = arith.mulf %327, %328 : vector<1x256xf32>
    %330 = arith.addf %326, %329 : vector<1x256xf32>
    %c0_212 = arith.constant 0 : index
    %c157 = arith.constant 157 : index
    %331 = vector.load %arg6[%c0_212, %c157] : memref<2x435xf32, #tpu.memory_space<vmem>>, vector<1x256xf32>
    %c35 = arith.constant 35 : index
    %c0_213 = arith.constant 0 : index
    %332 = vector.load %arg4[%c35, %c0_213] : memref<99x256xf32, #tpu.memory_space<vmem>>, vector<1x256xf32>
    %333 = arith.mulf %331, %332 : vector<1x256xf32>
    %334 = arith.addf %330, %333 : vector<1x256xf32>
    %c1_214 = arith.constant 1 : index
    %c157_215 = arith.constant 157 : index
    %335 = vector.load %arg6[%c1_214, %c157_215] : memref<2x435xf32, #tpu.memory_space<vmem>>, vector<1x256xf32>
    %c84 = arith.constant 84 : index
    %c0_216 = arith.constant 0 : index
    %336 = vector.load %arg4[%c84, %c0_216] : memref<99x256xf32, #tpu.memory_space<vmem>>, vector<1x256xf32>
    %337 = arith.mulf %335, %336 : vector<1x256xf32>
    %338 = arith.addf %334, %337 : vector<1x256xf32>
    %c0_217 = arith.constant 0 : index
    %c158 = arith.constant 158 : index
    %339 = vector.load %arg6[%c0_217, %c158] : memref<2x435xf32, #tpu.memory_space<vmem>>, vector<1x256xf32>
    %c36 = arith.constant 36 : index
    %c0_218 = arith.constant 0 : index
    %340 = vector.load %arg4[%c36, %c0_218] : memref<99x256xf32, #tpu.memory_space<vmem>>, vector<1x256xf32>
    %341 = arith.mulf %339, %340 : vector<1x256xf32>
    %342 = arith.addf %338, %341 : vector<1x256xf32>
    %c1_219 = arith.constant 1 : index
    %c158_220 = arith.constant 158 : index
    %343 = vector.load %arg6[%c1_219, %c158_220] : memref<2x435xf32, #tpu.memory_space<vmem>>, vector<1x256xf32>
    %c85 = arith.constant 85 : index
    %c0_221 = arith.constant 0 : index
    %344 = vector.load %arg4[%c85, %c0_221] : memref<99x256xf32, #tpu.memory_space<vmem>>, vector<1x256xf32>
    %345 = arith.mulf %343, %344 : vector<1x256xf32>
    %346 = arith.addf %342, %345 : vector<1x256xf32>
    %c0_222 = arith.constant 0 : index
    %c159 = arith.constant 159 : index
    %347 = vector.load %arg6[%c0_222, %c159] : memref<2x435xf32, #tpu.memory_space<vmem>>, vector<1x256xf32>
    %c37 = arith.constant 37 : index
    %c0_223 = arith.constant 0 : index
    %348 = vector.load %arg4[%c37, %c0_223] : memref<99x256xf32, #tpu.memory_space<vmem>>, vector<1x256xf32>
    %349 = arith.mulf %347, %348 : vector<1x256xf32>
    %350 = arith.addf %346, %349 : vector<1x256xf32>
    %c1_224 = arith.constant 1 : index
    %c159_225 = arith.constant 159 : index
    %351 = vector.load %arg6[%c1_224, %c159_225] : memref<2x435xf32, #tpu.memory_space<vmem>>, vector<1x256xf32>
    %c86 = arith.constant 86 : index
    %c0_226 = arith.constant 0 : index
    %352 = vector.load %arg4[%c86, %c0_226] : memref<99x256xf32, #tpu.memory_space<vmem>>, vector<1x256xf32>
    %353 = arith.mulf %351, %352 : vector<1x256xf32>
    %354 = arith.addf %350, %353 : vector<1x256xf32>
    %c0_227 = arith.constant 0 : index
    %c160 = arith.constant 160 : index
    %355 = vector.load %arg6[%c0_227, %c160] : memref<2x435xf32, #tpu.memory_space<vmem>>, vector<1x256xf32>
    %c38 = arith.constant 38 : index
    %c0_228 = arith.constant 0 : index
    %356 = vector.load %arg4[%c38, %c0_228] : memref<99x256xf32, #tpu.memory_space<vmem>>, vector<1x256xf32>
    %357 = arith.mulf %355, %356 : vector<1x256xf32>
    %358 = arith.addf %354, %357 : vector<1x256xf32>
    %c1_229 = arith.constant 1 : index
    %c160_230 = arith.constant 160 : index
    %359 = vector.load %arg6[%c1_229, %c160_230] : memref<2x435xf32, #tpu.memory_space<vmem>>, vector<1x256xf32>
    %c87 = arith.constant 87 : index
    %c0_231 = arith.constant 0 : index
    %360 = vector.load %arg4[%c87, %c0_231] : memref<99x256xf32, #tpu.memory_space<vmem>>, vector<1x256xf32>
    %361 = arith.mulf %359, %360 : vector<1x256xf32>
    %362 = arith.addf %358, %361 : vector<1x256xf32>
    %c0_232 = arith.constant 0 : index
    %c161 = arith.constant 161 : index
    %363 = vector.load %arg6[%c0_232, %c161] : memref<2x435xf32, #tpu.memory_space<vmem>>, vector<1x256xf32>
    %c39 = arith.constant 39 : index
    %c0_233 = arith.constant 0 : index
    %364 = vector.load %arg4[%c39, %c0_233] : memref<99x256xf32, #tpu.memory_space<vmem>>, vector<1x256xf32>
    %365 = arith.mulf %363, %364 : vector<1x256xf32>
    %366 = arith.addf %362, %365 : vector<1x256xf32>
    %c1_234 = arith.constant 1 : index
    %c161_235 = arith.constant 161 : index
    %367 = vector.load %arg6[%c1_234, %c161_235] : memref<2x435xf32, #tpu.memory_space<vmem>>, vector<1x256xf32>
    %c88 = arith.constant 88 : index
    %c0_236 = arith.constant 0 : index
    %368 = vector.load %arg4[%c88, %c0_236] : memref<99x256xf32, #tpu.memory_space<vmem>>, vector<1x256xf32>
    %369 = arith.mulf %367, %368 : vector<1x256xf32>
    %370 = arith.addf %366, %369 : vector<1x256xf32>
    %c0_237 = arith.constant 0 : index
    %c162 = arith.constant 162 : index
    %371 = vector.load %arg6[%c0_237, %c162] : memref<2x435xf32, #tpu.memory_space<vmem>>, vector<1x256xf32>
    %c40 = arith.constant 40 : index
    %c0_238 = arith.constant 0 : index
    %372 = vector.load %arg4[%c40, %c0_238] : memref<99x256xf32, #tpu.memory_space<vmem>>, vector<1x256xf32>
    %373 = arith.mulf %371, %372 : vector<1x256xf32>
    %374 = arith.addf %370, %373 : vector<1x256xf32>
    %c1_239 = arith.constant 1 : index
    %c162_240 = arith.constant 162 : index
    %375 = vector.load %arg6[%c1_239, %c162_240] : memref<2x435xf32, #tpu.memory_space<vmem>>, vector<1x256xf32>
    %c89 = arith.constant 89 : index
    %c0_241 = arith.constant 0 : index
    %376 = vector.load %arg4[%c89, %c0_241] : memref<99x256xf32, #tpu.memory_space<vmem>>, vector<1x256xf32>
    %377 = arith.mulf %375, %376 : vector<1x256xf32>
    %378 = arith.addf %374, %377 : vector<1x256xf32>
    %c0_242 = arith.constant 0 : index
    %c163 = arith.constant 163 : index
    %379 = vector.load %arg6[%c0_242, %c163] : memref<2x435xf32, #tpu.memory_space<vmem>>, vector<1x256xf32>
    %c41 = arith.constant 41 : index
    %c0_243 = arith.constant 0 : index
    %380 = vector.load %arg4[%c41, %c0_243] : memref<99x256xf32, #tpu.memory_space<vmem>>, vector<1x256xf32>
    %381 = arith.mulf %379, %380 : vector<1x256xf32>
    %382 = arith.addf %378, %381 : vector<1x256xf32>
    %c1_244 = arith.constant 1 : index
    %c163_245 = arith.constant 163 : index
    %383 = vector.load %arg6[%c1_244, %c163_245] : memref<2x435xf32, #tpu.memory_space<vmem>>, vector<1x256xf32>
    %c90 = arith.constant 90 : index
    %c0_246 = arith.constant 0 : index
    %384 = vector.load %arg4[%c90, %c0_246] : memref<99x256xf32, #tpu.memory_space<vmem>>, vector<1x256xf32>
    %385 = arith.mulf %383, %384 : vector<1x256xf32>
    %386 = arith.addf %382, %385 : vector<1x256xf32>
    %c0_247 = arith.constant 0 : index
    %c173 = arith.constant 173 : index
    %387 = vector.load %arg6[%c0_247, %c173] : memref<2x435xf32, #tpu.memory_space<vmem>>, vector<1x256xf32>
    %c42 = arith.constant 42 : index
    %c0_248 = arith.constant 0 : index
    %388 = vector.load %arg4[%c42, %c0_248] : memref<99x256xf32, #tpu.memory_space<vmem>>, vector<1x256xf32>
    %389 = arith.mulf %387, %388 : vector<1x256xf32>
    %390 = arith.addf %386, %389 : vector<1x256xf32>
    %c1_249 = arith.constant 1 : index
    %c173_250 = arith.constant 173 : index
    %391 = vector.load %arg6[%c1_249, %c173_250] : memref<2x435xf32, #tpu.memory_space<vmem>>, vector<1x256xf32>
    %c91 = arith.constant 91 : index
    %c0_251 = arith.constant 0 : index
    %392 = vector.load %arg4[%c91, %c0_251] : memref<99x256xf32, #tpu.memory_space<vmem>>, vector<1x256xf32>
    %393 = arith.mulf %391, %392 : vector<1x256xf32>
    %394 = arith.addf %390, %393 : vector<1x256xf32>
    %c0_252 = arith.constant 0 : index
    %c174 = arith.constant 174 : index
    %395 = vector.load %arg6[%c0_252, %c174] : memref<2x435xf32, #tpu.memory_space<vmem>>, vector<1x256xf32>
    %c43 = arith.constant 43 : index
    %c0_253 = arith.constant 0 : index
    %396 = vector.load %arg4[%c43, %c0_253] : memref<99x256xf32, #tpu.memory_space<vmem>>, vector<1x256xf32>
    %397 = arith.mulf %395, %396 : vector<1x256xf32>
    %398 = arith.addf %394, %397 : vector<1x256xf32>
    %c1_254 = arith.constant 1 : index
    %c174_255 = arith.constant 174 : index
    %399 = vector.load %arg6[%c1_254, %c174_255] : memref<2x435xf32, #tpu.memory_space<vmem>>, vector<1x256xf32>
    %c92 = arith.constant 92 : index
    %c0_256 = arith.constant 0 : index
    %400 = vector.load %arg4[%c92, %c0_256] : memref<99x256xf32, #tpu.memory_space<vmem>>, vector<1x256xf32>
    %401 = arith.mulf %399, %400 : vector<1x256xf32>
    %402 = arith.addf %398, %401 : vector<1x256xf32>
    %c0_257 = arith.constant 0 : index
    %c175 = arith.constant 175 : index
    %403 = vector.load %arg6[%c0_257, %c175] : memref<2x435xf32, #tpu.memory_space<vmem>>, vector<1x256xf32>
    %c44 = arith.constant 44 : index
    %c0_258 = arith.constant 0 : index
    %404 = vector.load %arg4[%c44, %c0_258] : memref<99x256xf32, #tpu.memory_space<vmem>>, vector<1x256xf32>
    %405 = arith.mulf %403, %404 : vector<1x256xf32>
    %406 = arith.addf %402, %405 : vector<1x256xf32>
    %c1_259 = arith.constant 1 : index
    %c175_260 = arith.constant 175 : index
    %407 = vector.load %arg6[%c1_259, %c175_260] : memref<2x435xf32, #tpu.memory_space<vmem>>, vector<1x256xf32>
    %c93_261 = arith.constant 93 : index
    %c0_262 = arith.constant 0 : index
    %408 = vector.load %arg4[%c93_261, %c0_262] : memref<99x256xf32, #tpu.memory_space<vmem>>, vector<1x256xf32>
    %409 = arith.mulf %407, %408 : vector<1x256xf32>
    %410 = arith.addf %406, %409 : vector<1x256xf32>
    %c0_263 = arith.constant 0 : index
    %c176 = arith.constant 176 : index
    %411 = vector.load %arg6[%c0_263, %c176] : memref<2x435xf32, #tpu.memory_space<vmem>>, vector<1x256xf32>
    %c45 = arith.constant 45 : index
    %c0_264 = arith.constant 0 : index
    %412 = vector.load %arg4[%c45, %c0_264] : memref<99x256xf32, #tpu.memory_space<vmem>>, vector<1x256xf32>
    %413 = arith.mulf %411, %412 : vector<1x256xf32>
    %414 = arith.addf %410, %413 : vector<1x256xf32>
    %c1_265 = arith.constant 1 : index
    %c176_266 = arith.constant 176 : index
    %415 = vector.load %arg6[%c1_265, %c176_266] : memref<2x435xf32, #tpu.memory_space<vmem>>, vector<1x256xf32>
    %c94_267 = arith.constant 94 : index
    %c0_268 = arith.constant 0 : index
    %416 = vector.load %arg4[%c94_267, %c0_268] : memref<99x256xf32, #tpu.memory_space<vmem>>, vector<1x256xf32>
    %417 = arith.mulf %415, %416 : vector<1x256xf32>
    %418 = arith.addf %414, %417 : vector<1x256xf32>
    %c0_269 = arith.constant 0 : index
    %c177 = arith.constant 177 : index
    %419 = vector.load %arg6[%c0_269, %c177] : memref<2x435xf32, #tpu.memory_space<vmem>>, vector<1x256xf32>
    %c46 = arith.constant 46 : index
    %c0_270 = arith.constant 0 : index
    %420 = vector.load %arg4[%c46, %c0_270] : memref<99x256xf32, #tpu.memory_space<vmem>>, vector<1x256xf32>
    %421 = arith.mulf %419, %420 : vector<1x256xf32>
    %422 = arith.addf %418, %421 : vector<1x256xf32>
    %c1_271 = arith.constant 1 : index
    %c177_272 = arith.constant 177 : index
    %423 = vector.load %arg6[%c1_271, %c177_272] : memref<2x435xf32, #tpu.memory_space<vmem>>, vector<1x256xf32>
    %c95_273 = arith.constant 95 : index
    %c0_274 = arith.constant 0 : index
    %424 = vector.load %arg4[%c95_273, %c0_274] : memref<99x256xf32, #tpu.memory_space<vmem>>, vector<1x256xf32>
    %425 = arith.mulf %423, %424 : vector<1x256xf32>
    %426 = arith.addf %422, %425 : vector<1x256xf32>
    %c0_275 = arith.constant 0 : index
    %c178 = arith.constant 178 : index
    %427 = vector.load %arg6[%c0_275, %c178] : memref<2x435xf32, #tpu.memory_space<vmem>>, vector<1x256xf32>
    %c47 = arith.constant 47 : index
    %c0_276 = arith.constant 0 : index
    %428 = vector.load %arg4[%c47, %c0_276] : memref<99x256xf32, #tpu.memory_space<vmem>>, vector<1x256xf32>
    %429 = arith.mulf %427, %428 : vector<1x256xf32>
    %430 = arith.addf %426, %429 : vector<1x256xf32>
    %c1_277 = arith.constant 1 : index
    %c178_278 = arith.constant 178 : index
    %431 = vector.load %arg6[%c1_277, %c178_278] : memref<2x435xf32, #tpu.memory_space<vmem>>, vector<1x256xf32>
    %c96_279 = arith.constant 96 : index
    %c0_280 = arith.constant 0 : index
    %432 = vector.load %arg4[%c96_279, %c0_280] : memref<99x256xf32, #tpu.memory_space<vmem>>, vector<1x256xf32>
    %433 = arith.mulf %431, %432 : vector<1x256xf32>
    %434 = arith.addf %430, %433 : vector<1x256xf32>
    %c0_281 = arith.constant 0 : index
    %c179 = arith.constant 179 : index
    %435 = vector.load %arg6[%c0_281, %c179] : memref<2x435xf32, #tpu.memory_space<vmem>>, vector<1x256xf32>
    %c48 = arith.constant 48 : index
    %c0_282 = arith.constant 0 : index
    %436 = vector.load %arg4[%c48, %c0_282] : memref<99x256xf32, #tpu.memory_space<vmem>>, vector<1x256xf32>
    %437 = arith.mulf %435, %436 : vector<1x256xf32>
    %438 = arith.addf %434, %437 : vector<1x256xf32>
    %c1_283 = arith.constant 1 : index
    %c179_284 = arith.constant 179 : index
    %439 = vector.load %arg6[%c1_283, %c179_284] : memref<2x435xf32, #tpu.memory_space<vmem>>, vector<1x256xf32>
    %c97_285 = arith.constant 97 : index
    %c0_286 = arith.constant 0 : index
    %440 = vector.load %arg4[%c97_285, %c0_286] : memref<99x256xf32, #tpu.memory_space<vmem>>, vector<1x256xf32>
    %441 = arith.mulf %439, %440 : vector<1x256xf32>
    %442 = arith.addf %438, %441 : vector<1x256xf32>
    %cst_287 = arith.constant 0.000000e+00 : f32
    %443 = vector.broadcast %cst_287 : f32 to vector<1x256xf32>
    %444 = arith.subf %443, %442 : vector<1x256xf32>
    %445 = math.exp %444 : vector<1x256xf32>
    %cst_288 = arith.constant 1.000000e+00 : f32
    %446 = vector.broadcast %cst_288 : f32 to vector<1x256xf32>
    %447 = arith.addf %446, %445 : vector<1x256xf32>
    %cst_289 = arith.constant 1.000000e+00 : f32
    %448 = vector.broadcast %cst_289 : f32 to vector<1x256xf32>
    %449 = arith.divf %448, %447 : vector<1x256xf32>
    %450 = vector.broadcast %449 : vector<1x256xf32> to vector<32x256xf32>
    %451 = arith.mulf %39, %450 : vector<32x256xf32>
    %c0_290 = arith.constant 0 : index
    %c0_291 = arith.constant 0 : index
    %c0_292 = arith.constant 0 : index
    %452 = vector.load %arg5[%c0_290, %c0_291, %c0_292] : memref<1x32x256xf32, #tpu.memory_space<vmem>>, vector<1x32x256xf32>
    %453 = vector.shape_cast %452 : vector<1x32x256xf32> to vector<32x256xf32>
    %454 = vector.shape_cast %451 : vector<32x256xf32> to vector<1x32x256xf32>
    tpu.vector_store %arg5[%c0_290, %c0_291, %c0_292], %454 {strides = array<i32>} : memref<1x32x256xf32, #tpu.memory_space<vmem>>, vector<1x32x256xf32>,
    return
  }
  func.func @transform_0(%arg0: i32) -> (i32, i32, i32) {
    %c0_i32 = arith.constant 0 : i32
    %c0_i32_0 = arith.constant 0 : i32
    %c0_i32_1 = arith.constant 0 : i32
    return %arg0, %c0_i32, %c0_i32_0 : i32, i32, i32
  }
  func.func @transform_1(%arg0: i32) -> (i32, i32) {
    %c0_i32 = arith.constant 0 : i32
    %c0_i32_0 = arith.constant 0 : i32
    %c0_i32_1 = arith.constant 0 : i32
    return %c0_i32, %c0_i32_0 : i32, i32
  }
  func.func @transform_2(%arg0: i32) -> (i32, i32) {
    %c0_i32 = arith.constant 0 : i32
    %c0_i32_0 = arith.constant 0 : i32
    %c0_i32_1 = arith.constant 0 : i32
    return %c0_i32, %c0_i32_0 : i32, i32
  }
  func.func @transform_3(%arg0: i32) -> (i32, i32) {
    %c0_i32 = arith.constant 0 : i32
    %c0_i32_0 = arith.constant 0 : i32
    %c0_i32_1 = arith.constant 0 : i32
    return %c0_i32, %c0_i32_0 : i32, i32
  }
  func.func @transform_4(%arg0: i32) -> (i32, i32, i32) {
    %c0_i32 = arith.constant 0 : i32
    %c0_i32_0 = arith.constant 0 : i32
    %c0_i32_1 = arith.constant 0 : i32
    return %arg0, %c0_i32, %c0_i32_0 : i32, i32, i32
  }
}

</mosaic_0001>

<bundles_post_ra>
// kernel: tpu_custom_call.1
= control target key start
LH: loop header
LB: loop body
LE: loop exit
PB: predicated region body
PF: predicated region fallthrough
CT: control target
= control target key end

     0   :  { %9 = vsyncpa [#allocation4], 0  ;;  %s3762_s0 = inlined_call_operand.hbm [shape: f32[2,32,256], index: 0, kind: input, shape index: {}]   ;;  %s3763_s1 = inlined_call_operand.vmem [shape: f32[32,2], index: 1, kind: input, shape index: {}]   ;;  %s3764_s2 = inlined_call_operand.vmem [shape: f32[32,2], index: 2, kind: input, shape index: {}]   ;;  %s3765_s3 = inlined_call_operand.hbm [shape: f32[99,256], index: 3, kind: input, shape index: {}]   ;;  %s3766_s4 = inlined_call_operand.hbm [shape: f32[2,32,256], index: 4, kind: output, shape index: {}]  }
   0x1   :  { %11 = vsyncpa [#allocation4 + $0x1], 0 }
   0x2   :  { %12 = vsyncpa [#allocation7], 0 }
   0x3   :  { %13 = vsyncpa [#allocation5], 0 }
   0x4   :  { %15 = vsyncpa [#allocation5 + $0x1], 0  ;;  %s2555_s15 = smov 0   ;;  %s2557_s16 = smov 0  }
   0x5   :  { %s2559_s17 = smov 0   ;;  %s2561_s18 = smov 0  }
   0x6 LB: > { %s2576_s19 = sadd.s32 4294967295, %s2472_s18   ;;  %s2201_s20 = sadd.s32 4294967294, %s2472_s18   ;;  %s2472_s18 = sphi %s2561_s18, %s4052_s18   ;;  %s2468_s17 = sphi %s2559_s17, %s4051_s17   ;;  %s2464_s16 = sphi %s2557_s16, %s4050_s16   ;;  %s2460_s15 = sphi %s2555_s15, %s4049_s15  }
   0x7   : > { %p41_p0 = scmp.ne.s32.totalorder %s2464_s16, %s2460_s15  ;;  %p3767_p1 = scmp.eq.s32.totalorder %s2576_s19, 0 }
   0x8   : > { %p134_p3 = scmp.eq.s32.totalorder %s2201_s20, 1  ;;  %p2202_p5 = scmp.ge.s32.totalorder %s2472_s18, 1 }
   0x9   : > { %p2585_p4 = por %p3767_p1, %p41_p0  ;;  %p141_p7 = scmp.lt.s32.totalorder %s2472_s18, 3 }
   0xa   : > { %p2590_p6 = por %p134_p3, %p41_p0  ;;  %s2474_s24 = smov [#allocation6]  }
   0xb   : > { %s3899_s21 = scalar_select %p2585_p4, 1, 0 }
   0xc   : > { %s3900_s22 = scalar_select %p2590_p6, 1, 0 }
   0xd   : > { %p2595_p8 = pnand %p2202_p5, %p141_p7  ;;  %s159_s25 = sshll.u32 %s2474_s24, 4  ;;  %s160_s25 = int_to_ptr.vmem [resolvable:$true] %s159_s25 }
   0xe   : > { %s2609_s27 = sadd.s32 1, %s2472_s18   ;;  %s28_s28 = sadd.s32 1, %s2468_s17 }
   0xf   : > { %s3901_s23 = scalar_select %p2595_p8, 1, 0 }
  0x10   : > { %p2227_p9 = pneg %p2595_p8  ;;  %s25_s29 = ssub.s32 %s2472_s18, %s2609_s27 }
  0x11   : > { %s2361_s30 = scalar_lea.vmem %s160_s25, 3328  ;;  %p2369_p5 = scmp.lt.s32.totalorder %s160_s25, %s160_s25 }
  0x12   : > { %p2604_p11 = pnand %p2227_p9, %p3767_p1  ;;  %p2362_p13 = scmp.ne.s32.totalorder %s160_s25, %s2361_s30 }
  0x13   : > { %p2370_p7 = scmp.lt.s32.totalorder %s2361_s30, %s2361_s30 }
  0x14   : > { %p2352_p12 = pneg %p2604_p11 }
  0x15   : > { %p2371_p10 = por %p2370_p7, %p2369_p5 }
  0x16   : > { %p2364_p0 = pnand %p2362_p13, %p2352_p12 }
  0x18   : > { %p2365_p3 = pneg %p2364_p0 }
  0x1a   : > { %p2372_p2 = pnand %p2371_p10, %p2365_p3 }
  0x1c   : > { %2375 = shalt.err (!%p2372_p2)
}
  0x1d   : > { %s2475_s5 = smov 256   ;;  %s2476_s6 = smov 16  }
  0x1e   : > { %2230 = dma.hbm_to_vmem [thread:$0]  (!%p2604_p11), %s3765_s3, 3328, %s160_s25, [#allocation7], %s2475_s5, %s2475_s5, %s2476_s6  }
  0x1f   : > { %p26_p2 = scmp.eq.s32.totalorder %s25_s29, 0  ;;  %p35_p9 = scmp.ne.s32.totalorder %s2468_s17, %s2464_s16 }
  0x20   : > { %p36_p10 = scmp.eq.s32.totalorder %s2472_s18, 0  ;;  %p2240_p12 = scmp.lt.s32.totalorder %s2472_s18, 2 }
  0x21   : > { %s2629_s9 = scalar_select %p26_p2, %s2468_s17, %s28_s28  }
  0x22   : > { %p37_p13 = por %p36_p10, %p35_p9  ;;  %p3903_p0 = scmp.eq.s32.totalorder %s2576_s19, 1 }
  0x23   : > { %s173_s11 = sand.u32 1, %s2468_s17   ;;  %s2217_s12 = sshll.u32 %s2472_s18, 10 }
  0x24   : > { %p2633_p3 = por %p3903_p0, %p35_p9  ;;  %s2205_s13 = sshll.u32 %s173_s11, 6 }
  0x25   : > { %s2642_s24 = scalar_lea.hbm %s3762_s0, %s2217_s12  ;;  %s177_s25 = scalar_lea.vmem [#allocation3], %s2205_s13 }
  0x26   : > { %s3904_s10 = scalar_select %p2633_p3, 1, 0 }
  0x27   : > { %s184_s26 = sshll.u32 %s177_s25, 4  ;;  %p2644_p11 = pnand %p2240_p12, %p37_p13  ;;  %s2648_s26 = int_to_ptr.vmem [resolvable:$true] %s184_s26 }
  0x28   : > { %s2650_s29 = scalar_lea.sflag [#allocation4], %s173_s11  ;;  %s2376_s30 = scalar_lea.hbm %s2642_s24, 1024 }
  0x29   : > { %p2377_p5 = scmp.ne.s32.totalorder %s2642_s24, %s2376_s30  ;;  %p2378_p7 = pneg %p2644_p11 }
  0x2a   : > { %s2381_s12 = scalar_lea.hbm %s3762_s0, 2048  ;;  %p2382_p10 = scmp.lt.s32.totalorder %s2642_s24, %s3762_s0 }
  0x2b   : > { %p2379_p2 = pnand %p2378_p7, %p2377_p5  ;;  %p2383_p12 = scmp.lt.s32.totalorder %s2381_s12, %s2376_s30 }
  0x2d   : > { %p2380_p9 = pneg %p2379_p2  ;;  %p2384_p13 = por %p2383_p12, %p2382_p10 }
  0x2f   : > { %p2385_p0 = pnand %p2384_p13, %p2380_p9 }
  0x31   : > { %2388 = shalt.err (!%p2385_p0)
}
  0x32   : > { %s2389_s11 = scalar_lea.vmem %s2648_s26, 1024  ;;  %s2477_s20 = smov [#allocation3]  }
  0x33   : > { %p2390_p1 = scmp.ne.s32.totalorder %s2648_s26, %s2389_s11  ;;  %s2394_s25 = sshll.u32 %s2477_s20, 4  ;;  %s2395_s25 = int_to_ptr.vmem [resolvable:$false] %s2394_s25 }
  0x34   : > { %s2396_s7 = scalar_lea.vmem %s2395_s25, 2048  ;;  %p2397_p2 = scmp.lt.s32.totalorder %s2648_s26, %s2395_s25 }
  0x35   : > { %p2392_p6 = pnand %p2390_p1, %p2378_p7  ;;  %p2398_p3 = scmp.lt.s32.totalorder %s2396_s7, %s2389_s11 }
  0x37   : > { %p2393_p5 = pneg %p2392_p6  ;;  %p2399_p4 = por %p2398_p3, %p2397_p2 }
  0x39   : > { %p2400_p8 = pnand %p2399_p4, %p2393_p5 }
  0x3b   : > { %2403 = shalt.err (!%p2400_p8)
}
  0x3c   : > { %2234 = dma.hbm_to_vmem [thread:$0]  (!%p2644_p11), %s2642_s24, 1024, %s2648_s26, %s2650_s29, %s2475_s5, %s2475_s5, %s2476_s6  }
  0x3d   : > { %p3906_p1 = scmp.ne.s32.totalorder %s3901_s23, 0 }
  0x3f   : > { %196 = sbr.rel (%p3906_p1) target bundleno = 929 (0x3a1), region = 36 }
  0x44   : > { %s2677_s30 = sand.u32 1, %s2464_s16   ;;  %p3907_p4 = scmp.ne.s32.totalorder %s3899_s21, 0 }
  0x45   : > { %s3771_s8 = sshll.u32 %s2677_s30, 6  ;;  %s199_s12 = scalar_lea.sflag [#allocation4], %s2677_s30 }
  0x46   : > { %s202_s28 = scalar_lea.vmem [#allocation3], %s3771_s8 }
  0x47   : > { %2447 = dma.done.wait (%p3907_p4), %s199_s12, 1024  }
  0x48   : > { %2449 = vsyncadd (%p3907_p4), %s199_s12, 4294966272  ;;  %p3908_p6 = scmp.eq.s32.totalorder %s2576_s19, 0 }
  0x4a   : > { %2451 = dma.done.wait (%p3908_p6), [#allocation7], 3328   ;;  %p3909_p8 = pmov %p3908_p6 }
  0x4b   : > { %v2691_v0 = vld [vmem:[%s202_s28 + $0x20] sm:$0xff]  ;;  %v2693_v1 = vld [vmem:[%s202_s28 + $0x28] sm:$0xff]  ;;  %v2701_v5 = vld [vmem:[%s202_s28 + $0x10] sm:$0xff]  ;;  %s3772_s21 = smov 77   ;;  %s3786_s23 = smov 93   ;;  %vm3866_vm0 = vcmask 15360  }
  0x4c   : > { %2453 = vsyncadd (%p3909_p8), [#allocation7], 4294963968  ;;  %v2695_v2 = vld [vmem:[%s202_s28] sm:$0xff]  ;;  %v245_v3 = vadd.f32 %v2693_v1, %v2691_v0  ;;  %v2699_v4 = vld [vmem:[%s202_s28 + $0x8] sm:$0xff]  ;;  %v262_v15 = vmax.f32 %v2691_v0, %v2693_v1  ;;  %s3788_s5 = smov 94   ;;  %s3774_s6 = smov 78  }
  0x4d   : > { %v2703_v6 = vld [vmem:[%s202_s28 + $0x18] sm:$0xff]  ;;  %v239_v7 = vadd.f32 %v2699_v4, %v2695_v2  ;;  %v256_v8 = vmax.f32 %v2695_v2, %v2699_v4  ;;  %v2711_v10 = vld [vmem:[%s202_s28 + $0x30] sm:$0xff]  ;;  %v495_v16 = vld [vmem:[#allocation6 + $0x61] ss:$8 sm:$0x3]  ;;  %s3790_s24 = smov 95  }
  0x4e   : > { %246 = vadd.xlane.f32.xlu1 %v245_v3  ;;  %v242_v9 = vadd.f32 %v2703_v6, %v2701_v5  ;;  %v2713_v11 = vld [vmem:[%s202_s28 + $0x38] sm:$0xff]  ;;  %v259_v13 = vmax.f32 %v2701_v5, %v2703_v6  ;;  %v715_v17 = vld [vmem:[#allocation6 + $0x7] ss:$8 sm:$0x3]  ;;  %s3792_s26 = smov 96   ;;  %s3776_s29 = smov 79  }
  0x4f   : > { %240 = vadd.xlane.f32.xlu0 %v239_v7  ;;  %v248_v12 = vadd.f32 %v2713_v11, %v2711_v10  ;;  %v265_v14 = vmax.f32 %v2711_v10, %v2713_v11  ;;  %v475_v18 = vld [vmem:[#allocation6] ss:$8 sm:$0x3]  ;;  %v749_v19 = vld [vmem:[#allocation6 + $0x10] ss:$8 sm:$0x3] }
  0x50   : > { %v511_v20 = vld [vmem:[#allocation6 + $0x1] ss:$8 sm:$0x3]  ;;  %v783_v21 = vld [vmem:[#allocation6 + $0x11] ss:$8 sm:$0x3] }
  0x51   : > { %v529_v22 = vld [vmem:[#allocation6 + $0x62] ss:$8 sm:$0x3]  ;;  %v817_v23 = vld [vmem:[#allocation6 + $0x12] ss:$8 sm:$0x3] }
  0x52   : > { %257 = vmax.xlane.f32.xlu1 %v256_v8  ;;  %v545_v24 = vld [vmem:[#allocation6 + $0x2] ss:$8 sm:$0x3]  ;;  %v851_v25 = vld [vmem:[#allocation6 + $0x13] ss:$8 sm:$0x3] }
  0x53   : > { %243 = vadd.xlane.f32.xlu0 %v242_v9  ;;  %v563_v26 = vld [vmem:[#allocation6 + $0x63] ss:$8 sm:$0x3]  ;;  %s3794_s13 = smov 97   ;;  %s3796_s14 = smov 98   ;;  %v268_v44 = vld [vmem:[%s3763_s1] sm:$0xff] }
  0x54   : > { %v885_v27 = vld [vmem:[#allocation6 + $0x14] ss:$8 sm:$0x3]  ;;  %v579_v28 = vld [vmem:[#allocation6 + $0x3] ss:$8 sm:$0x3] }
  0x55   : > { %s3778_s11 = smov 80   ;;  %v597_v29 = vld [vmem:[#allocation6 + $0x64] ss:$8 sm:$0x3]  ;;  %s3780_s20 = smov 81   ;;  %v271_v55 = vld [vmem:[%s3763_s1 + $0x18] sm:$0xff] }
  0x56   : > { %249 = vadd.xlane.f32.xlu1 %v248_v12  ;;  %v613_v30 = vld [vmem:[#allocation6 + $0x4] ss:$8 sm:$0x3]  ;;  %v631_v31 = vld [vmem:[#allocation6 + $0x65] ss:$8 sm:$0x3] }
  0x57   : > { %260 = vmax.xlane.f32.xlu0 %v259_v13  ;;  %v647_v32 = vld [vmem:[#allocation6 + $0x5] ss:$8 sm:$0x3]  ;;  %s3782_s25 = smov 82   ;;  %s3784_s7 = smov 83   ;;  %vm420_vm1 = vcmask 1041408  }
  0x58   : > { %v665_v33 = vld [vmem:[#allocation6 + $0x66] ss:$8 sm:$0x3]  ;;  %v699_v35 = vld [vmem:[#allocation6 + $0x67] ss:$8 sm:$0x3] }
  0x59   : > { %v681_v34 = vld [vmem:[#allocation6 + $0x6] ss:$8 sm:$0x3]  ;;  %v733_v36 = vld [vmem:[#allocation6 + $0x70] ss:$8 sm:$0x3] }
  0x5a   : > { %266 = vmax.xlane.f32.xlu1 %v265_v14  ;;  %v767_v37 = vld [vmem:[#allocation6 + $0x71] ss:$8 sm:$0x3]  ;;  %v801_v38 = vld [vmem:[#allocation6 + $0x72] ss:$8 sm:$0x3] }
  0x5b   : > { %263 = vmax.xlane.f32.xlu0 %v262_v15  ;;  %v835_v39 = vld [vmem:[#allocation6 + $0x73] ss:$8 sm:$0x3]  ;;  %v869_v40 = vld [vmem:[#allocation6 + $0x74] ss:$8 sm:$0x3] }
  0x5c   : > { %v269_v48 = vld [vmem:[%s3763_s1 + $0x8] sm:$0xff]  ;;  %v270_v49 = vld [vmem:[%s3763_s1 + $0x10] sm:$0xff]  ;;  %s3806_s28 = smov 112   ;;  %s3816_s12 = smov 113   ;;  %vm421_vm2 = vcmask 1043458   ;;  %vm423_vm3 = vcmask 1045508  }
  0x5d   : > { %s3818_s8 = smov 114   ;;  %vm425_vm4 = vcmask 416774   ;;  %vm422_vm5 = vmor %vm421_vm2, %vm420_vm1  ;;  %vm3845_vm9 = vcmask 629760   ;;  %vm3852_vm10 = vcmask 678912   ;;  %vm3882_vm11 = vcmask 760832   ;;  %p4046_p11 = scmp.ne.s32.totalorder %s3904_s10, 0 }
  0x5e   : > { %vm424_vm6 = vmor %vm423_vm3, %vm422_vm5  ;;  %vm3847_vm12 = vcmask 637952   ;;  %vm3884_vm13 = vcmask 777216   ;;  %vm3848_vm14 = vcmask 646144   ;;  %vm3885_vm15 = vcmask 785408  }
  0x5f   : > { %vm426_vm7 = vmor %vm425_vm4, %vm424_vm6  ;;  %vm3849_vm1 = vcmask 654336   ;;  %vm3886_vm2 = vcmask 793600   ;;  %vm3850_vm3 = vcmask 662528   ;;  %vm3887_vm4 = vcmask 801792  }
  0x60   : > { %vm3851_vm5 = vcmask 670720   ;;  %vm3844_vm6 = vcmask 809984  }
  0x6b   : > { %497 = vrot.lane.b32.xlu1 %v495_v16, %s3772_s21 }
  0x6f   : > { %717 = vrot.lane.b32.xlu1 %v715_v17, %s3786_s23 }
  0x71   : > { %477 = vrot.lane.b32.xlu0 %v475_v18, %s3772_s21  ;;  %s3798_s21 = smov 99  }
  0x73   : > { %751 = vrot.lane.b32.xlu1 %v749_v19, %s3788_s5 }
  0x75   : > { %513 = vrot.lane.b32.xlu0 %v511_v20, %s3774_s6 }
  0x77   : > { %785 = vrot.lane.b32.xlu1 %v783_v21, %s3790_s24 }
  0x79   : > { %531 = vrot.lane.b32.xlu0 %v529_v22, %s3774_s6  ;;  %s3800_s6 = smov 109  }
  0x7b   : > { %819 = vrot.lane.b32.xlu1 %v817_v23, %s3792_s26 }
  0x7d   : > { %547 = vrot.lane.b32.xlu0 %v545_v24, %s3776_s29 }
  0x7f   : > { %853 = vrot.lane.b32.xlu1 %v851_v25, %s3794_s13 }
  0x81   : > { %565 = vrot.lane.b32.xlu0 %v563_v26, %s3776_s29  ;;  %s3804_s29 = smov 110  }
  0x83   : > { %887 = vrot.lane.b32.xlu1 %v885_v27, %s3796_s14 }
  0x85   : > { %581 = vrot.lane.b32.xlu0 %v579_v28, %s3778_s11 }
  0x89   : > { %599 = vrot.lane.b32.xlu0 %v597_v29, %s3778_s11  ;;  %s3802_s11 = smov 111  }
  0x8d   : > { %615 = vrot.lane.b32.xlu0 %v613_v30, %s3780_s20 }
  0x91   : > { %633 = vrot.lane.b32.xlu0 %v631_v31, %s3780_s20  ;;  %s3820_s20 = smov 115  }
  0x95   : > { %649 = vrot.lane.b32.xlu0 %v647_v32, %s3782_s25 }
  0x99   : > { %667 = vrot.lane.b32.xlu0 %v665_v33, %s3782_s25  ;;  %s3822_s25 = smov 125  }
  0x9d   : > { %683 = vrot.lane.b32.xlu0 %v681_v34, %s3784_s7 }
  0xa1   : > { %701 = vrot.lane.b32.xlu0 %v699_v35, %s3784_s7  ;;  %s3826_s7 = smov 126  }
  0xa5   : > { %735 = vrot.lane.b32.xlu0 %v733_v36, %s3786_s23  ;;  %s3830_s23 = smov 127  }
  0xa9   : > { %769 = vrot.lane.b32.xlu0 %v767_v37, %s3788_s5  ;;  %v273_v37 = vld [vmem:[%s3764_s2 + $0x8] sm:$0xff]  ;;  %s3834_s5 = smov 1  }
  0xad   : > { %803 = vrot.lane.b32.xlu0 %v801_v38, %s3790_s24  ;;  %v272_v38 = vld [vmem:[%s3764_s2] sm:$0xff]  ;;  %s3838_s24 = smov 2  }
  0xb1   : > { %837 = vrot.lane.b32.xlu0 %v835_v39, %s3792_s26  ;;  %s3842_s26 = smov 3  }
  0xb5   : > { %871 = vrot.lane.b32.xlu0 %v869_v40, %s3794_s13  ;;  %s3855_s13 = smov 13  }
  0xd7   : > { %v247_v41 = vpop.xlane.xlu1 %246 }
  0xd8   : > { %v241_v42 = vpop.xlane.xlu0 %240  ;;  %v254_v45 = vmul.f32 0.00390625, %v247_v41  ;;  %v274_v41 = vld [vmem:[%s3764_s2 + $0x10] sm:$0xff] }
  0xd9   : > { %v252_v43 = vmul.f32 0.00390625, %v241_v42 }
  0xda   : > { %v278_v54 = vmul.f32 %v270_v49, %v254_v45 }
  0xdb   : > { %v258_v46 = vpop.xlane.xlu1 %257  ;;  %v276_v50 = vmul.f32 %v268_v44, %v252_v43 }
  0xdc   : > { %v244_v47 = vpop.xlane.xlu0 %243  ;;  %v311_v59 = vmul.f32 %v268_v44, %v258_v46  ;;  %v284_v7 = vsel %vm3866_vm0, %v278_v54, 0.0  ;;  %v275_v46 = vld [vmem:[%s3764_s2 + $0x18] sm:$0xff] }
  0xdd   : > { %v253_v51 = vmul.f32 0.00390625, %v244_v47  ;;  %v281_v58 = vsel %vm3866_vm0, %v276_v50, 0.0 }
  0xde   : > { %v315_v15 = vsel %vm3866_vm0, %v311_v59, 0.0 }
  0xdf   : > { %v250_v52 = vpop.xlane.xlu1 %249  ;;  %v277_v53 = vmul.f32 %v269_v48, %v253_v51 }
  0xe0   : > { %v255_v56 = vmul.f32 0.00390625, %v250_v52  ;;  %v261_v57 = vpop.xlane.xlu0 %260 }
  0xe1   : > { %v282_v60 = vsel %vm3866_vm0, %v277_v53, 0.0  ;;  %v312_v61 = vmul.f32 %v269_v48, %v261_v57  ;;  %v919_v57 = vld [vmem:[#allocation6 + $0x15] ss:$8 sm:$0x3] }
  0xe2   : > { %v283_v62 = vadd.f32 %v282_v60, %v281_v58  ;;  %v279_v63 = vmul.f32 %v271_v55, %v255_v56  ;;  %v953_v58 = vld [vmem:[#allocation6 + $0x16] ss:$8 sm:$0x3]  ;;  %v903_v60 = vld [vmem:[#allocation6 + $0x75] ss:$8 sm:$0x3] }
  0xe3   : > { %v316_v3 = vsel %vm3866_vm0, %v312_v61, 0.0  ;;  %v267_v8 = vpop.xlane.xlu1 %266  ;;  %v987_v61 = vld [vmem:[#allocation6 + $0x17] ss:$8 sm:$0x3] }
  0xe4   : > { %v285_v9 = vadd.f32 %v284_v7, %v283_v62  ;;  %v264_v12 = vpop.xlane.xlu0 %263  ;;  %v286_v13 = vsel %vm3866_vm0, %v279_v63, 0.0  ;;  %v314_v14 = vmul.f32 %v271_v55, %v267_v8  ;;  %v317_v17 = vadd.f32 %v316_v3, %v315_v15  ;;  %v937_v62 = vld [vmem:[#allocation6 + $0x76] ss:$8 sm:$0x3] }
  0xe5   : > { %v313_v16 = vmul.f32 %v270_v49, %v264_v12  ;;  %v1021_v3 = vld [vmem:[#allocation6 + $0x20] ss:$8 sm:$0x3]  ;;  %v971_v7 = vld [vmem:[#allocation6 + $0x77] ss:$8 sm:$0x3] }
  0xe6   : > { %v287_v18 = vadd.f32 %v286_v13, %v285_v9  ;;  %v320_v20 = vsel %vm3866_vm0, %v314_v14, 0.0  ;;  %v1055_v8 = vld [vmem:[#allocation6 + $0x21] ss:$8 sm:$0x3] }
  0xe7   : > { %v318_v19 = vsel %vm3866_vm0, %v313_v16, 0.0  ;;  %v1005_v12 = vld [vmem:[#allocation6 + $0x80] ss:$8 sm:$0x3] }
  0xe8   : > { %v319_v21 = vadd.f32 %v318_v19, %v317_v17  ;;  %v288_v22 = vrot.slane %v287_v18, 4  ;;  %v2789_v59 = vpop.permute.xlu0 %477  ;;  %v1089_v13 = vld [vmem:[#allocation6 + $0x22] ss:$8 sm:$0x3] }
  0xe9   : > { %v1039_v14 = vld [vmem:[#allocation6 + $0x81] ss:$8 sm:$0x3]  ;;  %v1123_v16 = vld [vmem:[#allocation6 + $0x23] ss:$8 sm:$0x3] }
  0xea   : > { %v289_v23 = vadd.f32 %v288_v22, %v287_v18  ;;  %v321_v24 = vadd.f32 %v320_v20, %v319_v21  ;;  %v1073_v17 = vld [vmem:[#allocation6 + $0x82] ss:$8 sm:$0x3]  ;;  %v1157_v18 = vld [vmem:[#allocation6 + $0x24] ss:$8 sm:$0x3] }
  0xeb   : > { %v1107_v20 = vld [vmem:[#allocation6 + $0x83] ss:$8 sm:$0x3]  ;;  %v1191_v21 = vld [vmem:[#allocation6 + $0x25] ss:$8 sm:$0x3] }
  0xec   : > { %v290_v25 = vrot.slane %v289_v23, 2  ;;  %v322_v26 = vrot.slane %v321_v24, 4  ;;  %v2793_v63 = vpop.permute.xlu0 %513  ;;  %v1141_v22 = vld [vmem:[#allocation6 + $0x84] ss:$8 sm:$0x3] }
  0xee   : > { %v291_v27 = vadd.f32 %v290_v25, %v289_v23  ;;  %v323_v28 = vadd.f32 %v322_v26, %v321_v24  ;;  %v1225_v24 = vld [vmem:[#allocation6 + $0x26] ss:$8 sm:$0x3]  ;;  %v1175_v25 = vld [vmem:[#allocation6 + $0x85] ss:$8 sm:$0x3] }
  0xef   : > { %v1242_v26 = vld [vmem:[#allocation6 + $0x87] ss:$8 sm:$0x3] }
  0xf0   : > { %v292_v29 = vrot.slane %v291_v27, 1  ;;  %v324_v30 = vrot.slane %v323_v28, 2  ;;  %v2799_v9 = vpop.permute.xlu0 %531 }
  0xf2   : > { %v325_v31 = vadd.f32 %v324_v30, %v323_v28  ;;  %v293_v33 = vadd.f32 %v292_v29, %v291_v27  ;;  %v2501_v27 = vmov 0.0   ;;  %v1209_v29 = vld [vmem:[#allocation6 + $0x86] ss:$8 sm:$0x3] }
  0xf3   : > { %427 = vst.msk [vmem:[#allocation2] sm:$0xff] %vm426_vm7, %v2501_v27  ;;  %v1258_v30 = vld [vmem:[#allocation6 + $0x27] ss:$8 sm:$0x3]  ;;  %vm3883_vm7 = vcmask 769024  }
  0xf4   : > { %v326_v32 = vrot.slane %v325_v31, 1  ;;  %v294_v36 = vmax.f32 %v293_v33, 0.0  ;;  %v2803_v15 = vpop.permute.xlu0 %547  ;;  %v1303_v33 = vld [vmem:[#allocation6 + $0x31] ss:$8 sm:$0x3] }
  0xf5   : > { %v1576_v27 = vld [vmem:[#allocation6 + $0xa2] ss:$8 sm:$0x3] }
  0xf6   : > { %v327_v34 = vadd.f32 %v326_v32, %v325_v31  ;;  %v295_v45 = vmul.f32 %v294_v36, %v272_v38  ;;  %v297_v50 = vmul.f32 %v294_v36, %v274_v41  ;;  %v296_v53 = vmul.f32 %v294_v36, %v273_v37  ;;  %v1276_v32 = vld [vmem:[#allocation6 + $0x90] ss:$8 sm:$0x3] }
  0xf7   : > { %v298_v54 = vmul.f32 %v294_v36, %v275_v46 }
  0xf8   : > { %v328_v35 = vmax.f32 %v327_v34, 0.0  ;;  %v299_v48 = vsel %vm3866_vm0, %v295_v45, 0.0  ;;  %v305_v52 = vsel %vm3866_vm0, %v297_v50, 0.0  ;;  %v302_v55 = vsel %vm3866_vm0, %v296_v53, 0.0  ;;  %v2809_v19 = vpop.permute.xlu0 %565 }
  0xf9   : > { %v308_v56 = vsel %vm3866_vm0, %v298_v54, 0.0  ;;  %v1432_v50 = vld [vmem:[#allocation6 + $0x35] ss:$8 sm:$0x3] }
  0xfa   : > { %v330_v39 = vmul.f32 %v328_v35, %v273_v37  ;;  %v329_v40 = vmul.f32 %v328_v35, %v272_v38  ;;  %v331_v44 = vmul.f32 %v328_v35, %v274_v41  ;;  %v332_v49 = vmul.f32 %v328_v35, %v275_v46  ;;  %v1320_v35 = vld [vmem:[#allocation6 + $0x92] ss:$8 sm:$0x3]  ;;  %v1352_v38 = vld [vmem:[#allocation6 + $0x93] ss:$8 sm:$0x3]  ;;  %v2837_v41 = vpop.permute.xlu1 %497 }
  0xfb   : > { %v1336_v37 = vld [vmem:[#allocation6 + $0x32] ss:$8 sm:$0x3]  ;;  %v1464_v54 = vld [vmem:[#allocation6 + $0x36] ss:$8 sm:$0x3] }
  0xfc   : > { %v336_v42 = vsel %vm3866_vm0, %v330_v39, 0.0  ;;  %v333_v43 = vsel %vm3866_vm0, %v329_v40, 0.0  ;;  %v339_v47 = vsel %vm3866_vm0, %v331_v44, 0.0  ;;  %v342_v51 = vsel %vm3866_vm0, %v332_v49, 0.0  ;;  %v2813_v23 = vpop.permute.xlu0 %581 }
  0xfd   : > { %337 = vadd.xlane.f32.xlu1 %v336_v42  ;;  %334 = vadd.xlane.f32.xlu0 %v333_v43  ;;  %v1368_v40 = vld [vmem:[#allocation6 + $0x33] ss:$8 sm:$0x3]  ;;  %v1384_v43 = vld [vmem:[#allocation6 + $0x94] ss:$8 sm:$0x3] }
  0xfe   : > { %v1400_v44 = vld [vmem:[#allocation6 + $0x34] ss:$8 sm:$0x3]  ;;  %v2843_v45 = vpop.permute.xlu1 %717 }
 0x100   : > { %v2819_v28 = vpop.permute.xlu0 %599 }
 0x101   : > { %340 = vadd.xlane.f32.xlu1 %v339_v47  ;;  %300 = vadd.xlane.f32.xlu0 %v299_v48  ;;  %v1416_v47 = vld [vmem:[#allocation6 + $0x95] ss:$8 sm:$0x3] }
 0x102   : > { %v2848_v48 = vpop.permute.xlu1 %751 }
 0x104   : > { %v2823_v31 = vpop.permute.xlu0 %615 }
 0x105   : > { %343 = vadd.xlane.f32.xlu1 %v342_v51  ;;  %306 = vadd.xlane.f32.xlu0 %v305_v52  ;;  %v1448_v51 = vld [vmem:[#allocation6 + $0x96] ss:$8 sm:$0x3] }
 0x106   : > { %v2854_v52 = vpop.permute.xlu1 %785 }
 0x108   : > { %v2827_v34 = vpop.permute.xlu0 %633 }
 0x109   : > { %303 = vadd.xlane.f32.xlu1 %v302_v55  ;;  %309 = vadd.xlane.f32.xlu0 %v308_v56 }
 0x10a   : > { %v2859_v55 = vpop.permute.xlu1 %819 }
 0x10c   : > { %v2830_v36 = vpop.permute.xlu0 %649 }
 0x110   : > { %v2834_v39 = vpop.permute.xlu0 %667 }
 0x114   : > { %v2839_v42 = vpop.permute.xlu0 %683 }
 0x118   : > { %v2845_v46 = vpop.permute.xlu0 %701 }
 0x11a   : > { %921 = vrot.lane.b32.xlu1 %v919_v57, %s3798_s21  ;;  %v1480_v57 = vld [vmem:[#allocation6 + $0x97] ss:$8 sm:$0x3] }
 0x11c   : > { %v2850_v49 = vpop.permute.xlu0 %735 }
 0x11e   : > { %955 = vrot.lane.b32.xlu1 %v953_v58, %s3800_s6  ;;  %v1496_v58 = vld [vmem:[#allocation6 + $0x37] ss:$8 sm:$0x3] }
 0x11f   : > { %905 = vrot.lane.b32.xlu0 %v903_v60, %s3796_s14  ;;  %s3859_s14 = smov 14   ;;  %v2865_v60 = vpop.permute.xlu1 %853 }
 0x120   : > { %v2856_v53 = vpop.permute.xlu0 %769 }
 0x122   : > { %989 = vrot.lane.b32.xlu1 %v987_v61, %s3804_s29 }
 0x123   : > { %939 = vrot.lane.b32.xlu0 %v937_v62, %s3798_s21  ;;  %s3860_s21 = smov 15   ;;  %v1512_v62 = vld [vmem:[#allocation6 + $0xa0] ss:$8 sm:$0x3] }
 0x124   : > { %v2861_v56 = vpop.permute.xlu0 %803 }
 0x126   : > { %1023 = vrot.lane.b32.xlu1 %v1021_v3, %s3802_s11  ;;  %v2870_v3 = vpop.permute.xlu1 %887 }
 0x127   : > { %973 = vrot.lane.b32.xlu0 %v971_v7, %s3800_s6  ;;  %s3864_s6 = smov 16  }
 0x128   : > { %v2867_v61 = vpop.permute.xlu0 %837 }
 0x12a   : > { %1057 = vrot.lane.b32.xlu1 %v1055_v8, %s3806_s28  ;;  %v1528_v8 = vld [vmem:[#allocation6 + $0x40] ss:$8 sm:$0x3] }
 0x12b   : > { %1007 = vrot.lane.b32.xlu0 %v1005_v12, %s3804_s29  ;;  %s3871_s29 = smov 18  }
 0x12c   : > { %v2872_v7 = vpop.permute.xlu0 %871 }
 0x12e   : > { %1091 = vrot.lane.b32.xlu1 %v1089_v13, %s3816_s12 }
 0x12f   : > { %1041 = vrot.lane.b32.xlu0 %v1039_v14, %s3802_s11  ;;  %s3867_s11 = smov 17   ;;  %v1544_v14 = vld [vmem:[#allocation6 + $0xa1] ss:$8 sm:$0x3] }
 0x132   : > { %1125 = vrot.lane.b32.xlu1 %v1123_v16, %s3818_s8 }
 0x133   : > { %1075 = vrot.lane.b32.xlu0 %v1073_v17, %s3806_s28  ;;  %s3873_s28 = smov 19  }
 0x136   : > { %1159 = vrot.lane.b32.xlu1 %v1157_v18, %s3820_s20 }
 0x137   : > { %1109 = vrot.lane.b32.xlu0 %v1107_v20, %s3816_s12  ;;  %v1560_v20 = vld [vmem:[#allocation6 + $0x41] ss:$8 sm:$0x3]  ;;  %s3880_s12 = smov 45  }
 0x13a   : > { %1193 = vrot.lane.b32.xlu1 %v1191_v21, %s3822_s25 }
 0x13b   : > { %1143 = vrot.lane.b32.xlu0 %v1141_v22, %s3818_s8  ;;  %s3853_s8 = smov 51  }
 0x13e   : > { %1227 = vrot.lane.b32.xlu1 %v1225_v24, %s3826_s7 }
 0x13f   : > { %1177 = vrot.lane.b32.xlu0 %v1175_v25, %s3820_s20  ;;  %s3824_s20 = smov 35  }
 0x142   : > { %1244 = vrot.lane.b32.xlu1 %v1242_v26, %s3826_s7  ;;  %s3861_s7 = smov 49  }
 0x143   : > { %1211 = vrot.lane.b32.xlu0 %v1209_v29, %s3822_s25  ;;  %s3857_s25 = smov 50  }
 0x146   : > { %1260 = vrot.lane.b32.xlu1 %v1258_v30, %s3830_s23 }
 0x14a   : > { %1278 = vrot.lane.b32.xlu1 %v1276_v32, %s3830_s23  ;;  %s3868_s23 = smov 48  }
 0x14e   : > { %1305 = vrot.lane.b32.xlu1 %v1303_v33, %s3834_s5 }
 0x152   : > { %1322 = vrot.lane.b32.xlu1 %v1320_v35, %s3834_s5  ;;  %s3874_s5 = smov 47  }
 0x156   : > { %1338 = vrot.lane.b32.xlu1 %v1336_v37, %s3838_s24 }
 0x15a   : > { %1354 = vrot.lane.b32.xlu1 %v1352_v38, %s3838_s24  ;;  %v1592_v38 = vld [vmem:[#allocation6 + $0x42] ss:$8 sm:$0x3]  ;;  %s3878_s24 = smov 46  }
 0x15e   : > { %1370 = vrot.lane.b32.xlu1 %v1368_v40, %s3842_s26 }
 0x162   : > { %1386 = vrot.lane.b32.xlu1 %v1384_v43, %s3842_s26  ;;  %s2527_s26 = smov 34  }
 0x166   : > { %1402 = vrot.lane.b32.xlu1 %v1400_v44, %s3855_s13 }
 0x16a   : > { %1418 = vrot.lane.b32.xlu1 %v1416_v47, %s3855_s13  ;;  %v1608_v47 = vld [vmem:[#allocation6 + $0xa3] ss:$8 sm:$0x3] }
 0x16e   : > { %1434 = vrot.lane.b32.xlu1 %v1432_v50, %s3859_s14 }
 0x172   : > { %1450 = vrot.lane.b32.xlu1 %v1448_v51, %s3859_s14 }
 0x176   : > { %1466 = vrot.lane.b32.xlu1 %v1464_v54, %s3860_s21 }
 0x17a   : > { %1482 = vrot.lane.b32.xlu1 %v1480_v57, %s3860_s21 }
 0x17e   : > { %1498 = vrot.lane.b32.xlu1 %v1496_v58, %s3864_s6 }
 0x182   : > { %1514 = vrot.lane.b32.xlu1 %v1512_v62, %s3864_s6 }
 0x186   : > { %v338_v12 = vpop.xlane.xlu1 %337  ;;  %v335_v13 = vpop.xlane.xlu0 %334  ;;  %1530 = vrot.lane.b32.xlu1 %v1528_v8, %s3867_s11 }
 0x18a   : > { %v341_v16 = vpop.xlane.xlu1 %340  ;;  %v301_v17 = vpop.xlane.xlu0 %300  ;;  %1546 = vrot.lane.b32.xlu1 %v1544_v14, %s3867_s11 }
 0x18b   : > { %v345_v18 = vadd.f32 %v335_v13, %v301_v17 }
 0x18d   : > { %v349_v21 = vsub.f32 0.0, %v345_v18 }
 0x18e   : > { %v344_v22 = vpop.xlane.xlu1 %343  ;;  %v307_v24 = vpop.xlane.xlu0 %306  ;;  %1562 = vrot.lane.b32.xlu1 %v1560_v20, %s3871_s29 }
 0x18f   : > { %v353_v25 = vmul.f32 1.442695, %v349_v21  ;;  %v347_v26 = vadd.f32 %v341_v16, %v307_v24 }
 0x191   : > { %v351_v29 = vsub.f32 0.0, %v347_v26  ;;  %2329 = vpow2.f32 %v353_v25 }
 0x192   : > { %v304_v30 = vpop.xlane.xlu1 %303  ;;  %v310_v32 = vpop.xlane.xlu0 %309  ;;  %1578 = vrot.lane.b32.xlu1 %v1576_v27, %s3871_s29 }
 0x193   : > { %v357_v33 = vmul.f32 1.442695, %v351_v29  ;;  %v346_v35 = vadd.f32 %v338_v12, %v304_v30  ;;  %v348_v37 = vadd.f32 %v344_v22, %v310_v32 }
 0x195   : > { %2331 = vpow2.f32 %v357_v33  ;;  %v350_v40 = vsub.f32 0.0, %v346_v35  ;;  %v352_v43 = vsub.f32 0.0, %v348_v37 }
 0x196   : > { %v2879_v44 = vpop.permute.xlu1 %921  ;;  %1594 = vrot.lane.b32.xlu1 %v1592_v38, %s3873_s28 }
 0x197   : > { %v355_v50 = vmul.f32 1.442695, %v350_v40  ;;  %v359_v51 = vmul.f32 1.442695, %v352_v43 }
 0x199   : > { %2333 = vpow2.f32 %v355_v50 }
 0x19a   : > { %2335 = vpow2.f32 %v359_v51  ;;  %v2882_v54 = vpop.permute.xlu1 %955  ;;  %1610 = vrot.lane.b32.xlu1 %v1608_v47, %s3873_s28 }
 0x19e   : > { %v2885_v57 = vpop.permute.xlu1 %989  ;;  %v2330_v58 = vpop.eup %2329 }
 0x19f   : > { %v361_v12 = vadd.f32 1.0, %v2330_v58 }
 0x1a2   : > { %v2332_v62 = vpop.eup %2331  ;;  %v2887_v8 = vpop.permute.xlu1 %1023 }
 0x1a3   : > { %v363_v13 = vadd.f32 1.0, %v2332_v62 }
 0x1a5   : > { %2337 = vrcp.f32 %v363_v13 }
 0x1a6   : > { %v2334_v14 = vpop.eup %2333  ;;  %v2889_v16 = vpop.permute.xlu1 %1057  ;;  %2339 = vrcp.f32 %v361_v12 }
 0x1a7   : > { %v2336_v17 = vpop.eup %2335  ;;  %v362_v18 = vadd.f32 1.0, %v2334_v14 }
 0x1a8   : > { %v364_v20 = vadd.f32 1.0, %v2336_v17 }
 0x1a9   : > { %2341 = vrcp.f32 %v362_v18  ;;  %v2513_v18 = vmov 1966171168  }
 0x1aa   : > { %2343 = vrcp.f32 %v364_v20  ;;  %v2891_v21 = vpop.permute.xlu1 %1091  ;;  %v432_v20 = vunpack.c.l.s4 %v2513_v18 }
 0x1ae   : > { %v2893_v22 = vpop.permute.xlu1 %1125 }
 0x1b2   : > { %v2338_v24 = vpop.eup %2337  ;;  %v2895_v26 = vpop.permute.xlu1 %1159 }
 0x1b3   : > { %v2340_v25 = vpop.eup %2339  ;;  %v2898_v29 = vmul.f32 %v2338_v24, %v2691_v0  ;;  %v2901_v30 = vmul.f32 %v2338_v24, %v2693_v1  ;;  %v434_v24 = vlaneseq }
 0x1b4   : > { %v2904_v33 = vmul.f32 %v2340_v25, %v2695_v2  ;;  %v2907_v35 = vmul.f32 %v2340_v25, %v2699_v4 }
 0x1b5   : > { %3910 = vst [vmem:[#allocation12_spill] sm:$0xff] %v2898_v29  ;;  %3911 = vst [vmem:[#allocation13_spill] sm:$0xff] %v2901_v30  ;;  %vm448_vm8 = vcmp.lt.s32.totalorder %v434_v24, 256 }
 0x1b6   : > { %v2342_v27 = vpop.eup %2341  ;;  %3912 = vst [vmem:[#allocation14_spill] sm:$0xff] %v2904_v33  ;;  %3913 = vst [vmem:[#allocation15_spill] sm:$0xff] %v2907_v35  ;;  %v402_v4 = vmax.f32 %v2904_v33, %v2898_v29 }
 0x1b7   : > { %v2344_v32 = vpop.eup %2343  ;;  %v2910_v37 = vmul.f32 %v2342_v27, %v2701_v5  ;;  %v2913_v38 = vmul.f32 %v2342_v27, %v2703_v6  ;;  %v411_v5 = vmax.f32 %v2907_v35, %v2901_v30 }
 0x1b8   : > { %v2916_v40 = vmul.f32 %v2344_v32, %v2711_v10  ;;  %v2919_v0 = vmul.f32 %v2344_v32, %v2713_v11  ;;  %v2933_v11 = vpop.permute.xlu1 %1193 }
 0x1b9   : > { %3914 = vst [vmem:[#allocation16_spill] sm:$0xff] %v2910_v37  ;;  %3915 = vst [vmem:[#allocation17_spill] sm:$0xff] %v2913_v38  ;;  %v381_v1 = vadd.f32 %v2910_v37, %v2904_v33  ;;  %v390_v2 = vadd.f32 %v2913_v38, %v2907_v35 }
 0x1ba   : > { %3916 = vst [vmem:[#allocation18_spill] sm:$0xff] %v2916_v40  ;;  %3917 = vst [vmem:[#allocation19_spill] sm:$0xff] %v2919_v0  ;;  %v403_v6 = vmax.f32 %v2910_v37, %v2916_v40  ;;  %v412_v10 = vmax.f32 %v2913_v38, %v2919_v0 }
 0x1bb   : > { %v382_v43 = vadd.f32 %v381_v1, %v2898_v29  ;;  %v391_v47 = vadd.f32 %v390_v2, %v2901_v30 }
 0x1bc   : > { %v404_v50 = vmax.f32 %v402_v4, %v403_v6  ;;  %v413_v51 = vmax.f32 %v411_v5, %v412_v10  ;;  %v2939_v32 = vpop.permute.xlu1 %1227  ;;  %v433_v10 = vunpack.c.0.s8 %v432_v20 }
 0x1bd   : > { %v383_v58 = vadd.f32 %v382_v43, %v2916_v40  ;;  %v392_v62 = vadd.f32 %v391_v47, %v2919_v0  ;;  %v2941_v43 = vshrl.u32 %v434_v24, 7  ;;  %v737_v24 = vrot.slane %v2850_v49, 7 }
 0x1be   : > { %v405_v12 = vrot.slane %v404_v50, 4  ;;  %v414_v13 = vrot.slane %v413_v51, 4 }
 0x1bf   : > { %v384_v14 = vrot.slane %v383_v58, 4  ;;  %v393_v17 = vrot.slane %v392_v62, 4 }
 0x1c0   : > { %v406_v25 = vmax.f32 %v404_v50, %v405_v12  ;;  %v415_v27 = vmax.f32 %v413_v51, %v414_v13  ;;  %v2943_v37 = vpop.permute.xlu1 %1244 }
 0x1c1   : > { %v385_v1 = vadd.f32 %v384_v14, %v383_v58  ;;  %v394_v29 = vadd.f32 %v393_v17, %v392_v62  ;;  %v436_v58 = vsub.s32 %v433_v10, %v2941_v43  ;;  %v533_v10 = vrot.slane %v2799_v9, 7 }
 0x1c2   : > { %v407_v2 = vrot.slane %v406_v25, 2  ;;  %v416_v4 = vrot.slane %v415_v27, 2 }
 0x1c3   : > { %v386_v5 = vrot.slane %v385_v1, 2  ;;  %v395_v6 = vrot.slane %v394_v29, 2 }
 0x1c4   : > { %v408_v47 = vmax.f32 %v406_v25, %v407_v2  ;;  %v417_v0 = vmax.f32 %v415_v27, %v416_v4  ;;  %v2946_v25 = vpop.permute.xlu1 %1260  ;;  %v2948_v4 = vpop.permute.xlu0 %905 }
 0x1c5   : > { %v387_v40 = vadd.f32 %v386_v5, %v385_v1  ;;  %v396_v30 = vadd.f32 %v395_v6, %v394_v29 }
 0x1c6   : > { %v409_v38 = vrot.slane %v408_v47, 1  ;;  %v418_v18 = vrot.slane %v417_v0, 1 }
 0x1c7   : > { %v388_v50 = vrot.slane %v387_v40, 1  ;;  %v397_v51 = vrot.slane %v396_v30, 1 }
 0x1c8   : > { %v410_v62 = vmax.f32 %v408_v47, %v409_v38  ;;  %v419_v12 = vmax.f32 %v417_v0, %v418_v18  ;;  %v2950_v5 = vpop.permute.xlu1 %1278  ;;  %v499_v38 = vrot.slane %v2837_v41, 7  ;;  %v2956_v0 = vpop.permute.xlu0 %939 }
 0x1c9   : > { %v389_v13 = vadd.f32 %v388_v50, %v387_v40  ;;  %v398_v14 = vadd.f32 %v397_v51, %v396_v30  ;;  %v703_v30 = vrot.slane %v2845_v46, 7  ;;  %v534_v50 = vsel %vm3847_vm12, %v533_v10, %v2799_v9 }
 0x1ca   : > { %v454_v17 = vcombine.low %v410_v62, %v419_v12  ;;  %v567_v51 = vrot.slane %v2809_v19, 7  ;;  %v839_v9 = vrot.slane %v2867_v61, 7 }
 0x1cb   : > { %v400_v20 = vmul.f32 0.03125, %v389_v13  ;;  %v401_v35 = vmul.f32 0.03125, %v398_v14 }
 0x1cc   : > { %v461_v33 = vrot.slane %v454_v17, %v436_v58  ;;  %v2963_v6 = vpop.permute.xlu1 %1305  ;;  %v568_v14 = vsel %vm3848_vm14, %v567_v51, %v2809_v19  ;;  %v601_v17 = vrot.slane %v2819_v28, 7 }
 0x1cd   : > { %v430_v29 = vcombine.low %v400_v20, %v401_v35  ;;  %v704_v35 = vsel %vm3852_vm10, %v703_v30, %v2845_v46  ;;  %v805_v46 = vrot.slane %v2861_v56, 7 }
 0x1ce   : > { %v468_v27 = vrot.slane %v461_v33, %v436_v58  ;;  %v500_v33 = vsel %vm3845_vm9, %v499_v38, %v2837_v41  ;;  %v738_v41 = vsel %vm3882_vm11, %v737_v24, %v2850_v49  ;;  %v602_v19 = vsel %vm3849_vm1, %v601_v17, %v2819_v28 }
 0x1cf   : > { %v437_v1 = vrot.slane %v430_v29, %v436_v58  ;;  %v806_v49 = vsel %vm3884_vm13, %v805_v46, %v2861_v56  ;;  %v840_v56 = vsel %vm3885_vm15, %v839_v9, %v2867_v61  ;;  %v635_v38 = vrot.slane %v2827_v34, 7 }
 0x1d0   : > { %471 = vst.msk [vmem:[#allocation2 + $0x3] ss:$2 sm:$0x3] %vm448_vm8, %v468_v27  ;;  %v2979_v12 = vpop.permute.xlu1 %1322  ;;  %v669_v24 = vrot.slane %v2834_v39, 7 }
 0x1d1   : > { %v444_v2 = vrot.slane %v437_v1, %v436_v58  ;;  %v2976_v58 = vpop.permute.xlu0 %973  ;;  %v873_v1 = vrot.slane %v2872_v7, 7  ;;  %v636_v28 = vsel %vm3850_vm3, %v635_v38, %v2827_v34 }
 0x1d2   : > { %v670_v34 = vsel %vm3851_vm5, %v669_v24, %v2834_v39  ;;  %v479_v39 = vrot.slane %v2789_v59, 7 }
 0x1d3   : > { %451 = vst.msk [vmem:[#allocation2 + $0x2] ss:$2 sm:$0x3] %vm448_vm8, %v444_v2  ;;  %v874_v61 = vsel %vm3886_vm2, %v873_v1, %v2872_v7  ;;  %vm3888_vm8 = vcmask 891904   ;;  %v515_v1 = vrot.slane %v2793_v63, 7 }
 0x1d4   : > { %v2998_v2 = vpop.permute.xlu1 %1338 }
 0x1d5   : > { %v2992_v27 = vpop.permute.xlu0 %1007 }
 0x1d7   : > { %v2954_v40 = vld [vmem:[#allocation2 + $0x1] ss:$2 sm:$0x7] }
 0x1d8   : > { %v706_v47 = vmul.f32 %v704_v35, %v2954_v40  ;;  %v502_v18 = vmul.f32 %v500_v33, %v2954_v40  ;;  %v740_v62 = vmul.f32 %v738_v41, %v2954_v40  ;;  %v536_v13 = vmul.f32 %v534_v50, %v2954_v40  ;;  %v3018_v46 = vpop.permute.xlu1 %1354 }
 0x1d9   : > { %v808_v20 = vmul.f32 %v806_v49, %v2954_v40  ;;  %v570_v29 = vmul.f32 %v568_v14, %v2954_v40  ;;  %v842_v30 = vmul.f32 %v840_v56, %v2954_v40  ;;  %v907_v33 = vrot.slane %v2948_v4, 7  ;;  %v1042_v10 = vpop.permute.xlu0 %1041 }
 0x1da   : > { %708 = vrot.lane.b32.xlu0 %v706_v47, %s3880_s12  ;;  %504 = vrot.lane.b32.xlu1 %v502_v18, %s3853_s8  ;;  %v604_v35 = vmul.f32 %v602_v19, %v2954_v40  ;;  %v876_v47 = vmul.f32 %v874_v61, %v2954_v40  ;;  %v941_v41 = vrot.slane %v2956_v0, 7  ;;  %v638_v7 = vmul.f32 %v636_v28, %v2954_v40  ;;  %v3043_v56 = vld [vmem:[#allocation2] ss:$2 sm:$0x7] }
 0x1db   : > { %v908_v18 = vsel %vm3887_vm4, %v907_v33, %v2948_v4  ;;  %v771_v50 = vrot.slane %v2856_v53, 7  ;;  %v549_v61 = vrot.slane %v2803_v15, 7 }
 0x1dc   : > { %v910_v4 = vmul.f32 %v908_v18, %v2954_v40  ;;  %v942_v51 = vsel %vm3844_vm6, %v941_v41, %v2956_v0  ;;  %v3032_v9 = vpop.permute.xlu1 %1370  ;;  %vm3846_vm6 = vcmask 900096  }
 0x1dd   : > { %v1076_v49 = vpop.permute.xlu0 %1075  ;;  %v772_v14 = vsel %vm3883_vm7, %v771_v50, %v2856_v53  ;;  %v944_v0 = vmul.f32 %v942_v51, %v2954_v40  ;;  %v481_v53 = vsel %vm3845_vm9, %v479_v39, %v2789_v59  ;;  %v517_v59 = vsel %vm3847_vm12, %v515_v1, %v2793_v63 }
 0x1de   : > { %742 = vrot.lane.b32.xlu0 %v740_v62, %s3824_s20  ;;  %538 = vrot.lane.b32.xlu1 %v536_v13, %s3857_s25  ;;  %s3828_s20 = smov 33   ;;  %v975_v62 = vrot.slane %v2976_v58, 7  ;;  %v672_v13 = vmul.f32 %v670_v34, %v2954_v40  ;;  %vm3889_vm9 = vcmask 908288   ;;  %v551_v63 = vsel %vm3848_vm14, %v549_v61, %v2803_v15 }
 0x1df   : > { %vm3891_vm12 = vcmask 924672   ;;  %vm3892_vm14 = vcmask 932864  }
 0x1e0   : > { %v976_v17 = vsel %vm3888_vm8, %v975_v62, %v2976_v58  ;;  %v3053_v33 = vpop.permute.xlu1 %1386  ;;  %v617_v62 = vrot.slane %v2823_v31, 7 }
 0x1e1   : > { %v1110_v19 = vpop.permute.xlu0 %1109  ;;  %v978_v58 = vmul.f32 %v976_v17, %v2954_v40  ;;  %v651_v17 = vrot.slane %v2830_v36, 7 }
 0x1e2   : > { %810 = vrot.lane.b32.xlu0 %v808_v20, %s3828_s20  ;;  %572 = vrot.lane.b32.xlu1 %v570_v29, %s3861_s7  ;;  %s3832_s20 = smov 32   ;;  %v1009_v20 = vrot.slane %v2992_v27, 7  ;;  %v774_v29 = vmul.f32 %v772_v14, %v2954_v40  ;;  %v1111_v50 = vrot.slane %v1110_v19, 7 }
 0x1e4   : > { %v1010_v38 = vsel %vm3846_vm6, %v1009_v20, %v2992_v27  ;;  %v1077_v27 = vrot.slane %v1076_v49, 7  ;;  %vm3890_vm6 = vcmask 916480   ;;  %v3065_v41 = vpop.permute.xlu1 %1402  ;;  %v1112_v39 = vsel %vm3891_vm12, %v1111_v50, %v1110_v19 }
 0x1e5   : > { %v1012_v28 = vmul.f32 %v1010_v38, %v2954_v40  ;;  %v1144_v18 = vpop.permute.xlu0 %1143  ;;  %v1114_v20 = vmul.f32 %v1112_v39, %v2954_v40  ;;  %v685_v38 = vrot.slane %v2839_v42, 7  ;;  %v1784_v39 = vld [vmem:[#allocation6 + $0x50] ss:$8 sm:$0x3] }
 0x1e6   : > { %844 = vrot.lane.b32.xlu0 %v842_v30, %s3832_s20  ;;  %606 = vrot.lane.b32.xlu1 %v604_v35, %s3868_s23  ;;  %s3836_s20 = smov 31   ;;  %v1043_v30 = vrot.slane %v1042_v10, 7  ;;  %v483_v35 = vmul.f32 %v481_v53, %v3043_v56  ;;  %v1145_v14 = vrot.slane %v1144_v18, 7 }
 0x1e8   : > { %v1044_v24 = vsel %vm3889_vm9, %v1043_v30, %v1042_v10  ;;  %v1078_v10 = vsel %vm3890_vm6, %v1077_v27, %v1076_v49  ;;  %v3081_v49 = vpop.permute.xlu1 %1418 }
 0x1e9   : > { %v1046_v34 = vmul.f32 %v1044_v24, %v2954_v40  ;;  %v1178_v15 = vpop.permute.xlu0 %1177 }
 0x1ea   : > { %878 = vrot.lane.b32.xlu0 %v876_v47, %s3836_s20  ;;  %640 = vrot.lane.b32.xlu1 %v638_v7, %s3874_s5  ;;  %s3840_s20 = smov 30   ;;  %v519_v47 = vmul.f32 %v517_v59, %v3043_v56  ;;  %v583_v7 = vrot.slane %v2813_v23, 7  ;;  %v1179_v53 = vrot.slane %v1178_v15, 7 }
 0x1ec   : > { %v585_v51 = vsel %vm3849_vm1, %v583_v7, %v2813_v23  ;;  %v619_v23 = vsel %vm3850_vm3, %v617_v62, %v2823_v31  ;;  %vm3893_vm1 = vcmask 941056   ;;  %v653_v31 = vsel %vm3851_vm5, %v651_v17, %v2830_v36  ;;  %v1624_v7 = vld [vmem:[#allocation6 + $0x43] ss:$8 sm:$0x3] }
 0x1ed   : > { %v621_v1 = vmul.f32 %v619_v23, %v3043_v56  ;;  %v1212_v19 = vpop.permute.xlu0 %1211  ;;  %v655_v61 = vmul.f32 %v653_v31, %v3043_v56  ;;  %vm3894_vm3 = vcmask 1022976   ;;  %v1246_v36 = vrot.slane %v2943_v37, 7  ;;  %v1656_v62 = vld [vmem:[#allocation6 + $0x44] ss:$8 sm:$0x3] }
 0x1ee   : > { %912 = vrot.lane.b32.xlu0 %v910_v4, %s3840_s20  ;;  %674 = vrot.lane.b32.xlu1 %v672_v13, %s3878_s24  ;;  %s3877_s20 = smov 29   ;;  %v553_v4 = vmul.f32 %v551_v63, %v3043_v56  ;;  %v1080_v13 = vmul.f32 %v1078_v10, %v2954_v40  ;;  %v1213_v59 = vrot.slane %v1212_v19, 7  ;;  %vm3856_vm5 = vcmask 1031168  }
 0x1ef   : > { %v1356_v23 = vrot.slane %v3018_v46, 7  ;;  %v1420_v31 = vrot.slane %v3081_v49, 7 }
 0x1f0   : > { %v1214_v27 = vsel %vm3894_vm3, %v1213_v59, %v1212_v19 }
 0x1f1   : > { %v1216_v63 = vmul.f32 %v1214_v27, %v2954_v40  ;;  %v1752_v27 = vld [vmem:[#allocation6 + $0x47] ss:$8 sm:$0x3] }
 0x1f2   : > { %946 = vrot.lane.b32.xlu0 %v944_v0, %s3877_s20  ;;  %776 = vrot.lane.b32.xlu1 %v774_v29, %s2527_s26  ;;  %v587_v0 = vmul.f32 %v585_v51, %v3043_v56  ;;  %v1146_v29 = vsel %vm3892_vm14, %v1145_v14, %v1144_v18  ;;  %v1672_v14 = vld [vmem:[#allocation6 + $0xa5] ss:$8 sm:$0x3] }
 0x1f3   : > { %v1148_v30 = vmul.f32 %v1146_v29, %v2954_v40  ;;  %v1357_v29 = vsel %vm3866_vm0, %v1356_v23, %v3018_v46  ;;  %vm3872_vm0 = vcmask 105472   ;;  %v787_v23 = vrot.slane %v2854_v52, 7 }
 0x1f6   : > { %980 = vrot.lane.b32.xlu0 %v978_v58, %s3873_s28  ;;  %485 = vrot.lane.b32.xlu1 %v483_v35, %s3853_s8  ;;  %v3093_v58 = vpop.permute.xlu1 %1434  ;;  %v1180_v35 = vsel %vm3893_vm1, %v1179_v53, %v1178_v15  ;;  %s3918_s8 = smov 3   ;;  %v1324_v15 = vrot.slane %v2979_v12, 7  ;;  %v1388_v53 = vrot.slane %v3053_v33, 7  ;;  %s3928_s28 = smov 114  }
 0x1f7   : > { %v1182_v24 = vmul.f32 %v1180_v35, %v2954_v40  ;;  %v1421_v35 = vsel %vm3872_vm0, %v1420_v31, %v3081_v49  ;;  %vm3898_vm0 = vcmask 121856   ;;  %v1864_v31 = vld [vmem:[#allocation6 + $0xb3] ss:$8 sm:$0x3] }
 0x1fa   : > { %1014 = vrot.lane.b32.xlu0 %v1012_v28, %s3871_s29  ;;  %521 = vrot.lane.b32.xlu1 %v519_v47, %s3857_s25  ;;  %v687_v28 = vsel %vm3852_vm10, %v685_v38, %v2839_v42  ;;  %v1451_v47 = vpop.permute.xlu1 %1450  ;;  %v1247_v42 = vsel %vm3856_vm5, %v1246_v36, %v2943_v37  ;;  %vm3895_vm10 = vcmask 1039360   ;;  %vm3863_vm5 = vcmask 7168   ;;  %s3920_s25 = smov 1   ;;  %s3927_s29 = smov 115  }
 0x1fb   : > { %v689_v18 = vmul.f32 %v687_v28, %v3043_v56  ;;  %v1249_v50 = vmul.f32 %v1247_v42, %v2954_v40  ;;  %v1452_v59 = vrot.slane %v1451_v47, 7  ;;  %v1736_v28 = vld [vmem:[#allocation6 + $0xa7] ss:$8 sm:$0x3] }
 0x1fc   : > { %v1768_v42 = vld [vmem:[#allocation6 + $0xb0] ss:$8 sm:$0x3] }
 0x1fe   : > { %1048 = vrot.lane.b32.xlu0 %v1046_v34, %s3867_s11  ;;  %555 = vrot.lane.b32.xlu1 %v553_v4, %s3861_s7  ;;  %v1280_v34 = vrot.slane %v2950_v5, 7  ;;  %v3117_v10 = vpop.permute.xlu1 %1466  ;;  %v1640_v4 = vld [vmem:[#allocation6 + $0xa4] ss:$8 sm:$0x3]  ;;  %s3923_s7 = smov 31   ;;  %s3925_s11 = smov 125  }
 0x200   : > { %v1281_v51 = vsel %vm3895_vm10, %v1280_v34, %v2950_v5  ;;  %v1325_v5 = vsel %vm3863_vm5, %v1324_v15, %v2979_v12  ;;  %vm3870_vm5 = vcmask 23552   ;;  %v753_v15 = vrot.slane %v2848_v48, 7 }
 0x201   : > { %v1283_v37 = vmul.f32 %v1281_v51, %v2954_v40  ;;  %v1389_v19 = vsel %vm3870_vm5, %v1388_v53, %v3053_v33  ;;  %vm3876_vm5 = vcmask 113664  }
 0x202   : > { %1082 = vrot.lane.b32.xlu0 %v1080_v13, %s3864_s6  ;;  %589 = vrot.lane.b32.xlu1 %v587_v0, %s3868_s23  ;;  %v1483_v13 = vpop.permute.xlu1 %1482  ;;  %v3129_v0 = vld [vmem:[#allocation2 + $0x3] ss:$2 sm:$0x7]  ;;  %s3924_s6 = smov 126   ;;  %s3926_s23 = smov 32  }
 0x203   : > { %v1327_v17 = vmul.f32 %v1325_v5, %v3129_v0  ;;  %v1359_v12 = vmul.f32 %v1357_v29, %v3129_v0  ;;  %v1391_v46 = vmul.f32 %v1389_v19, %v3129_v0  ;;  %v1423_v33 = vmul.f32 %v1421_v35, %v3129_v0 }
 0x204   : > { %v1484_v36 = vrot.slane %v1483_v13, 7  ;;  %v755_v5 = vsel %vm3883_vm7, %v753_v15, %v2848_v48  ;;  %v821_v29 = vrot.slane %v2859_v55, 7  ;;  %v855_v19 = vrot.slane %v2865_v60, 7 }
 0x205   : > { %vm3896_vm7 = vcmask 416768  }
 0x206   : > { %1116 = vrot.lane.b32.xlu0 %v1114_v20, %s3860_s21  ;;  %623 = vrot.lane.b32.xlu1 %v621_v1, %s3874_s5  ;;  %v3135_v40 = vpop.permute.xlu1 %1498  ;;  %v1688_v20 = vld [vmem:[#allocation6 + $0x45] ss:$8 sm:$0x3]  ;;  %s3922_s21 = smov 127   ;;  %s3929_s5 = smov 33  }
 0x207   : > { %v1704_v1 = vld [vmem:[#allocation6 + $0xa6] ss:$8 sm:$0x3] }
 0x20a   : > { %1150 = vrot.lane.b32.xlu0 %v1148_v30, %s3859_s14  ;;  %657 = vrot.lane.b32.xlu1 %v655_v61, %s3878_s24  ;;  %s3921_s14 = smov 30   ;;  %v1515_v38 = vpop.permute.xlu1 %1514  ;;  %v1720_v30 = vld [vmem:[#allocation6 + $0x46] ss:$8 sm:$0x3]  ;;  %s3931_s24 = smov 112  }
 0x20e   : > { %1184 = vrot.lane.b32.xlu0 %v1182_v24, %s3855_s13  ;;  %691 = vrot.lane.b32.xlu1 %v689_v18, %s3880_s12  ;;  %s3919_s13 = smov 2   ;;  %v3154_v61 = vpop.permute.xlu1 %1530  ;;  %v1453_v24 = vsel %vm3876_vm5, %v1452_v59, %v1451_v47  ;;  %v1485_v18 = vsel %vm3898_vm0, %v1484_v36, %v1483_v13  ;;  %vm1068_vm5 = vcmask 130048   ;;  %v1816_v13 = vld [vmem:[#allocation6 + $0x51] ss:$8 sm:$0x3]  ;;  %s3932_s12 = smov 35  }
 0x20f   : > { %v1455_v49 = vmul.f32 %v1453_v24, %v3129_v0  ;;  %v1487_v47 = vmul.f32 %v1485_v18, %v3129_v0  ;;  %v923_v24 = vrot.slane %v2879_v44, 7  ;;  %v1896_v36 = vld [vmem:[#allocation6 + $0xb4] ss:$8 sm:$0x3] }
 0x212   : > { %1218 = vrot.lane.b32.xlu0 %v1216_v63, %s3918_s8  ;;  %1626 = vrot.lane.b32.xlu1 %v1624_v7, %s3877_s20  ;;  %v1516_v63 = vrot.slane %v1515_v38, 7  ;;  %v3163_v7 = vpop.permute.xlu1 %1546 }
 0x214   : > { %v1517_v34 = vsel %vm1068_vm5, %v1516_v63, %v1515_v38  ;;  %v957_v63 = vrot.slane %v2882_v54, 7 }
 0x215   : > { %v1519_v51 = vmul.f32 %v1517_v34, %v3129_v0 }
 0x216   : > { %1251 = vrot.lane.b32.xlu0 %v1249_v50, %s3919_s13  ;;  %1642 = vrot.lane.b32.xlu1 %v1640_v4, %s3877_s20  ;;  %s3930_s20 = smov 113   ;;  %v719_v50 = vrot.slane %v2843_v45, 7  ;;  %v3171_v4 = vpop.permute.xlu1 %1562 }
 0x21a   : > { %1285 = vrot.lane.b32.xlu0 %v1283_v37, %s3920_s25  ;;  %1658 = vrot.lane.b32.xlu1 %v1656_v62, %s3921_s14  ;;  %v1800_v37 = vld [vmem:[#allocation6 + $0xb1] ss:$8 sm:$0x3]  ;;  %v721_v62 = vsel %vm3882_vm11, %v719_v50, %v2843_v45  ;;  %v757_v45 = vmul.f32 %v755_v5, %v3043_v56  ;;  %vm3935_vm11 = vcmask 809984   ;;  %v959_v50 = vsel %vm3888_vm8, %v957_v63, %v2882_v54 }
 0x21b   : > { %v925_v18 = vsel %vm3935_vm11, %v923_v24, %v2879_v44  ;;  %v961_v44 = vmul.f32 %v959_v50, %v3043_v56  ;;  %vm3939_vm11 = vcmask 900096   ;;  %v2008_v63 = vld [vmem:[#allocation6 + $0x57] ss:$8 sm:$0x3]  ;;  %vm3956_vm8 = vcmask 23552  }
 0x21e   : > { %1786 = vrot.lane.b32.xlu0 %v1784_v39, %s2527_s26  ;;  %1674 = vrot.lane.b32.xlu1 %v1672_v14, %s3921_s14  ;;  %v723_v39 = vmul.f32 %v721_v62, %v3043_v56  ;;  %v3181_v14 = vpop.permute.xlu1 %1578  ;;  %v1928_v62 = vld [vmem:[#allocation6 + $0xb5] ss:$8 sm:$0x3] }
 0x222   : > { %1329 = vrot.lane.b32.xlu0 %v1327_v17, %s3922_s21  ;;  %1690 = vrot.lane.b32.xlu1 %v1688_v20, %s3923_s7  ;;  %v1832_v17 = vld [vmem:[#allocation6 + $0xb2] ss:$8 sm:$0x3]  ;;  %v789_v20 = vsel %vm3884_vm13, %v787_v23, %v2854_v52  ;;  %v3193_v53 = vpop.permute.xlu1 %1594  ;;  %v1944_v23 = vld [vmem:[#allocation6 + $0x55] ss:$8 sm:$0x3] }
 0x223   : > { %v791_v48 = vmul.f32 %v789_v20, %v3043_v56  ;;  %v1059_v20 = vrot.slane %v2889_v16, 7  ;;  %vm1034_vm13 = vcmask 138240  }
 0x226   : > { %1361 = vrot.lane.b32.xlu0 %v1359_v12, %s3924_s6  ;;  %1706 = vrot.lane.b32.xlu1 %v1704_v1, %s3923_s7  ;;  %v1848_v12 = vld [vmem:[#allocation6 + $0x52] ss:$8 sm:$0x3]  ;;  %v823_v1 = vsel %vm3885_vm15, %v821_v29, %v2859_v55  ;;  %v3203_v38 = vpop.permute.xlu1 %1610  ;;  %v1880_v55 = vld [vmem:[#allocation6 + $0x53] ss:$8 sm:$0x3] }
 0x227   : > { %v825_v52 = vmul.f32 %v823_v1, %v3043_v56  ;;  %vm966_vm15 = vcmask 154624  }
 0x22a   : > { %1393 = vrot.lane.b32.xlu0 %v1391_v46, %s3925_s11  ;;  %1722 = vrot.lane.b32.xlu1 %v1720_v30, %s3926_s23  ;;  %v857_v46 = vsel %vm3886_vm2, %v855_v19, %v2865_v60  ;;  %v889_v30 = vrot.slane %v2870_v3, 7  ;;  %v1061_v19 = vsel %vm3890_vm6, %v1059_v20, %v2889_v16  ;;  %v1262_v20 = vrot.slane %v2946_v25, 7 }
 0x22b   : > { %v859_v59 = vmul.f32 %v857_v46, %v3043_v56  ;;  %vm3952_vm2 = vcmask 7168   ;;  %vm592_vm6 = vcmask 392192  }
 0x22e   : > { %1425 = vrot.lane.b32.xlu0 %v1423_v33, %s3927_s29  ;;  %1738 = vrot.lane.b32.xlu1 %v1736_v28, %s3926_s23  ;;  %v891_v28 = vsel %vm3887_vm4, %v889_v30, %v2870_v3  ;;  %v927_v3 = vmul.f32 %v925_v18, %v3043_v56  ;;  %v1127_v30 = vrot.slane %v2893_v22, 7  ;;  %vm3897_vm4 = vcmask 408576  }
 0x230   : > { %v1129_v24 = vsel %vm3892_vm14, %v1127_v30, %v2893_v22  ;;  %vm864_vm14 = vcmask 252928  }
 0x232   : > { %1457 = vrot.lane.b32.xlu0 %v1455_v49, %s3928_s28  ;;  %1754 = vrot.lane.b32.xlu1 %v1752_v27, %s3929_s5  ;;  %v893_v49 = vmul.f32 %v891_v28, %v3043_v56  ;;  %v1992_v28 = vld [vmem:[#allocation6 + $0xb7] ss:$8 sm:$0x3] }
 0x236   : > { %1489 = vrot.lane.b32.xlu0 %v1487_v47, %s3930_s20  ;;  %1770 = vrot.lane.b32.xlu1 %v1768_v42, %s3929_s5  ;;  %v1912_v42 = vld [vmem:[#allocation6 + $0x54] ss:$8 sm:$0x3] }
 0x23a   : > { %1521 = vrot.lane.b32.xlu0 %v1519_v51, %s3931_s24  ;;  %1802 = vrot.lane.b32.xlu1 %v1800_v37, %s2527_s26  ;;  %v991_v51 = vrot.slane %v2885_v57, 7 }
 0x23e   : > { %725 = vrot.lane.b32.xlu0 %v723_v39, %s3932_s12  ;;  %1818 = vrot.lane.b32.xlu1 %v1816_v13, %s3932_s12  ;;  %v993_v13 = vsel %vm3939_vm11, %v991_v51, %v2885_v57  ;;  %v1025_v39 = vrot.slane %v2887_v8, 7  ;;  %vm3949_vm11 = vcmask 1031168  }
 0x23f   : > { %v995_v54 = vmul.f32 %v993_v13, %v3043_v56  ;;  %v1229_v13 = vrot.slane %v2939_v32, 7 }
 0x242   : > { %759 = vrot.lane.b32.xlu0 %v757_v45, %s2527_s26  ;;  %1834 = vrot.lane.b32.xlu1 %v1832_v17, %s3932_s12  ;;  %s3933_s26 = smov 45   ;;  %s3940_s12 = smov 18   ;;  %v1027_v45 = vsel %vm3889_vm9, %v1025_v39, %v2887_v8  ;;  %v1063_v8 = vmul.f32 %v1061_v19, %v3043_v56  ;;  %vm932_vm9 = vcmask 236544  }
 0x243   : > { %v1029_v57 = vmul.f32 %v1027_v45, %v3043_v56  ;;  %v1231_v45 = vsel %vm3949_vm11, %v1229_v13, %v2939_v32  ;;  %v1548_v32 = vrot.slane %v3163_v7, 7  ;;  %vm1000_vm11 = vcmask 146432  }
 0x246   : > { %793 = vrot.lane.b32.xlu0 %v791_v48, %s3929_s5  ;;  %1850 = vrot.lane.b32.xlu1 %v1848_v12, %s3933_s26  ;;  %s3936_s5 = smov 29   ;;  %v1960_v12 = vld [vmem:[#allocation6 + $0xb6] ss:$8 sm:$0x3]  ;;  %v1093_v48 = vrot.slane %v2891_v21, 7 }
 0x248   : > { %v1095_v46 = vsel %vm3891_vm12, %v1093_v48, %v2891_v21  ;;  %v1131_v21 = vmul.f32 %v1129_v24, %v3043_v56  ;;  %v1233_v48 = vmul.f32 %v1231_v45, %v3043_v56  ;;  %vm898_vm12 = vcmask 244736  }
 0x249   : > { %v1097_v16 = vmul.f32 %v1095_v46, %v3043_v56 }
 0x24a   : > { %827 = vrot.lane.b32.xlu0 %v825_v52, %s3926_s23  ;;  %1866 = vrot.lane.b32.xlu1 %v1864_v31, %s3933_s26  ;;  %s3934_s23 = smov 46   ;;  %s3941_s26 = smov 48   ;;  %v1976_v52 = vld [vmem:[#allocation6 + $0x56] ss:$8 sm:$0x3] }
 0x24c   : > { %v3210_v35 = vpop.permute.xlu0 %708  ;;  %v3213_v33 = vpop.permute.xlu1 %504 }
 0x24e   : > { %861 = vrot.lane.b32.xlu0 %v859_v59, %s3923_s7  ;;  %1882 = vrot.lane.b32.xlu1 %v1880_v55, %s3934_s23  ;;  %s3938_s7 = smov 19  }
 0x250   : > { %v3220_v60 = vpop.permute.xlu0 %742  ;;  %v3223_v27 = vpop.permute.xlu1 %538 }
 0x252   : > { %895 = vrot.lane.b32.xlu0 %v893_v49, %s3921_s14  ;;  %1898 = vrot.lane.b32.xlu1 %v1896_v36, %s3934_s23  ;;  %s3937_s14 = smov 47   ;;  %s3942_s23 = smov 17   ;;  %v1161_v36 = vrot.slane %v2895_v26, 7 }
 0x254   : > { %v3231_v47 = vpop.permute.xlu0 %810  ;;  %v3233_v34 = vpop.permute.xlu1 %572 }
 0x256   : > { %929 = vrot.lane.b32.xlu0 %v927_v3, %s3936_s5  ;;  %1914 = vrot.lane.b32.xlu1 %v1912_v42, %s3937_s14  ;;  %s3943_s5 = smov 16   ;;  %v1163_v3 = vsel %vm3893_vm1, %v1161_v36, %v2895_v26  ;;  %v1195_v42 = vrot.slane %v2933_v11, 7  ;;  %vm660_vm1 = vcmask 375808  }
 0x257   : > { %v1165_v22 = vmul.f32 %v1163_v3, %v3043_v56  ;;  %v506_v3 = vrot.slane %v3213_v33, 1 }
 0x258   : > { %v3241_v37 = vpop.permute.xlu0 %844  ;;  %v3243_v15 = vpop.permute.xlu1 %606 }
 0x25a   : > { %963 = vrot.lane.b32.xlu0 %v961_v44, %s3938_s7  ;;  %1930 = vrot.lane.b32.xlu1 %v1928_v62, %s3937_s14  ;;  %s3944_s14 = smov 49   ;;  %s3945_s7 = smov 15   ;;  %v2024_v44 = vld [vmem:[#allocation6 + $0xc0] ss:$8 sm:$0x3]  ;;  %v1197_v62 = vsel %vm3894_vm3, %v1195_v42, %v2933_v11  ;;  %v1580_v11 = vrot.slane %v3181_v14, 7 }
 0x25b   : > { %v1199_v26 = vmul.f32 %v1197_v62, %v3043_v56  ;;  %vm830_vm3 = vcmask 261120  }
 0x25c   : > { %v3251_v5 = vpop.permute.xlu0 %878  ;;  %v3253_v17 = vpop.permute.xlu1 %640  ;;  %v1581_v30 = vsel %vm1000_vm11, %v1580_v11, %v3181_v14  ;;  %v1549_v14 = vsel %vm1034_vm13, %v1548_v32, %v3163_v7  ;;  %v3348_v7 = vld [vmem:[#allocation2 + $0x2] ss:$2 sm:$0x7] }
 0x25e   : > { %997 = vrot.lane.b32.xlu0 %v995_v54, %s3940_s12  ;;  %1946 = vrot.lane.b32.xlu1 %v1944_v23, %s3941_s26  ;;  %s3946_s12 = smov 14   ;;  %v2040_v23 = vld [vmem:[#allocation6 + $0x60] ss:$8 sm:$0x3] }
 0x260   : > { %v3261_v29 = vpop.permute.xlu0 %912  ;;  %v3264_v1 = vpop.permute.xlu1 %674 }
 0x262   : > { %1031 = vrot.lane.b32.xlu0 %v1029_v57, %s3942_s23  ;;  %1962 = vrot.lane.b32.xlu1 %v1960_v12, %s3941_s26  ;;  %s3947_s26 = smov 50   ;;  %s3948_s23 = smov 13  }
 0x264   : > { %v3271_v31 = vpop.permute.xlu0 %946  ;;  %v3276_v55 = vpop.permute.xlu1 %776 }
 0x266   : > { %1065 = vrot.lane.b32.xlu0 %v1063_v8, %s3943_s5  ;;  %1978 = vrot.lane.b32.xlu1 %v1976_v52, %s3944_s14  ;;  %v2056_v8 = vld [vmem:[#allocation6 + $0xc1] ss:$8 sm:$0x3]  ;;  %v1264_v52 = vsel %vm3895_vm10, %v1262_v20, %v2946_v25  ;;  %vm694_vm10 = vcmask 367616  }
 0x267   : > { %v1266_v25 = vmul.f32 %v1264_v52, %v3043_v56 }
 0x268   : > { %v3281_v59 = vpop.permute.xlu0 %980  ;;  %v486_v49 = vpop.permute.xlu1 %485 }
 0x269   : > { %v487_v12 = vrot.slane %v486_v49, 1 }
 0x26a   : > { %1099 = vrot.lane.b32.xlu0 %v1097_v16, %s3945_s7  ;;  %1994 = vrot.lane.b32.xlu1 %v1992_v28, %s3944_s14  ;;  %s3950_s14 = smov 51   ;;  %v1612_v16 = vrot.slane %v3203_v38, 7  ;;  %v473_v28 = vld [vmem:[#allocation6 + $0xc2] ss:$8 sm:$0x3]  ;;  %s3966_s7 = smov 83  }
 0x26b   : > { %v489_v24 = vsel %vm3896_vm7, %v486_v49, %v487_v12 }
 0x26c   : > { %v3289_v18 = vpop.permute.xlu0 %1014  ;;  %v522_v50 = vpop.permute.xlu1 %521  ;;  %v1613_v49 = vsel %vm966_vm15, %v1612_v16, %v3203_v38  ;;  %v507_v38 = vsel %vm3896_vm7, %v3213_v33, %v506_v3  ;;  %v540_v33 = vrot.slane %v3223_v27, 1  ;;  %vm796_vm7 = vcmask 269312  }
 0x26d   : > { %v523_v56 = vrot.slane %v522_v50, 1 }
 0x26e   : > { %1133 = vrot.lane.b32.xlu0 %v1131_v21, %s3946_s12  ;;  %2010 = vrot.lane.b32.xlu1 %v2008_v63, %s3947_s26  ;;  %v1307_v21 = vrot.slane %v2963_v6, 7  ;;  %v1583_v63 = vmul.f32 %v1581_v30, %v3129_v0  ;;  %s3967_s12 = smov 82  }
 0x26f   : > { %v525_v11 = vsel %vm3897_vm4, %v522_v50, %v523_v56  ;;  %v574_v56 = vrot.slane %v3233_v34, 1 }
 0x270   : > { %v3297_v51 = vpop.permute.xlu0 %1048  ;;  %v3302_v39 = vpop.permute.xlu1 %555  ;;  %v1308_v13 = vsel %vm3952_vm2, %v1307_v21, %v2963_v6  ;;  %vm3955_vm2 = vcmask 15360  }
 0x271   : > { %v1310_v12 = vmul.f32 %v1308_v13, %v3348_v7  ;;  %v557_v50 = vrot.slane %v3302_v39, 1 }
 0x272   : > { %1167 = vrot.lane.b32.xlu0 %v1165_v22, %s3948_s23  ;;  %2026 = vrot.lane.b32.xlu1 %v2024_v44, %s3947_s26  ;;  %v491_v22 = vadd.f32 %v489_v24, %v473_v28  ;;  %v1551_v44 = vmul.f32 %v1549_v14, %v3129_v0  ;;  %v541_v24 = vsel %vm3897_vm4, %v3223_v27, %v540_v33  ;;  %v1436_v27 = vrot.slane %v3093_v58, 7  ;;  %s3968_s26 = smov 81   ;;  %s3969_s23 = smov 80  }
 0x273   : > { %vm762_vm4 = vcmask 277504  }
 0x274   : > { %v3307_v54 = vpop.permute.xlu0 %1082  ;;  %v3312_v57 = vpop.permute.xlu1 %589  ;;  %v509_v20 = vadd.f32 %v507_v38, %v491_v22 }
 0x276   : > { %1201 = vrot.lane.b32.xlu0 %v1199_v26, %s3918_s8  ;;  %2042 = vrot.lane.b32.xlu1 %v2040_v23, %s3950_s14  ;;  %v1340_v26 = vrot.slane %v2998_v2, 7  ;;  %v1615_v23 = vmul.f32 %v1613_v49, %v3129_v0  ;;  %s3954_s8 = smov 109   ;;  %v527_v32 = vadd.f32 %v525_v11, %v509_v20  ;;  %v1468_v20 = vrot.slane %v3117_v10, 7 }
 0x278   : > { %v3318_v19 = vpop.permute.xlu0 %1116  ;;  %v3323_v46 = vpop.permute.xlu1 %623  ;;  %v543_v21 = vadd.f32 %v541_v24, %v527_v32 }
 0x27a   : > { %1235 = vrot.lane.b32.xlu0 %v1233_v48, %s3919_s13  ;;  %2058 = vrot.lane.b32.xlu1 %v2056_v8, %s3950_s14  ;;  %s3951_s13 = smov 110   ;;  %v1341_v48 = vsel %vm3955_vm2, %v1340_v26, %v2998_v2  ;;  %v1372_v8 = vrot.slane %v3032_v9, 7  ;;  %v1404_v2 = vrot.slane %v3065_v41, 7  ;;  %vm558_vm2 = vcmask 400384   ;;  %s3971_s14 = smov 79  }
 0x27b   : > { %v1343_v30 = vmul.f32 %v1341_v48, %v3348_v7  ;;  %v575_v11 = vsel %vm558_vm2, %v3233_v34, %v574_v56  ;;  %v1500_v34 = vrot.slane %v3135_v40, 7 }
 0x27c   : > { %v3332_v36 = vpop.permute.xlu0 %1150  ;;  %v3339_v42 = vpop.permute.xlu1 %657  ;;  %v1373_v28 = vsel %vm3956_vm8, %v1372_v8, %v3032_v9  ;;  %vm3957_vm8 = vcmask 105472  }
 0x27d   : > { %v1375_v3 = vmul.f32 %v1373_v28, %v3348_v7  ;;  %v1405_v22 = vsel %vm3957_vm8, %v1404_v2, %v3065_v41  ;;  %vm3959_vm8 = vcmask 113664   ;;  %v608_v28 = vrot.slane %v3243_v15, 1 }
 0x27e   : > { %1268 = vrot.lane.b32.xlu0 %v1266_v25, %s3920_s25  ;;  %1585 = vrot.lane.b32.xlu1 %v1583_v63, %s3951_s13  ;;  %s3953_s25 = smov 111   ;;  %v559_v63 = vsel %vm558_vm2, %v3302_v39, %v557_v50  ;;  %v591_v39 = vrot.slane %v3312_v57, 1  ;;  %v1437_v41 = vsel %vm3959_vm8, %v1436_v27, %v3093_v58  ;;  %vm626_vm8 = vcmask 384000  }
 0x27f   : > { %v561_v26 = vadd.f32 %v559_v63, %v543_v21  ;;  %v1439_v32 = vmul.f32 %v1437_v41, %v3348_v7  ;;  %v1532_v63 = vrot.slane %v3154_v61, 7 }
 0x280   : > { %v3346_v62 = vpop.permute.xlu0 %1184  ;;  %v3356_v45 = vpop.permute.xlu1 %691  ;;  %v593_v33 = vsel %vm592_vm6, %v3312_v57, %v591_v39  ;;  %v625_v57 = vrot.slane %v3323_v46, 1 }
 0x281   : > { %v577_v48 = vadd.f32 %v575_v11, %v561_v26  ;;  %v1533_v39 = vsel %vm1034_vm13, %v1532_v63, %v3154_v61 }
 0x282   : > { %1553 = vrot.lane.b32.xlu0 %v1551_v44, %s3953_s25  ;;  %1617 = vrot.lane.b32.xlu1 %v1615_v23, %s3954_s8  ;;  %v1407_v23 = vmul.f32 %v1405_v22, %v3348_v7  ;;  %v627_v56 = vsel %vm626_vm8, %v3323_v46, %v625_v57  ;;  %v659_v46 = vrot.slane %v3339_v42, 1 }
 0x284   : > { %v3362_v6 = vpop.permute.xlu0 %1218  ;;  %v3368_v52 = vpop.permute.xlu1 %1626 }
 0x285   : > { %v1628_v57 = vrot.slane %v3368_v52, 7 }
 0x286   : > { %1312 = vrot.lane.b32.xlu0 %v1310_v12, %s3922_s21  ;;  %s3958_s21 = smov 99  }
 0x288   : > { %v3373_v16 = vpop.permute.xlu0 %1251  ;;  %v1643_v25 = vpop.permute.xlu1 %1642 }
 0x289   : > { %v1644_v14 = vrot.slane %v1643_v25, 7 }
 0x28a   : > { %1345 = vrot.lane.b32.xlu0 %v1343_v30, %s3924_s6  ;;  %v1469_v30 = vsel %vm3898_vm0, %v1468_v20, %v3117_v10  ;;  %s3960_s6 = smov 98   ;;  %v1501_v10 = vsel %vm1068_vm5, %v1500_v34, %v3135_v40  ;;  %v661_v34 = vsel %vm660_vm1, %v3339_v42, %v659_v46  ;;  %v693_v42 = vrot.slane %v3356_v45, 1 }
 0x28b   : > { %v1645_v49 = vsel %vm932_vm9, %v1644_v14, %v1643_v25  ;;  %v595_v25 = vadd.f32 %v593_v33, %v577_v48  ;;  %v1471_v21 = vmul.f32 %v1469_v30, %v3348_v7  ;;  %vm728_vm0 = vcmask 285696  }
 0x28c   : > { %v3385_v9 = vpop.permute.xlu0 %1285  ;;  %v1647_v44 = vmul.f32 %v1645_v49, %v3129_v0  ;;  %v3392_v13 = vpop.permute.xlu1 %1658 }
 0x28e   : > { %1377 = vrot.lane.b32.xlu0 %v1375_v3, %s3925_s11  ;;  %1649 = vrot.lane.b32.xlu1 %v1647_v44, %s3958_s21  ;;  %v609_v3 = vsel %vm592_vm6, %v3243_v15, %v608_v28  ;;  %v1503_v44 = vmul.f32 %v1501_v10, %v3348_v7  ;;  %v1564_v15 = vrot.slane %v3171_v4, 7  ;;  %s3964_s11 = smov 94  }
 0x28f   : > { %v611_v22 = vadd.f32 %v609_v3, %v595_v25 }
 0x290   : > { %v3398_v38 = vpop.permute.xlu0 %1786  ;;  %v1675_v12 = vpop.permute.xlu1 %1674  ;;  %v1565_v61 = vsel %vm1000_vm11, %v1564_v15, %v3171_v4  ;;  %v710_v15 = vrot.slane %v3210_v35, 1 }
 0x291   : > { %v1676_v8 = vrot.slane %v1675_v12, 7  ;;  %v629_v11 = vadd.f32 %v627_v56, %v611_v22  ;;  %v1567_v28 = vmul.f32 %v1565_v61, %v3348_v7  ;;  %v1629_v22 = vsel %vm932_vm9, %v1628_v57, %v3368_v52 }
 0x292   : > { %1409 = vrot.lane.b32.xlu0 %v1407_v23, %s3927_s29  ;;  %v642_v23 = vrot.slane %v3253_v17, 1  ;;  %s3963_s29 = smov 95   ;;  %v778_v57 = vrot.slane %v3276_v55, 1 }
 0x293   : > { %v1677_v50 = vsel %vm898_vm12, %v1676_v8, %v1675_v12  ;;  %v1535_v12 = vmul.f32 %v1533_v39, %v3348_v7  ;;  %v1596_v8 = vrot.slane %v3193_v53, 7  ;;  %v695_v39 = vsel %vm694_vm10, %v3356_v45, %v693_v42 }
 0x294   : > { %v3410_v58 = vpop.permute.xlu0 %1329  ;;  %v1679_v2 = vmul.f32 %v1677_v50, %v3129_v0  ;;  %v3417_v24 = vpop.permute.xlu1 %1690  ;;  %v643_v33 = vsel %vm626_vm8, %v3253_v17, %v642_v23  ;;  %v676_v17 = vrot.slane %v3264_v1, 1  ;;  %v1631_v23 = vmul.f32 %v1629_v22, %v3348_v7 }
 0x295   : > { %v645_v50 = vadd.f32 %v643_v33, %v629_v11  ;;  %v1597_v25 = vsel %vm966_vm15, %v1596_v8, %v3193_v53  ;;  %v1692_v11 = vrot.slane %v3417_v24, 7  ;;  %v711_v45 = vsel %vm694_vm10, %v3210_v35, %v710_v15 }
 0x296   : > { %1441 = vrot.lane.b32.xlu0 %v1439_v32, %s3928_s28  ;;  %1681 = vrot.lane.b32.xlu1 %v1679_v2, %s3960_s6  ;;  %v1599_v3 = vmul.f32 %v1597_v25, %v3348_v7  ;;  %v677_v53 = vsel %vm660_vm1, %v3264_v1, %v676_v17  ;;  %v744_v33 = vrot.slane %v3220_v60, 1  ;;  %v779_v15 = vsel %vm762_vm4, %v3276_v55, %v778_v57  ;;  %s3965_s28 = smov 93  }
 0x297   : > { %v663_v63 = vadd.f32 %v661_v34, %v645_v50  ;;  %v846_v55 = vrot.slane %v3241_v37, 1 }
 0x298   : > { %v3423_v14 = vpop.permute.xlu0 %1361  ;;  %v1707_v49 = vpop.permute.xlu1 %1706  ;;  %v745_v42 = vsel %vm728_vm0, %v3220_v60, %v744_v33 }
 0x299   : > { %v1708_v27 = vrot.slane %v1707_v49, 7 }
 0x29a   : > { %1473 = vrot.lane.b32.xlu0 %v1471_v21, %s3930_s20  ;;  %s3961_s20 = smov 97  }
 0x29b   : > { %v1709_v26 = vsel %vm864_vm14, %v1708_v27, %v1707_v49  ;;  %v1660_v27 = vrot.slane %v3392_v13, 7 }
 0x29c   : > { %v3435_v40 = vpop.permute.xlu0 %1393  ;;  %v1711_v41 = vmul.f32 %v1709_v26, %v3129_v0  ;;  %v3442_v20 = vpop.permute.xlu1 %1722 }
 0x29d   : > { %v1661_v52 = vsel %vm898_vm12, %v1660_v27, %v3392_v13  ;;  %v1724_v34 = vrot.slane %v3442_v20, 7 }
 0x29e   : > { %1505 = vrot.lane.b32.xlu0 %v1503_v44, %s3931_s24  ;;  %1713 = vrot.lane.b32.xlu1 %v1711_v41, %s3961_s20  ;;  %s3962_s24 = smov 96   ;;  %v679_v44 = vadd.f32 %v677_v53, %v663_v63 }
 0x2a0   : > { %v3448_v48 = vpop.permute.xlu0 %1425  ;;  %v1739_v32 = vpop.permute.xlu1 %1738  ;;  %v697_v61 = vadd.f32 %v695_v39, %v679_v44 }
 0x2a1   : > { %v1740_v30 = vrot.slane %v1739_v32, 7 }
 0x2a2   : > { %1537 = vrot.lane.b32.xlu0 %v1535_v12, %s3953_s25  ;;  %v713_v17 = vadd.f32 %v711_v45, %v697_v61  ;;  %s3984_s25 = smov 77  }
 0x2a3   : > { %v1741_v2 = vsel %vm830_vm3, %v1740_v30, %v1739_v32  ;;  %v1663_v32 = vmul.f32 %v1661_v52, %v3348_v7  ;;  %v1693_v30 = vsel %vm864_vm14, %v1692_v11, %v3417_v24  ;;  %v1788_v52 = vrot.slane %v3398_v38, 7 }
 0x2a4   : > { %v3460_v4 = vpop.permute.xlu0 %1457  ;;  %v1743_v21 = vmul.f32 %v1741_v2, %v3129_v0  ;;  %v3467_v10 = vpop.permute.xlu1 %1754 }
 0x2a5   : > { %v1756_v53 = vrot.slane %v3467_v10, 7 }
 0x2a6   : > { %1569 = vrot.lane.b32.xlu0 %v1567_v28, %s3951_s13  ;;  %1745 = vrot.lane.b32.xlu1 %v1743_v21, %s3962_s24  ;;  %v1695_v21 = vmul.f32 %v1693_v30, %v3348_v7  ;;  %s3977_s13 = smov 78  }
 0x2a7   : > { %v1757_v11 = vsel %vm796_vm7, %v1756_v53, %v3467_v10 }
 0x2a8   : > { %v3473_v49 = vpop.permute.xlu0 %1489  ;;  %v1771_v56 = vpop.permute.xlu1 %1770  ;;  %v1759_v33 = vmul.f32 %v1757_v11, %v3348_v7 }
 0x2a9   : > { %v1772_v26 = vrot.slane %v1771_v56, 7 }
 0x2aa   : > { %1601 = vrot.lane.b32.xlu0 %v1599_v3, %s3954_s8  ;;  %v1725_v3 = vsel %vm830_vm3, %v1724_v34, %v3442_v20  ;;  %s2218_s8 = sshll.u32 %s2576_s19, 10  ;;  %s2105_s19 = scalar_lea.sflag [#allocation5], %s2677_s30 }
 0x2ab   : > { %v1773_v1 = vsel %vm796_vm7, %v1772_v26, %v1771_v56  ;;  %v812_v26 = vrot.slane %v3231_v47, 1  ;;  %v1727_v60 = vmul.f32 %v1725_v3, %v3348_v7 }
 0x2ac   : > { %v3486_v41 = vpop.permute.xlu0 %1521  ;;  %v1775_v46 = vmul.f32 %v1773_v1, %v3129_v0  ;;  %v1803_v12 = vpop.permute.xlu1 %1802 }
 0x2ad   : > { %v1804_v8 = vrot.slane %v1803_v12, 7  ;;  %v813_v10 = vsel %vm796_vm7, %v3231_v47, %v812_v26 }
 0x2ae   : > { %1633 = vrot.lane.b32.xlu0 %v1631_v23, %s3958_s21  ;;  %1777 = vrot.lane.b32.xlu1 %v1775_v46, %s3963_s29  ;;  %s4037_s21 = sshll.u32 %s2677_s30, 6 }
 0x2af   : > { %v1805_v13 = vsel %vm762_vm4, %v1804_v8, %v1803_v12 }
 0x2b0   : > { %v726_v50 = vpop.permute.xlu0 %725  ;;  %v1807_v28 = vmul.f32 %v1805_v13, %v3129_v0  ;;  %v1819_v2 = vpop.permute.xlu1 %1818 }
 0x2b1   : > { %v727_v25 = vrot.slane %v726_v50, 1  ;;  %v1820_v30 = vrot.slane %v1819_v2, 7 }
 0x2b2   : > { %1665 = vrot.lane.b32.xlu0 %v1663_v32, %s3960_s6  ;;  %1809 = vrot.lane.b32.xlu1 %v1807_v28, %s3964_s11  ;;  %s230_s6 = scalar_lea.vmem [#allocation8], %s4037_s21 }
 0x2b3   : > { %v729_v35 = vsel %vm728_vm0, %v726_v50, %v727_v25  ;;  %v1789_v50 = vsel %vm762_vm4, %v1788_v52, %v3398_v38 }
 0x2b4   : > { %v731_v63 = vadd.f32 %v729_v35, %v713_v17  ;;  %v760_v24 = vpop.permute.xlu0 %759  ;;  %v1835_v22 = vpop.permute.xlu1 %1834  ;;  %v847_v35 = vsel %vm830_vm3, %v3241_v37, %v846_v55 }
 0x2b5   : > { %v761_v27 = vrot.slane %v760_v24, 1  ;;  %v1836_v44 = vrot.slane %v1835_v22, 7 }
 0x2b6   : > { %v747_v56 = vadd.f32 %v745_v42, %v731_v63  ;;  %1697 = vrot.lane.b32.xlu0 %v1695_v21, %s3961_s20  ;;  %v880_v21 = vrot.slane %v3251_v5, 1  ;;  %v1791_v63 = vmul.f32 %v1789_v50, %v3348_v7  ;;  %v1821_v42 = vsel %vm728_vm0, %v1820_v30, %v1819_v2  ;;  %s2118_s20 = sshll.u32 %s230_s6, 4  ;;  %s3718_s20 = int_to_ptr.vmem [resolvable:$true] %s2118_s20 }
 0x2b7   : > { %v763_v39 = vsel %vm762_vm4, %v760_v24, %v761_v27  ;;  %v1837_v23 = vsel %vm728_vm0, %v1836_v44, %v1835_v22  ;;  %v914_v44 = vrot.slane %v3261_v29, 1  ;;  %v1823_v26 = vmul.f32 %v1821_v42, %v3348_v7 }
 0x2b8   : > { %v765_v20 = vadd.f32 %v763_v39, %v747_v56  ;;  %v794_v1 = vpop.permute.xlu0 %793  ;;  %v1839_v46 = vmul.f32 %v1837_v23, %v3129_v0  ;;  %v1851_v12 = vpop.permute.xlu1 %1850  ;;  %v881_v2 = vsel %vm864_vm14, %v3251_v5, %v880_v21  ;;  %vm3970_vm0 = vcmask 121856  }
 0x2b9   : > { %v795_v61 = vrot.slane %v794_v1, 1  ;;  %v1852_v3 = vrot.slane %v1851_v12, 7  ;;  %vm3981_vm4 = vcmask 416768  }
 0x2ba   : > { %v781_v8 = vadd.f32 %v779_v15, %v765_v20  ;;  %1729 = vrot.lane.b32.xlu0 %v1727_v60, %s3962_s24  ;;  %1841 = vrot.lane.b32.xlu1 %v1839_v46, %s3965_s28 }
 0x2bb   : > { %v797_v45 = vsel %vm796_vm7, %v794_v1, %v795_v61  ;;  %v1853_v60 = vsel %vm694_vm10, %v1852_v3, %v1851_v12  ;;  %v915_v61 = vsel %vm898_vm12, %v3261_v29, %v914_v44  ;;  %v948_v12 = vrot.slane %v3271_v31, 1  ;;  %vm3985_vm7 = vmmov %vm3981_vm4 }
 0x2bc   : > { %v799_v32 = vadd.f32 %v797_v45, %v781_v8  ;;  %v828_v13 = vpop.permute.xlu0 %827  ;;  %v1867_v34 = vpop.permute.xlu1 %1866  ;;  %v1855_v8 = vmul.f32 %v1853_v60, %v3348_v7 }
 0x2bd   : > { %v829_v28 = vrot.slane %v828_v13, 1  ;;  %v1868_v17 = vrot.slane %v1867_v34, 7 }
 0x2be   : > { %v815_v25 = vadd.f32 %v813_v10, %v799_v32  ;;  %1761 = vrot.lane.b32.xlu0 %v1759_v33, %s3963_s29 }
 0x2bf   : > { %v831_v57 = vsel %vm830_vm3, %v828_v13, %v829_v28  ;;  %v1869_v47 = vsel %vm694_vm10, %v1868_v17, %v1867_v34  ;;  %v949_v17 = vsel %vm932_vm9, %v3271_v31, %v948_v12  ;;  %vm3973_vm10 = vcmask 113664  }
 0x2c0   : > { %v833_v24 = vadd.f32 %v831_v57, %v815_v25  ;;  %v862_v38 = vpop.permute.xlu0 %861  ;;  %v1871_v53 = vmul.f32 %v1869_v47, %v3129_v0  ;;  %v1883_v22 = vpop.permute.xlu1 %1882  ;;  %vm3980_vm3 = vcmask 23552  }
 0x2c1   : > { %v863_v27 = vrot.slane %v862_v38, 1  ;;  %v1884_v23 = vrot.slane %v1883_v22, 7 }
 0x2c2   : > { %v849_v56 = vadd.f32 %v847_v35, %v833_v24  ;;  %1793 = vrot.lane.b32.xlu0 %v1791_v63, %s3964_s11  ;;  %1873 = vrot.lane.b32.xlu1 %v1871_v53, %s3966_s7  ;;  %v982_v35 = vrot.slane %v3281_v59, 1  ;;  %s3712_s11 = scalar_lea.hbm %s3766_s4, %s2218_s8 }
 0x2c3   : > { %v865_v37 = vsel %vm864_vm14, %v862_v38, %v863_v27  ;;  %v1885_v33 = vsel %vm660_vm1, %v1884_v23, %v1883_v22  ;;  %v1016_v27 = vrot.slane %v3289_v18, 1  ;;  %vm3976_vm14 = vcmask 105472  }
 0x2c4   : > { %v867_v39 = vadd.f32 %v865_v37, %v849_v56  ;;  %v896_v15 = vpop.permute.xlu0 %895  ;;  %v1899_v20 = vpop.permute.xlu1 %1898  ;;  %v1887_v34 = vmul.f32 %v1885_v33, %v3348_v7  ;;  %v983_v31 = vsel %vm966_vm15, %v3281_v59, %v982_v35 }
 0x2c5   : > { %v897_v1 = vrot.slane %v896_v15, 1  ;;  %v1900_v11 = vrot.slane %v1899_v20, 7  ;;  %v1017_v59 = vsel %vm1000_vm11, %v3289_v18, %v1016_v27  ;;  %v1084_v18 = vrot.slane %v3307_v54, 1 }
 0x2c6   : > { %v883_v52 = vadd.f32 %v881_v2, %v867_v39  ;;  %1825 = vrot.lane.b32.xlu0 %v1823_v26, %s3965_s28  ;;  %s2404_s28 = scalar_lea.vmem %s3718_s20, 1024 }
 0x2c7   : > { %v899_v46 = vsel %vm898_vm12, %v896_v15, %v897_v1  ;;  %v1901_v55 = vsel %vm660_vm1, %v1900_v11, %v1899_v20  ;;  %v1050_v20 = vrot.slane %v3297_v51, 1  ;;  %vm3974_vm12 = vcmask 408576   ;;  %vm3979_vm1 = vmmov %vm3976_vm14  ;;  %p2405_p3 = scmp.ne.s32.totalorder %s3718_s20, %s2404_s28 }
 0x2c8   : > { %v901_v45 = vadd.f32 %v899_v46, %v883_v52  ;;  %v930_v5 = vpop.permute.xlu0 %929  ;;  %v1903_v32 = vmul.f32 %v1901_v55, %v3129_v0  ;;  %v1915_v13 = vpop.permute.xlu1 %1914 }
 0x2c9   : > { %v931_v10 = vrot.slane %v930_v5, 1  ;;  %v1916_v30 = vrot.slane %v1915_v13, 7  ;;  %v1051_v12 = vsel %vm1034_vm13, %v3297_v51, %v1050_v20  ;;  %v1118_v51 = vrot.slane %v3318_v19, 1  ;;  %p2406_p7 = pnand %p2405_p3, %p4046_p11 }
 0x2ca   : > { %v917_v50 = vadd.f32 %v915_v61, %v901_v45  ;;  %1857 = vrot.lane.b32.xlu0 %v1855_v8, %s3966_s7  ;;  %1905 = vrot.lane.b32.xlu1 %v1903_v32, %s3967_s12  ;;  %s2528_s7 = smov [#allocation8]  }
 0x2cb   : > { %v933_v29 = vsel %vm932_vm9, %v930_v5, %v931_v10  ;;  %v1917_v57 = vsel %vm626_vm8, %v1916_v30, %v1915_v13  ;;  %vm3972_vm9 = vmmov %vm3970_vm0  ;;  %p2407_p9 = pneg %p2406_p7 }
 0x2cc   : > { %v935_v28 = vadd.f32 %v933_v29, %v917_v50  ;;  %v964_v25 = vpop.permute.xlu0 %963  ;;  %v1931_v21 = vpop.permute.xlu1 %1930  ;;  %v1919_v42 = vmul.f32 %v1917_v57, %v3348_v7 }
 0x2cd   : > { %v965_v63 = vrot.slane %v964_v25, 1  ;;  %v1932_v24 = vrot.slane %v1931_v21, 7 }
 0x2ce   : > { %v951_v47 = vadd.f32 %v949_v17, %v935_v28  ;;  %1889 = vrot.lane.b32.xlu0 %v1887_v34, %s3967_s12  ;;  %s2408_s12 = sshll.u32 %s2528_s7, 4  ;;  %s2409_s12 = int_to_ptr.vmem [resolvable:$false] %s2408_s12 }
 0x2cf   : > { %v967_v38 = vsel %vm966_vm15, %v964_v25, %v965_v63  ;;  %v1933_v3 = vsel %vm626_vm8, %v1932_v24, %v1931_v21  ;;  %v1085_v25 = vsel %vm1068_vm5, %v3307_v54, %v1084_v18  ;;  %v1152_v54 = vrot.slane %v3332_v36, 1  ;;  %vm3978_vm15 = vmmov %vm3974_vm12  ;;  %p2411_p10 = scmp.lt.s32.totalorder %s3718_s20, %s2409_s12 }
 0x2d0   : > { %v969_v53 = vadd.f32 %v967_v38, %v951_v47  ;;  %v998_v22 = vpop.permute.xlu0 %997  ;;  %v1935_v56 = vmul.f32 %v1933_v3, %v3129_v0  ;;  %v1947_v37 = vpop.permute.xlu1 %1946  ;;  %v1119_v3 = vsel %vm3972_vm9, %v3318_v19, %v1118_v51  ;;  %v1186_v19 = vrot.slane %v3346_v62, 1 }
 0x2d1   : > { %v999_v44 = vrot.slane %v998_v22, 1  ;;  %v1948_v39 = vrot.slane %v1947_v37, 7 }
 0x2d2   : > { %v985_v26 = vadd.f32 %v983_v31, %v969_v53  ;;  %1921 = vrot.lane.b32.xlu0 %v1919_v42, %s3968_s26  ;;  %1937 = vrot.lane.b32.xlu1 %v1935_v56, %s3968_s26  ;;  %s2410_s26 = scalar_lea.vmem %s2409_s12, 2048 }
 0x2d3   : > { %v1001_v15 = vsel %vm1000_vm11, %v998_v22, %v999_v44  ;;  %v1949_v2 = vsel %vm592_vm6, %v1948_v39, %v1947_v37  ;;  %p2412_p12 = scmp.lt.s32.totalorder %s2410_s26, %s2404_s28 }
 0x2d4   : > { %v1003_v60 = vadd.f32 %v1001_v15, %v985_v26  ;;  %v1032_v23 = vpop.permute.xlu0 %1031  ;;  %v1951_v1 = vmul.f32 %v1949_v2, %v3348_v7  ;;  %v1963_v52 = vpop.permute.xlu1 %1962 }
 0x2d5   : > { %v1033_v11 = vrot.slane %v1032_v23, 1  ;;  %v1964_v61 = vrot.slane %v1963_v52, 7  ;;  %p2413_p13 = por %p2412_p12, %p2411_p10 }
 0x2d6   : > { %v1019_v46 = vadd.f32 %v1017_v59, %v1003_v60  ;;  %1953 = vrot.lane.b32.xlu0 %v1951_v1, %s3969_s23 }
 0x2d7   : > { %v1035_v8 = vsel %vm1034_vm13, %v1032_v23, %v1033_v11  ;;  %v1965_v55 = vsel %vm592_vm6, %v1964_v61, %v1963_v52  ;;  %vm3975_vm13 = vmmov %vm3973_vm10  ;;  %v2349_v61 = vld [vmem:[#allocation2 + $0x3] ss:$2 sm:$0x7]  ;;  %vm3983_vm6 = vcmask 15360   ;;  %p2414_p0 = pnand %p2413_p13, %p2407_p9 }
 0x2d8   : > { %v1037_v45 = vadd.f32 %v1035_v8, %v1019_v46  ;;  %v1066_v5 = vpop.permute.xlu0 %1065  ;;  %v1967_v33 = vmul.f32 %v1965_v55, %v3129_v0  ;;  %v1979_v32 = vpop.permute.xlu1 %1978  ;;  %v1153_v15 = vsel %vm3975_vm13, %v3332_v36, %v1152_v54  ;;  %v1187_v46 = vsel %vm3979_vm1, %v3346_v62, %v1186_v19  ;;  %vm3986_vm11 = vmmov %vm3983_vm6 }
 0x2d9   : > { %v1067_v13 = vrot.slane %v1066_v5, 1  ;;  %v1980_v50 = vrot.slane %v1979_v32, 7  ;;  %v1220_v36 = vrot.slane %v3362_v6, 1  ;;  %v1253_v62 = vrot.slane %v3373_v16, 1 }
 0x2da   : > { %v1053_v10 = vadd.f32 %v1051_v12, %v1037_v45  ;;  %1969 = vrot.lane.b32.xlu1 %v1967_v33, %s3969_s23  ;;  %vm3993_vm13 = vcmask 1022976  }
 0x2db   : > { %v1069_v30 = vsel %vm1068_vm5, %v1066_v5, %v1067_v13  ;;  %v1981_v29 = vsel %vm558_vm2, %v1980_v50, %v1979_v32  ;;  %vm3982_vm5 = vmmov %vm3980_vm3 }
 0x2dc   : > { %v1071_v34 = vadd.f32 %v1069_v30, %v1053_v10  ;;  %v1100_v28 = vpop.permute.xlu0 %1099  ;;  %v1983_v17 = vmul.f32 %v1981_v29, %v3348_v7  ;;  %v1995_v35 = vpop.permute.xlu1 %1994  ;;  %v1221_v10 = vsel %vm3982_vm5, %v3362_v6, %v1220_v36  ;;  %v1287_v6 = vrot.slane %v3385_v9, 1 }
 0x2dd   : > { %v1101_v57 = vrot.slane %v1100_v28, 1  ;;  %v1996_v63 = vrot.slane %v1995_v35, 7  ;;  %vm3999_vm5 = vcmask 924672  }
 0x2de   : > { %v1087_v21 = vadd.f32 %v1085_v25, %v1071_v34  ;;  %1985 = vrot.lane.b32.xlu0 %v1983_v17, %s3971_s14 }
 0x2df   : > { %v1103_v47 = vsel %vm3970_vm0, %v1100_v28, %v1101_v57  ;;  %v1997_v24 = vsel %vm558_vm2, %v1996_v63, %v1995_v35  ;;  %v1254_v57 = vsel %vm3986_vm11, %v3373_v16, %v1253_v62  ;;  %vm3987_vm2 = vcmask 7168  }
 0x2e0   : > { %v1105_v38 = vadd.f32 %v1103_v47, %v1087_v21  ;;  %v1134_v42 = vpop.permute.xlu0 %1133  ;;  %v1999_v53 = vmul.f32 %v1997_v24, %v3129_v0  ;;  %v2011_v22 = vpop.permute.xlu1 %2010  ;;  %v1291_v24 = vld [vmem:[#allocation2 + $0x2] ss:$2 sm:$0x3]  ;;  %vm3988_vm8 = vmmov %vm3987_vm2  ;;  %vm3989_vm0 = vcmask 1039360  }
 0x2e1   : > { %v1135_v31 = vrot.slane %v1134_v42, 1  ;;  %v2012_v56 = vrot.slane %v2011_v22, 7  ;;  %v1288_v54 = vsel %vm3988_vm8, %v3385_v9, %v1287_v6  ;;  %vm3990_vm9 = vmmov %vm3989_vm0  ;;  %v1363_v9 = vrot.slane %v3423_v14, 1 }
 0x2e2   : > { %v1121_v27 = vadd.f32 %v1119_v3, %v1105_v38  ;;  %2001 = vrot.lane.b32.xlu1 %v1999_v53, %s3971_s14  ;;  %v1293_v38 = vld [vmem:[#allocation6 + $0x30] ss:$8 sm:$0x3]  ;;  %v1296_v53 = vld [vmem:[#allocation2 + $0x3] ss:$2 sm:$0x3] }
 0x2e3   : > { %v1137_v37 = vsel %vm3973_vm10, %v1134_v42, %v1135_v31  ;;  %v2013_v44 = vsel %vm3974_vm12, %v2012_v56, %v2011_v22  ;;  %v1298_v22 = vld [vmem:[#allocation6 + $0x91] ss:$8 sm:$0x3]  ;;  %v1294_v31 = vmul.f32 %v1293_v38, %v1291_v24  ;;  %vm3991_vm10 = vcmask 1031168  }
 0x2e4   : > { %v1139_v26 = vadd.f32 %v1137_v37, %v1121_v27  ;;  %v1168_v39 = vpop.permute.xlu0 %1167  ;;  %v2015_v2 = vmul.f32 %v2013_v44, %v3348_v7  ;;  %v2027_v0 = vpop.permute.xlu1 %2026  ;;  %v1299_v56 = vmul.f32 %v1298_v22, %v1296_v53  ;;  %v1331_v44 = vrot.slane %v3410_v58, 1  ;;  %vm3992_vm12 = vmmov %vm3991_vm10 }
 0x2e5   : > { %v1169_v60 = vrot.slane %v1168_v39, 1  ;;  %v2028_v59 = vrot.slane %v2027_v0, 7 }
 0x2e6   : > { %v1155_v23 = vadd.f32 %v1153_v15, %v1139_v26  ;;  %2017 = vrot.lane.b32.xlu0 %v2015_v2, %s3977_s13 }
 0x2e7   : > { %v1171_v20 = vsel %vm3976_vm14, %v1168_v39, %v1169_v60  ;;  %v2029_v1 = vsel %vm3978_vm15, %v2028_v59, %v2027_v0  ;;  %v1332_v0 = vsel %vm3990_vm9, %v3410_v58, %v1331_v44  ;;  %vm3994_vm14 = vmmov %vm3993_vm13  ;;  %vm3995_vm15 = vcmask 941056  }
 0x2e8   : > { %v1173_v52 = vadd.f32 %v1171_v20, %v1155_v23  ;;  %v1202_v11 = vpop.permute.xlu0 %1201  ;;  %v2031_v8 = vmul.f32 %v2349_v61, %v2029_v1  ;;  %v2043_v55 = vpop.permute.xlu1 %2042  ;;  %vm3996_vm1 = vmmov %vm3995_vm15 }
 0x2e9   : > { %v1203_v45 = vrot.slane %v1202_v11, 1  ;;  %v2044_v12 = vrot.slane %v2043_v55, 7 }
 0x2ea   : > { %v1189_v5 = vadd.f32 %v1187_v46, %v1173_v52  ;;  %2033 = vrot.lane.b32.xlu1 %v2031_v8, %s3977_s13  ;;  %v1364_v52 = vsel %vm3992_vm12, %v3423_v14, %v1363_v9 }
 0x2eb   : > { %v1205_v18 = vsel %vm3980_vm3, %v1202_v11, %v1203_v45  ;;  %v2045_v33 = vsel %vm3981_vm4, %v2044_v12, %v2043_v55  ;;  %v1395_v11 = vrot.slane %v3435_v40, 1  ;;  %v1427_v45 = vrot.slane %v3448_v48, 1 }
 0x2ec   : > { %v1207_v32 = vadd.f32 %v1205_v18, %v1189_v5  ;;  %v1236_v13 = vpop.permute.xlu0 %1235  ;;  %v2047_v50 = vmul.f32 %v2045_v33, %v3348_v7  ;;  %v2059_v30 = vpop.permute.xlu1 %2058  ;;  %vm3997_vm3 = vcmask 932864  }
 0x2ed   : > { %v1237_v29 = vrot.slane %v1236_v13, 1  ;;  %v2060_v28 = vrot.slane %v2059_v30, 7  ;;  %v1396_v58 = vsel %vm3994_vm14, %v3435_v40, %v1395_v11  ;;  %v1428_v14 = vsel %vm3996_vm1, %v3448_v48, %v1427_v45  ;;  %vm3998_vm4 = vmmov %vm3997_vm3 }
 0x2ee   : > { %v1223_v34 = vadd.f32 %v1221_v10, %v1207_v32  ;;  %2049 = vrot.lane.b32.xlu0 %v2047_v50, %s3984_s25 }
 0x2ef   : > { %v1238_v25 = vsel %vm3983_vm6, %v1236_v13, %v1237_v29  ;;  %v2061_v51 = vsel %vm3985_vm7, %v2060_v28, %v2059_v30  ;;  %v1459_v13 = vrot.slane %v3460_v4, 1  ;;  %vm4000_vm6 = vmmov %vm3999_vm5  ;;  %vm4001_vm7 = vcmask 916480  }
 0x2f0   : > { %v1240_v17 = vadd.f32 %v1238_v25, %v1223_v34  ;;  %v1269_v35 = vpop.permute.xlu0 %1268  ;;  %v2063_v21 = vmul.f32 %v2349_v61, %v2061_v51  ;;  %v1491_v34 = vrot.slane %v3473_v49, 1  ;;  %vm4002_vm11 = vmmov %vm4001_vm7 }
 0x2f1   : > { %v1270_v63 = vrot.slane %v1269_v35, 1  ;;  %v1460_v40 = vsel %vm3998_vm4, %v3460_v4, %v1459_v13 }
 0x2f2   : > { %v1256_v7 = vadd.f32 %v1254_v57, %v1240_v17  ;;  %2065 = vrot.lane.b32.xlu1 %v2063_v21, %s3984_s25  ;;  %v1492_v48 = vsel %vm4000_vm6, %v3473_v49, %v1491_v34  ;;  %v1523_v57 = vrot.slane %v3486_v41, 1  ;;  %v1586_v21 = vpop.permute.xlu1 %1585 }
 0x2f3   : > { %v1272_v47 = vsel %vm3987_vm2, %v1269_v35, %v1270_v63  ;;  %vm4003_vm2 = vcmask 908288  }
 0x2f4   : > { %v1274_v42 = vadd.f32 %v1272_v47, %v1256_v7  ;;  %v3632_v3 = vpop.permute.xlu0 %1553  ;;  %v1524_v24 = vsel %vm4002_vm11, %v3486_v41, %v1523_v57  ;;  %vm4004_vm8 = vmmov %vm4003_vm2 }
 0x2f5   : > { %v1555_v38 = vrot.slane %v3632_v3, 1 }
 0x2f6   : > { %v1290_v16 = vadd.f32 %v1288_v54, %v1274_v42  ;;  %v1618_v22 = vpop.permute.xlu1 %1617 }
 0x2f8   : > { %v1295_v27 = vadd.f32 %v1294_v31, %v1290_v16  ;;  %v1313_v37 = vpop.permute.xlu0 %1312  ;;  %v1587_v31 = vrot.slane %v1586_v21, 1 }
 0x2f9   : > { %v1314_v26 = vrot.slane %v1313_v37, 1 }
 0x2fa   : > { %v1300_v39 = vadd.f32 %v1299_v56, %v1295_v27  ;;  %v1556_v27 = vsel %vm4004_vm8, %v3632_v3, %v1555_v38 }
 0x2fb   : > { %v1315_v15 = vsel %vm3989_vm0, %v1313_v37, %v1314_v26  ;;  %vm4005_vm0 = vcmask 900096  }
 0x2fc   : > { %v1317_v19 = vadd.f32 %v1315_v15, %v1300_v39  ;;  %v1346_v2 = vpop.permute.xlu0 %1345  ;;  %vm4006_vm9 = vmmov %vm4005_vm0 }
 0x2fd   : > { %v1347_v60 = vrot.slane %v1346_v2, 1  ;;  %v1588_v15 = vsel %vm4006_vm9, %v1586_v21, %v1587_v31 }
 0x2fe   : > { %v1334_v23 = vadd.f32 %v1332_v0, %v1317_v19  ;;  %v1619_v19 = vrot.slane %v1618_v22, 1 }
 0x2ff   : > { %v1348_v59 = vsel %vm3991_vm10, %v1346_v2, %v1347_v60  ;;  %vm4007_vm10 = vcmask 891904  }
 0x300   : > { %v1350_v20 = vadd.f32 %v1348_v59, %v1334_v23  ;;  %v1378_v1 = vpop.permute.xlu0 %1377  ;;  %v1650_v26 = vpop.permute.xlu1 %1649  ;;  %vm4008_vm12 = vmmov %vm4007_vm10 }
 0x301   : > { %v1379_v46 = vrot.slane %v1378_v1, 1  ;;  %v1651_v3 = vrot.slane %v1650_v26, 1 }
 0x302   : > { %v1366_v36 = vadd.f32 %v1364_v52, %v1350_v20  ;;  %v1620_v20 = vsel %vm4008_vm12, %v1618_v22, %v1619_v19 }
 0x303   : > { %v1380_v61 = vsel %vm3993_vm13, %v1378_v1, %v1379_v46  ;;  %vm4009_vm13 = vcmask 809984  }
 0x304   : > { %v1382_v8 = vadd.f32 %v1380_v61, %v1366_v36  ;;  %v1410_v55 = vpop.permute.xlu0 %1409  ;;  %vm4010_vm14 = vmmov %vm4009_vm13 }
 0x305   : > { %v1411_v5 = vrot.slane %v1410_v55, 1 }
 0x306   : > { %v1398_v12 = vadd.f32 %v1396_v58, %v1382_v8  ;;  %v1652_v8 = vsel %vm4010_vm14, %v1650_v26, %v1651_v3 }
 0x307   : > { %v1412_v18 = vsel %vm3995_vm15, %v1410_v55, %v1411_v5  ;;  %vm4011_vm15 = vcmask 801792  }
 0x308   : > { %v1414_v33 = vadd.f32 %v1412_v18, %v1398_v12  ;;  %v1442_v32 = vpop.permute.xlu0 %1441  ;;  %v1682_v60 = vpop.permute.xlu1 %1681  ;;  %vm4012_vm1 = vmmov %vm4011_vm15 }
 0x309   : > { %v1443_v10 = vrot.slane %v1442_v32, 1  ;;  %v1683_v55 = vrot.slane %v1682_v60, 1 }
 0x30a   : > { %v1430_v62 = vadd.f32 %v1428_v14, %v1414_v33 }
 0x30b   : > { %v1444_v50 = vsel %vm3997_vm3, %v1442_v32, %v1443_v10  ;;  %v1684_v32 = vsel %vm4012_vm1, %v1682_v60, %v1683_v55  ;;  %vm4013_vm3 = vcmask 793600  }
 0x30c   : > { %v1446_v30 = vadd.f32 %v1444_v50, %v1430_v62  ;;  %v1474_v29 = vpop.permute.xlu0 %1473  ;;  %vm4014_vm4 = vmmov %vm4013_vm3 }
 0x30d   : > { %v1475_v28 = vrot.slane %v1474_v29, 1 }
 0x30e   : > { %v1462_v25 = vadd.f32 %v1460_v40, %v1446_v30 }
 0x30f   : > { %v1476_v51 = vsel %vm3999_vm5, %v1474_v29, %v1475_v28  ;;  %vm4015_vm5 = vcmask 785408  }
 0x310   : > { %v1478_v17 = vadd.f32 %v1476_v51, %v1462_v25  ;;  %v1506_v35 = vpop.permute.xlu0 %1505  ;;  %v1714_v46 = vpop.permute.xlu1 %1713  ;;  %vm4016_vm6 = vmmov %vm4015_vm5 }
 0x311   : > { %v1507_v6 = vrot.slane %v1506_v35, 1  ;;  %v1715_v14 = vrot.slane %v1714_v46, 1 }
 0x312   : > { %v1494_v63 = vadd.f32 %v1492_v48, %v1478_v17 }
 0x313   : > { %v1508_v7 = vsel %vm4001_vm7, %v1506_v35, %v1507_v6  ;;  %v1716_v40 = vsel %vm4014_vm4, %v1714_v46, %v1715_v14  ;;  %vm4017_vm7 = vcmask 777216  }
 0x314   : > { %v1510_v47 = vadd.f32 %v1508_v7, %v1494_v63  ;;  %v1538_v4 = vpop.permute.xlu0 %1537  ;;  %vm4018_vm11 = vmmov %vm4017_vm7 }
 0x315   : > { %v1539_v42 = vrot.slane %v1538_v4, 1 }
 0x316   : > { %v1526_v54 = vadd.f32 %v1524_v24, %v1510_v47 }
 0x317   : > { %v1540_v53 = vsel %vm4003_vm2, %v1538_v4, %v1539_v42  ;;  %vm4019_vm2 = vcmask 769024  }
 0x318   : > { %v1542_v49 = vadd.f32 %v1540_v53, %v1526_v54  ;;  %v1570_v16 = vpop.permute.xlu0 %1569  ;;  %v1746_v12 = vpop.permute.xlu1 %1745  ;;  %vm4020_vm8 = vmmov %vm4019_vm2 }
 0x319   : > { %v1571_v56 = vrot.slane %v1570_v16, 1  ;;  %v1747_v34 = vrot.slane %v1746_v12, 1 }
 0x31a   : > { %v1558_v37 = vadd.f32 %v1556_v27, %v1542_v49 }
 0x31b   : > { %v1572_v44 = vsel %vm4005_vm0, %v1570_v16, %v1571_v56  ;;  %v1748_v48 = vsel %vm4016_vm6, %v1746_v12, %v1747_v34  ;;  %vm4021_vm0 = vcmask 760832  }
 0x31c   : > { %v1574_v39 = vadd.f32 %v1572_v44, %v1558_v37  ;;  %v1602_v41 = vpop.permute.xlu0 %1601  ;;  %vm4022_vm9 = vmmov %vm4021_vm0 }
 0x31d   : > { %v1603_v2 = vrot.slane %v1602_v41, 1 }
 0x31e   : > { %v1590_v0 = vadd.f32 %v1588_v15, %v1574_v39 }
 0x31f   : > { %v1604_v9 = vsel %vm4007_vm10, %v1602_v41, %v1603_v2  ;;  %vm4023_vm10 = vcmask 678912  }
 0x320   : > { %v1606_v23 = vadd.f32 %v1604_v9, %v1590_v0  ;;  %v1634_v59 = vpop.permute.xlu0 %1633  ;;  %v1778_v50 = vpop.permute.xlu1 %1777  ;;  %vm4024_vm12 = vmmov %vm4023_vm10 }
 0x321   : > { %v1635_v1 = vrot.slane %v1634_v59, 1  ;;  %v1779_v57 = vrot.slane %v1778_v50, 1 }
 0x322   : > { %v1622_v52 = vadd.f32 %v1620_v20, %v1606_v23 }
 0x323   : > { %v1636_v11 = vsel %vm4009_vm13, %v1634_v59, %v1635_v1  ;;  %v1780_v24 = vsel %vm4018_vm11, %v1778_v50, %v1779_v57  ;;  %vm4025_vm13 = vcmask 670720  }
 0x324   : > { %v1638_v36 = vadd.f32 %v1636_v11, %v1622_v52  ;;  %v1666_v61 = vpop.permute.xlu0 %1665  ;;  %v1810_v21 = vpop.permute.xlu1 %1809  ;;  %vm4026_vm14 = vmmov %vm4025_vm13 }
 0x325   : > { %v1667_v58 = vrot.slane %v1666_v61, 1  ;;  %v1811_v38 = vrot.slane %v1810_v21, 1 }
 0x326   : > { %v1654_v45 = vadd.f32 %v1652_v8, %v1638_v36 }
 0x327   : > { %v1668_v5 = vsel %vm4011_vm15, %v1666_v61, %v1667_v58  ;;  %v1812_v31 = vsel %vm4020_vm8, %v1810_v21, %v1811_v38  ;;  %vm4027_vm15 = vcmask 662528  }
 0x328   : > { %v1670_v18 = vadd.f32 %v1668_v5, %v1654_v45  ;;  %v1698_v33 = vpop.permute.xlu0 %1697  ;;  %vm4028_vm1 = vmmov %vm4027_vm15 }
 0x329   : > { %v1699_v13 = vrot.slane %v1698_v33, 1 }
 0x32a   : > { %v1686_v10 = vadd.f32 %v1684_v32, %v1670_v18 }
 0x32b   : > { %v1700_v62 = vsel %vm4013_vm3, %v1698_v33, %v1699_v13  ;;  %vm4029_vm3 = vcmask 654336  }
 0x32c   : > { %v1702_v30 = vadd.f32 %v1700_v62, %v1686_v10  ;;  %v1730_v29 = vpop.permute.xlu0 %1729  ;;  %v1842_v53 = vpop.permute.xlu1 %1841  ;;  %vm4030_vm4 = vmmov %vm4029_vm3 }
 0x32d   : > { %v1731_v28 = vrot.slane %v1730_v29, 1  ;;  %v1843_v56 = vrot.slane %v1842_v53, 1 }
 0x32e   : > { %v1718_v25 = vadd.f32 %v1716_v40, %v1702_v30 }
 0x32f   : > { %v1732_v51 = vsel %vm4015_vm5, %v1730_v29, %v1731_v28  ;;  %v1844_v15 = vsel %vm4022_vm9, %v1842_v53, %v1843_v56  ;;  %vm4031_vm5 = vcmask 646144  }
 0x330   : > { %v1734_v17 = vadd.f32 %v1732_v51, %v1718_v25  ;;  %v1762_v35 = vpop.permute.xlu0 %1761  ;;  %vm4032_vm6 = vmmov %vm4031_vm5 }
 0x331   : > { %v1763_v6 = vrot.slane %v1762_v35, 1 }
 0x332   : > { %v1750_v63 = vadd.f32 %v1748_v48, %v1734_v17 }
 0x333   : > { %v1764_v7 = vsel %vm4017_vm7, %v1762_v35, %v1763_v6  ;;  %vm4033_vm7 = vcmask 637952  }
 0x334   : > { %v1766_v47 = vadd.f32 %v1764_v7, %v1750_v63  ;;  %v1794_v4 = vpop.permute.xlu0 %1793  ;;  %v1874_v19 = vpop.permute.xlu1 %1873  ;;  %vm4034_vm11 = vmmov %vm4033_vm7 }
 0x335   : > { %v1795_v42 = vrot.slane %v1794_v4, 1  ;;  %v1875_v60 = vrot.slane %v1874_v19, 1 }
 0x336   : > { %v1782_v54 = vadd.f32 %v1780_v24, %v1766_v47 }
 0x337   : > { %v1796_v22 = vsel %vm4019_vm2, %v1794_v4, %v1795_v42  ;;  %v1876_v20 = vsel %vm4024_vm12, %v1874_v19, %v1875_v60  ;;  %vm4035_vm2 = vcmask 629760  }
 0x338   : > { %v1798_v49 = vadd.f32 %v1796_v22, %v1782_v54  ;;  %v1826_v16 = vpop.permute.xlu0 %1825  ;;  %vm4036_vm8 = vmmov %vm4035_vm2 }
 0x339   : > { %v1827_v27 = vrot.slane %v1826_v16, 1 }
 0x33a   : > { %v1814_v37 = vadd.f32 %v1812_v31, %v1798_v49 }
 0x33b   : > { %v1828_v44 = vsel %vm4021_vm0, %v1826_v16, %v1827_v27 }
 0x33c   : > { %v1830_v26 = vadd.f32 %v1828_v44, %v1814_v37  ;;  %v1858_v39 = vpop.permute.xlu0 %1857  ;;  %v1906_v3 = vpop.permute.xlu1 %1905 }
 0x33d   : > { %v1859_v41 = vrot.slane %v1858_v39, 1  ;;  %v1907_v46 = vrot.slane %v1906_v3, 1 }
 0x33e   : > { %v1846_v2 = vadd.f32 %v1844_v15, %v1830_v26  ;;  %v2080_v26 = vsub.s32 0, %v2941_v43 }
 0x33f   : > { %v1860_v0 = vsel %vm4023_vm10, %v1858_v39, %v1859_v41  ;;  %v1908_v8 = vsel %vm4026_vm14, %v1906_v3, %v1907_v46  ;;  %v2084_v39 = vsub.s32 1, %v2941_v43  ;;  %v4042_v43 = vld [vmem:[#allocation12_spill] sm:$0xff]  ;;  %v4044_v46 = vld [vmem:[#allocation18_spill] sm:$0xff] }
 0x340   : > { %v1890_v9 = vpop.permute.xlu0 %1889  ;;  %v1862_v23 = vadd.f32 %v1860_v0, %v1846_v2  ;;  %v4038_v2 = vld [vmem:[#allocation14_spill] sm:$0xff] }
 0x341   : > { %v1891_v59 = vrot.slane %v1890_v9, 1 }
 0x342   : > { %v1878_v1 = vadd.f32 %v1876_v20, %v1862_v23  ;;  %v4040_v23 = vld [vmem:[#allocation16_spill] sm:$0xff]  ;;  %v4041_v20 = vld [vmem:[#allocation17_spill] sm:$0xff] }
 0x343   : > { %v1892_v52 = vsel %vm4025_vm13, %v1890_v9, %v1891_v59  ;;  %v4039_v9 = vld [vmem:[#allocation15_spill] sm:$0xff] }
 0x344   : > { %v1922_v11 = vpop.permute.xlu0 %1921  ;;  %v1894_v36 = vadd.f32 %v1892_v52, %v1878_v1  ;;  %v1938_v55 = vpop.permute.xlu1 %1937  ;;  %v4043_v52 = vld [vmem:[#allocation13_spill] sm:$0xff] }
 0x345   : > { %v1923_v61 = vrot.slane %v1922_v11, 1  ;;  %v1939_v12 = vrot.slane %v1938_v55, 1 }
 0x346   : > { %v1910_v58 = vadd.f32 %v1908_v8, %v1894_v36 }
 0x347   : > { %v1924_v45 = vsel %vm4027_vm15, %v1922_v11, %v1923_v61  ;;  %v1940_v13 = vsel %vm4028_vm1, %v1938_v55, %v1939_v12  ;;  %v4045_v61 = vld [vmem:[#allocation19_spill] sm:$0xff] }
 0x348   : > { %v1954_v5 = vpop.permute.xlu0 %1953  ;;  %v1926_v18 = vadd.f32 %v1924_v45, %v1910_v58 }
 0x349   : > { %v1955_v32 = vrot.slane %v1954_v5, 1 }
 0x34a   : > { %v1942_v62 = vadd.f32 %v1940_v13, %v1926_v18 }
 0x34b   : > { %v1956_v30 = vsel %vm4029_vm3, %v1954_v5, %v1955_v32 }
 0x34c   : > { %v1970_v33 = vpop.permute.xlu1 %1969  ;;  %v1958_v25 = vadd.f32 %v1956_v30, %v1942_v62 }
 0x34d   : > { %v1971_v10 = vrot.slane %v1970_v33, 1 }
 0x34f   : > { %v1972_v34 = vsel %vm4030_vm4, %v1970_v33, %v1971_v10 }
 0x350   : > { %v1986_v14 = vpop.permute.xlu0 %1985  ;;  %v1974_v35 = vadd.f32 %v1972_v34, %v1958_v25 }
 0x351   : > { %v1987_v29 = vrot.slane %v1986_v14, 1 }
 0x353   : > { %v1988_v51 = vsel %vm4031_vm5, %v1986_v14, %v1987_v29 }
 0x354   : > { %v2002_v50 = vpop.permute.xlu1 %2001  ;;  %v1990_v21 = vadd.f32 %v1988_v51, %v1974_v35 }
 0x355   : > { %v2003_v28 = vrot.slane %v2002_v50, 1 }
 0x357   : > { %v2004_v57 = vsel %vm4032_vm6, %v2002_v50, %v2003_v28 }
 0x358   : > { %v2018_v40 = vpop.permute.xlu0 %2017  ;;  %v2006_v7 = vadd.f32 %v2004_v57, %v1990_v21 }
 0x359   : > { %v2019_v17 = vrot.slane %v2018_v40, 1 }
 0x35b   : > { %v2020_v63 = vsel %vm4033_vm7, %v2018_v40, %v2019_v17 }
 0x35c   : > { %v2034_v48 = vpop.permute.xlu1 %2033  ;;  %v2022_v38 = vadd.f32 %v2020_v63, %v2006_v7 }
 0x35d   : > { %v2035_v6 = vrot.slane %v2034_v48, 1 }
 0x35f   : > { %v2036_v4 = vsel %vm4034_vm11, %v2034_v48, %v2035_v6 }
 0x360   : > { %v2050_v47 = vpop.permute.xlu0 %2049  ;;  %v2038_v54 = vadd.f32 %v2036_v4, %v2022_v38 }
 0x361   : > { %v2051_v24 = vrot.slane %v2050_v47, 1 }
 0x363   : > { %v2052_v42 = vsel %vm4035_vm2, %v2050_v47, %v2051_v24 }
 0x364   : > { %v2066_v53 = vpop.permute.xlu1 %2065  ;;  %v2054_v49 = vadd.f32 %v2052_v42, %v2038_v54 }
 0x365   : > { %v2067_v22 = vrot.slane %v2066_v53, 1 }
 0x367   : > { %v2068_v16 = vsel %vm4036_vm8, %v2066_v53, %v2067_v22 }
 0x368   : > { %v2070_v31 = vadd.f32 %v2068_v16, %v2054_v49 }
 0x36a   : > { %v2071_v27 = vsub.f32 0.0, %v2070_v31 }
 0x36c   : > { %v2072_v56 = vmul.f32 1.442695, %v2071_v27 }
 0x36e   : > { %2345 = vpow2.f32 %v2072_v56 }
 0x37b   : > { %v2346_v37 = vpop.eup %2345 }
 0x37c   : > { %v2074_v44 = vadd.f32 1.0, %v2346_v37 }
 0x37e   : > { %2347 = vrcp.f32 %v2074_v44 }
 0x38b   : > { %v2348_v41 = vpop.eup %2347 }
 0x38c   : > { %v2081_v15 = vrot.slane %v2348_v41, %v2080_v26  ;;  %v2085_v19 = vrot.slane %v2348_v41, %v2084_v39 }
 0x38e   : > { %v2088_v0 = vmul.f32 %v2081_v15, %v4038_v2  ;;  %v2089_v60 = vmul.f32 %v2085_v19, %v4039_v9  ;;  %v2090_v59 = vmul.f32 %v2081_v15, %v4040_v23  ;;  %v2091_v3 = vmul.f32 %v2085_v19, %v4041_v20 }
 0x38f   : > { %v2092_v1 = vmul.f32 %v2081_v15, %v4042_v43  ;;  %v2093_v11 = vmul.f32 %v2085_v19, %v4043_v52  ;;  %v2094_v36 = vmul.f32 %v2081_v15, %v4044_v46  ;;  %v2095_v8 = vmul.f32 %v2085_v19, %v4045_v61 }
 0x390   : > { %2096 = vst [vmem:[%s230_s6] sm:$0xff] %v2088_v0  ;;  %2097 = vst [vmem:[%s230_s6 + $0x8] sm:$0xff] %v2089_v60 }
 0x391   : > { %2098 = vst [vmem:[%s230_s6 + $0x10] sm:$0xff] %v2090_v59  ;;  %2099 = vst [vmem:[%s230_s6 + $0x18] sm:$0xff] %v2091_v3 }
 0x392   : > { %2100 = vst [vmem:[%s230_s6 + $0x20] sm:$0xff] %v2092_v1  ;;  %2101 = vst [vmem:[%s230_s6 + $0x28] sm:$0xff] %v2093_v11 }
 0x393   : > { %2102 = vst [vmem:[%s230_s6 + $0x30] sm:$0xff] %v2094_v36  ;;  %2103 = vst [vmem:[%s230_s6 + $0x38] sm:$0xff] %v2095_v8 }
 0x394   : > { %2417 = shalt.err (!%p2414_p0)
}
 0x395   : > { %s2418_s23 = scalar_lea.hbm %s3712_s11, 1024  ;;  %s2422_s25 = scalar_lea.hbm %s3766_s4, 2048 }
 0x396   : > { %p2419_p5 = scmp.ne.s32.totalorder %s3712_s11, %s2418_s23  ;;  %p2423_p4 = scmp.lt.s32.totalorder %s3712_s11, %s3766_s4 }
 0x397   : > { %p2424_p6 = scmp.lt.s32.totalorder %s2422_s25, %s2418_s23 }
 0x398   : > { %p2420_p2 = pnand %p2419_p5, %p4046_p11 }
 0x399   : > { %p2425_p8 = por %p2424_p6, %p2423_p4 }
 0x39a   : > { %p2421_p1 = pneg %p2420_p2 }
 0x39c   : > { %p2426_p3 = pnand %p2425_p8, %p2421_p1 }
 0x39e   : > { %2429 = shalt.err (!%p2426_p3)
}
 0x39f   : > { %s2529_s6 = smov 256  }
 0x3a0   : > { %2225 = dma.vmem_to_hbm [thread:$0]  (%p4046_p11), %s3718_s20, 1024, %s3712_s11, %s2105_s19, %s2529_s6, %s2529_s6, %s3943_s5  }
 0x3a1 PF: > { %s2133_s24 = sand.u32 1, %s2460_s15   ;;  %p4047_p7 = scmp.ne.s32.totalorder %s3900_s22, 0 }
 0x3a2   : > { %p4048_p9 = scmp.ge.s32.totalorder %s2472_s18, 2  ;;  %s2134_s29 = scalar_lea.sflag [#allocation5], %s2133_s24 }
 0x3a4   : > { %p2236_p10 = pnand %p4048_p9, %p4047_p7 }
 0x3a6   : > { %p2237_p12 = pneg %p2236_p10 }
 0x3a8   : > { %2455 = dma.done.wait (%p2237_p12), %s2134_s29, 1024  }
 0x3a9   : > { %2457 = vsyncadd (%p2237_p12), %s2134_s29, 4294966272  ;;  %p18_p13 = scmp.ge.s32.totalorder %s2609_s27, 4   ;;  %s4049_s15 = smov %s2464_s16 }
 0x3aa   : > { %s4050_s16 = smov %s2468_s17  ;;  %s4051_s17 = smov %s2629_s9 }
 0x3ab   : > { %s4052_s18 = smov %s2609_s27  ;;  %20 = sbr.rel (!%p18_p13) target bundleno = 6 (0x6), region = 186 }
 0x3b0   :  { %2139 = vsyncpa [#allocation4], 1 }
 0x3b1   :  { %2141 = vsyncpa [#allocation4 + $0x1], 1 }
 0x3b2   :  { %2142 = vsyncpa [#allocation7], 1 }
 0x3b3   :  { %2143 = vsyncpa [#allocation5], 1 }
 0x3b4   :  { %2145 = vsyncpa [#allocation5 + $0x1], 1 }

</bundles_post_ra>
